<compile_context>
chip_gen: v7x
topology: tpu7x:2x2x1
jax: 0.10.0
libtpu: 0.0.40
codegen_flags: <defaults>
</compile_context>

<pallas_src>
import functools

import jax
import jax.numpy as jnp
from jax.experimental import pallas as pl
from jax.experimental.pallas import tpu as pltpu


# ----------------------------------------------------------------------------
# Tile helpers
# ----------------------------------------------------------------------------
def _choose_tile(dim, target, align):
    """Largest tile <= target that divides `dim` and is a multiple of `align`,
    or the full dim if dim <= target (full-dim blocks are always legal)."""
    if dim <= target:
        return dim
    t = (target // align) * align
    while t >= align:
        if dim % t == 0:
            return t
        t -= align
    return dim  # fall back to full dim (only for odd, unaligned sizes)


_LINEAR_VMEM_LIMIT = 48 * 1024 * 1024  # < v7x's 64 MiB physical VMEM, with headroom


# ----------------------------------------------------------------------------
# Linear: tiled matmul + bias (+ fused activation)
# ----------------------------------------------------------------------------
def _linear_kernel(x_ref, w_ref, b_ref, o_ref, acc_ref, *, activation):
    @pl.when(pl.program_id(2) == 0)
    def _():
        acc_ref[...] = jnp.zeros_like(acc_ref)

    acc_ref[...] += jnp.dot(
        x_ref[...], w_ref[...], preferred_element_type=jnp.float32
    )

    @pl.when(pl.program_id(2) == pl.num_programs(2) - 1)
    def _():
        y = acc_ref[...] + b_ref[...]
        if activation == "gelu":
            y = jax.nn.gelu(y, approximate=True)
        elif activation == "silu":
            y = jax.nn.silu(y)
        o_ref[...] = y.astype(o_ref.dtype)


def pallas_linear(x2d, w_t, b, activation=None, out_dtype=jnp.bfloat16):
    """y = act(x2d @ w_t + b).  x2d: (M, K); w_t: (K, N) bf16; b: (N,) f32."""
    M, K = x2d.shape
    N = w_t.shape[1]
    x2d = x2d.astype(jnp.bfloat16)

    TM, TN, TK = 512, 512, 1024
    if M <= TM:
        tm, Mp = M, M
    else:
        tm = TM
        Mp = ((M + TM - 1) // TM) * TM
        if Mp != M:  # real Flux token counts are 128-aligned; this is a fallback
            x2d = jnp.pad(x2d, ((0, Mp - M), (0, 0)))
    tn = _choose_tile(N, TN, 128)
    tk = _choose_tile(K, TK, 128)

    grid = (Mp // tm, N // tn, K // tk)

    out = pl.pallas_call(
        functools.partial(_linear_kernel, activation=activation),
        out_shape=jax.ShapeDtypeStruct((Mp, N), out_dtype),
        grid=grid,
        in_specs=[
            pl.BlockSpec((tm, tk), lambda i, j, k: (i, k)),
            pl.BlockSpec((tk, tn), lambda i, j, k: (k, j)),
            pl.BlockSpec((1, tn), lambda i, j, k: (0, j)),
        ],
        out_specs=pl.BlockSpec((tm, tn), lambda i, j, k: (i, j)),
        scratch_shapes=[pltpu.VMEM((tm, tn), jnp.float32)],
        compiler_params=pltpu.CompilerParams(
            dimension_semantics=("parallel", "parallel", "arbitrary"),
            vmem_limit_bytes=_LINEAR_VMEM_LIMIT,
        ),
    )(x2d, w_t, b.reshape(1, N))
    if Mp != M:
        out = out[:M]
    return out


def linear(x, p, activation=None, out_dtype=jnp.bfloat16):
    """x: (..., K); p['wt'] pre-transposed/pre-cast (K, N) bf16; p['b'] (N,) f32."""
    shp = x.shape
    y = pallas_linear(x.reshape(-1, shp[-1]), p["wt"], p["b"], activation, out_dtype)
    return y.reshape(shp[:-1] + (p["wt"].shape[1],))


def xla_linear(x, p, activation=None):
    """Tiny-M linears (M == batch): plain XLA, bf16 operands / f32 accumulation.
    Avoids Pallas launch + dead MXU passes for 2-8 row matmuls."""
    y = jnp.dot(x.astype(jnp.bfloat16), p["wt"], preferred_element_type=jnp.float32) + p["b"]
    if activation == "silu":
        y = jax.nn.silu(y)
    return y


# ----------------------------------------------------------------------------
# Linear with fused `residual + gate * (x @ W + b [+ extra])` epilogue
# ----------------------------------------------------------------------------
def _linear_resgate_kernel(*refs, activation, has_extra):
    if has_extra:
        x_ref, w_ref, b_ref, res_ref, gate_ref, extra_ref, o_ref, acc_ref = refs
    else:
        x_ref, w_ref, b_ref, res_ref, gate_ref, o_ref, acc_ref = refs

    @pl.when(pl.program_id(3) == 0)
    def _():
        acc_ref[...] = jnp.zeros_like(acc_ref)

    acc_ref[...] += jnp.dot(
        x_ref[0], w_ref[...], preferred_element_type=jnp.float32
    )

    @pl.when(pl.program_id(3) == pl.num_programs(3) - 1)
    def _():
        y = acc_ref[...] + b_ref[...]
        if activation == "gelu":
            y = jax.nn.gelu(y, approximate=True)
        if has_extra:
            y = y + extra_ref[0].astype(jnp.float32)
        out = res_ref[0].astype(jnp.float32) + gate_ref[0].astype(jnp.float32) * y
        o_ref[...] = out.astype(o_ref.dtype).reshape(o_ref.shape)


def pallas_linear_resgate(x, w_t, b, residual, gate, extra=None, activation=None,
                          out_dtype=jnp.float32):
    """out = residual + gate * (act(x @ w_t + b) + extra).
    x: (B, L, K); w_t: (K, N) bf16; b: (N,); residual/extra: (B, L, N); gate: (B, 1, N)."""
    B, L, K = x.shape
    N = w_t.shape[1]
    x = x.astype(jnp.bfloat16)

    tl = _choose_tile(L, 512, 8)
    tn = _choose_tile(N, 512, 128)
    tk = _choose_tile(K, 1024, 128)
    grid = (B, L // tl, N // tn, K // tk)

    in_specs = [
        pl.BlockSpec((1, tl, tk), lambda b_, i, j, k: (b_, i, k)),
        pl.BlockSpec((tk, tn), lambda b_, i, j, k: (k, j)),
        pl.BlockSpec((1, tn), lambda b_, i, j, k: (0, j)),
        pl.BlockSpec((1, tl, tn), lambda b_, i, j, k: (b_, i, j)),
        pl.BlockSpec((1, 1, tn), lambda b_, i, j, k: (b_, 0, j)),
    ]
    args = [x, w_t, b.reshape(1, N), residual, gate]
    has_extra = extra is not None
    if has_extra:
        in_specs.append(pl.BlockSpec((1, tl, tn), lambda b_, i, j, k: (b_, i, j)))
        args.append(extra)

    return pl.pallas_call(
        functools.partial(
            _linear_resgate_kernel, activation=activation, has_extra=has_extra
        ),
        out_shape=jax.ShapeDtypeStruct((B, L, N), out_dtype),
        grid=grid,
        in_specs=in_specs,
        out_specs=pl.BlockSpec((1, tl, tn), lambda b_, i, j, k: (b_, i, j)),
        scratch_shapes=[pltpu.VMEM((tl, tn), jnp.float32)],
        compiler_params=pltpu.CompilerParams(
            dimension_semantics=("parallel", "parallel", "parallel", "arbitrary"),
            vmem_limit_bytes=_LINEAR_VMEM_LIMIT,
        ),
    )(*args)


# ----------------------------------------------------------------------------
# Fused LayerNorm + adaLN modulation: (1 + scale) * LN(x) + shift
# ----------------------------------------------------------------------------
def _ln_mod_kernel(x_ref, sc_ref, sh_ref, o_ref):
    x = x_ref[...].astype(jnp.float32)
    mu = jnp.mean(x, axis=-1, keepdims=True)
    xc = x - mu
    var = jnp.mean(xc * xc, axis=-1, keepdims=True)
    xn = xc * jax.lax.rsqrt(var + 1e-6)
    o_ref[...] = ((1.0 + sc_ref[...]) * xn + sh_ref[...]).astype(o_ref.dtype)


def pallas_ln_mod(x, scale, shift, out_dtype=jnp.bfloat16):
    """x: (B, L, C); scale/shift: (B, 1, C) f32. LayerNorm eps=1e-6, no affine."""
    B, L, C = x.shape
    tl = _choose_tile(L, 512, 8)
    return pl.pallas_call(
        _ln_mod_kernel,
        out_shape=jax.ShapeDtypeStruct((B, L, C), out_dtype),
        grid=(B, L // tl),
        in_specs=[
            pl.BlockSpec((1, tl, C), lambda b, i: (b, i, 0)),
            pl.BlockSpec((1, 1, C), lambda b, i: (b, 0, 0)),
            pl.BlockSpec((1, 1, C), lambda b, i: (b, 0, 0)),
        ],
        out_specs=pl.BlockSpec((1, tl, C), lambda b, i: (b, i, 0)),
        compiler_params=pltpu.CompilerParams(
            dimension_semantics=("parallel", "parallel")
        ),
    )(x, scale, shift)


# ----------------------------------------------------------------------------
# Flash attention (online softmax); mask built in-kernel from the row mask via a
# small MXU matmul, and skipped for img x img blocks.
# ----------------------------------------------------------------------------
def _flash_kernel(q_ref, k_ref, v_ref, mqT_ref, mk_ref, o_ref,
                  m_sc, l_sc, acc_sc, *, txt_q_tiles, txt_k_tiles):
    qi = pl.program_id(2)
    ki = pl.program_id(3)

    @pl.when(ki == 0)
    def _():
        m_sc[...] = jnp.full(m_sc.shape, -1e30, jnp.float32)
        l_sc[...] = jnp.zeros(l_sc.shape, jnp.float32)
        acc_sc[...] = jnp.zeros(acc_sc.shape, jnp.float32)

    q = q_ref[0, 0]  # (tq, D)  bf16 (softmax scale pre-folded into q)
    k = k_ref[0, 0]  # (tkv, D) bf16
    v = v_ref[0, 0]  # (tkv, D) bf16

    s = jax.lax.dot_general(
        q, k, (((1,), (1,)), ((), ())), preferred_element_type=jnp.float32
    )

    def online_update(s_blk):
        m_prev = m_sc[...]
        m_new = jnp.maximum(m_prev, jnp.max(s_blk, axis=-1, keepdims=True))
        alpha = jnp.exp(m_prev - m_new)
        p = jnp.exp(s_blk - m_new)
        l_sc[...] = alpha * l_sc[...] + jnp.sum(p, axis=-1, keepdims=True)
        acc_sc[...] = alpha * acc_sc[...] + jnp.dot(
            p.astype(v.dtype), v, preferred_element_type=jnp.float32
        )
        m_sc[...] = m_new

    # Reference mask semantics: mask2d[i, j] = (sum_b row[b, i] * row[b, j]) > 0.
    # Only blocks touching the txt region can contain masked entries; img x img
    # blocks (the vast majority at real Flux sizes) skip the mask entirely.
    need_mask = jnp.logical_or(qi < txt_q_tiles, ki < txt_k_tiles)

    @pl.when(need_mask)
    def _():
        mm = jnp.dot(
            mqT_ref[...], mk_ref[...], preferred_element_type=jnp.float32
        )  # (tq, tkv) via MXU
        online_update(jnp.where(mm > 0.0, s, -1e30))

    @pl.when(jnp.logical_not(need_mask))
    def _():
        online_update(s)

    @pl.when(ki == pl.num_programs(3) - 1)
    def _():
        inv = pl.reciprocal(l_sc[...])  # exact: matches reference softmax normalization
        o_ref[...] = (acc_sc[...] * inv).reshape(o_ref.shape).astype(o_ref.dtype)


def pallas_flash_attention(q, k, v, rowmask, txt_len):
    """q,k,v: (B, H, L, D) bf16 (scale folded into q); rowmask: (B, L) f32.
    Returns (B, L, H*D) bf16."""
    B, H, L, D = q.shape
    tq = _choose_tile(L, 512, 128)
    tkv = _choose_tile(L, 512, 128)
    grid = (B, H, L // tq, L // tkv)

    # Pad the mask batch axis to a sublane multiple so the in-kernel mask outer
    # product is a tiny aligned MXU matmul (zero rows don't change the sum).
    Bp = max(8, -(-B // 8) * 8)
    mk = jnp.pad(rowmask, ((0, Bp - B), (0, 0)))  # (Bp, L)
    mqT = mk.T                                     # (L, Bp)

    kernel = functools.partial(
        _flash_kernel,
        txt_q_tiles=-(-txt_len // tq),
        txt_k_tiles=-(-txt_len // tkv),
    )

    in_specs = [
        pl.BlockSpec((1, 1, tq, D), lambda b, h, qi, ki: (b, h, qi, 0)),
        pl.BlockSpec((1, 1, tkv, D), lambda b, h, qi, ki: (b, h, ki, 0)),
        pl.BlockSpec((1, 1, tkv, D), lambda b, h, qi, ki: (b, h, ki, 0)),
        pl.BlockSpec((tq, Bp), lambda b, h, qi, ki: (qi, 0)),
        pl.BlockSpec((Bp, tkv), lambda b, h, qi, ki: (0, ki)),
    ]
    scratch = [
        pltpu.VMEM((tq, 1), jnp.float32),
        pltpu.VMEM((tq, 1), jnp.float32),
        pltpu.VMEM((tq, D), jnp.float32),
    ]
    cp = pltpu.CompilerParams(
        dimension_semantics=("parallel", "parallel", "parallel", "arbitrary")
    )

    if D % 128 == 0 or H == 1:
        # Lane-dense output: write directly into the (B, L, H*D) layout, head h at column h*D.
        return pl.pallas_call(
            kernel,
            out_shape=jax.ShapeDtypeStruct((B, L, H * D), jnp.bfloat16),
            grid=grid,
            in_specs=in_specs,
            out_specs=pl.BlockSpec((1, tq, D), lambda b, h, qi, ki: (b, qi, h)),
            scratch_shapes=scratch,
            compiler_params=cp,
        )(q, k, v, mqT, mk)

    # Fallback for small head dims (toy config): per-head layout + transpose outside.
    out = pl.pallas_call(
        kernel,
        out_shape=jax.ShapeDtypeStruct((B, H, L, D), jnp.bfloat16),
        grid=grid,
        in_specs=in_specs,
        out_specs=pl.BlockSpec((1, 1, tq, D), lambda b, h, qi, ki: (b, h, qi, 0)),
        scratch_shapes=scratch,
        compiler_params=cp,
    )(q, k, v, mqT, mk)
    return jnp.transpose(out, (0, 2, 1, 3)).reshape(B, L, H * D)


# ----------------------------------------------------------------------------
# Model pieces (JAX glue calling the Pallas kernels)
# ----------------------------------------------------------------------------
def timestep_embedding(t, dim, max_period=10000, time_factor=1000.0):
    t = time_factor * t
    half = dim // 2
    freqs = jnp.exp(
        -jnp.log(jnp.float32(max_period)) * jnp.arange(half, dtype=jnp.float32) / half
    )
    args = t[:, None].astype(jnp.float32) * freqs[None]
    emb = jnp.concatenate([jnp.cos(args), jnp.sin(args)], axis=-1)
    if dim % 2:
        emb = jnp.concatenate([emb, jnp.zeros_like(emb[:, :1])], axis=-1)
    return emb


def rope(pos, dim, theta):
    scale = jnp.arange(0, dim, 2, dtype=jnp.float32) / dim
    omega = 1.0 / (theta ** scale)
    out = pos[..., None].astype(jnp.float32) * omega                 # (B, L, dim/2)
    out = jnp.stack(
        [jnp.cos(out), -jnp.sin(out), jnp.sin(out), jnp.cos(out)], axis=-1
    )
    return out.reshape(out.shape[:-1] + (2, 2))                      # (B, L, dim/2, 2, 2)


def embed_nd(ids, axes_dim, theta):
    n_axes = ids.shape[-1]
    emb = jnp.concatenate(
        [rope(ids[..., i], axes_dim[i], theta) for i in range(n_axes)], axis=-3
    )
    return emb[:, None]                                              # (B, 1, L, pe/2, 2, 2)


def apply_rope(xq, xk, freqs_cis):
    B, H, L, D = xq.shape
    xq_ = xq.astype(jnp.float32).reshape(B, H, L, -1, 1, 2)
    xk_ = xk.astype(jnp.float32).reshape(B, H, L, -1, 1, 2)
    xq_out = freqs_cis[..., 0] * xq_[..., 0] + freqs_cis[..., 1] * xq_[..., 1]
    xk_out = freqs_cis[..., 0] * xk_[..., 0] + freqs_cis[..., 1] * xk_[..., 1]
    return xq_out.reshape(B, H, L, D), xk_out.reshape(B, H, L, D)


def attention(q, k, v, pe, rowmask, txt_len):
    # softmax scale (D**-0.5) is already folded into q via the RMS-norm scale
    q, k = apply_rope(q, k, pe)
    return pallas_flash_attention(
        q.astype(jnp.bfloat16), k.astype(jnp.bfloat16), v.astype(jnp.bfloat16),
        rowmask, txt_len,
    )  # (B, L, H*D) bf16


def rms_norm(x, scale):
    x32 = x.astype(jnp.float32)
    rrms = jax.lax.rsqrt(jnp.mean(x32 * x32, axis=-1, keepdims=True) + 1e-6)
    return x32 * rrms * scale


def mlp_embedder(x, p):
    return xla_linear(jax.nn.silu(xla_linear(x, p["in"])), p["out"])


def modulation(vec, p, double):
    out = xla_linear(jax.nn.silu(vec), p)[:, None, :]
    chunks = jnp.split(out, 6 if double else 3, axis=-1)
    m1 = (chunks[0], chunks[1], chunks[2])                 # shift, scale, gate
    m2 = (chunks[3], chunks[4], chunks[5]) if double else None
    return m1, m2


def split_qkv(qkv, num_heads):
    # rearrange "B L (K H D) -> K B H L D", K=3
    B, L, C = qkv.shape
    D = C // (3 * num_heads)
    qkv = qkv.reshape(B, L, 3, num_heads, D)
    qkv = jnp.transpose(qkv, (2, 0, 3, 1, 4))
    return qkv[0], qkv[1], qkv[2]


def double_block(img, txt, pe, vec, rowmask, p, num_heads):
    txt_len = txt.shape[1]
    (i_sh1, i_sc1, i_g1), (i_sh2, i_sc2, i_g2) = modulation(vec, p["img_mod"], True)
    (t_sh1, t_sc1, t_g1), (t_sh2, t_sc2, t_g2) = modulation(vec, p["txt_mod"], True)

    img_modulated = pallas_ln_mod(img, i_sc1, i_sh1)
    img_qkv = linear(img_modulated, p["img_qkv"])
    img_q, img_k, img_v = split_qkv(img_qkv, num_heads)
    sm = float(img_q.shape[-1]) ** -0.5
    img_q = rms_norm(img_q, p["img_q_scale"] * sm)   # softmax scale folded into q
    img_k = rms_norm(img_k, p["img_k_scale"])

    txt_modulated = pallas_ln_mod(txt, t_sc1, t_sh1)
    txt_qkv = linear(txt_modulated, p["txt_qkv"])
    txt_q, txt_k, txt_v = split_qkv(txt_qkv, num_heads)
    txt_q = rms_norm(txt_q, p["txt_q_scale"] * sm)
    txt_k = rms_norm(txt_k, p["txt_k_scale"])

    q = jnp.concatenate([txt_q, img_q], axis=2)
    k = jnp.concatenate([txt_k, img_k], axis=2)
    v = jnp.concatenate([txt_v, img_v], axis=2)
    attn = attention(q, k, v, pe, rowmask, txt_len)
    txt_attn, img_attn = attn[:, :txt_len], attn[:, txt_len:]

    # residual + gate fused into the projection / MLP-out epilogues
    img = pallas_linear_resgate(img_attn, p["img_proj"]["wt"], p["img_proj"]["b"],
                                residual=img, gate=i_g1)
    img_mlp_in = pallas_ln_mod(img, i_sc2, i_sh2)
    img_mlp_h = linear(img_mlp_in, p["img_mlp0"], activation="gelu")
    img = pallas_linear_resgate(img_mlp_h, p["img_mlp2"]["wt"], p["img_mlp2"]["b"],
                                residual=img, gate=i_g2)

    txt = pallas_linear_resgate(txt_attn, p["txt_proj"]["wt"], p["txt_proj"]["b"],
                                residual=txt, gate=t_g1)
    txt_mlp_in = pallas_ln_mod(txt, t_sc2, t_sh2)
    txt_mlp_h = linear(txt_mlp_in, p["txt_mlp0"], activation="gelu")
    txt = pallas_linear_resgate(txt_mlp_h, p["txt_mlp2"]["wt"], p["txt_mlp2"]["b"],
                                residual=txt, gate=t_g2)
    return img, txt


def single_block(x, pe, vec, rowmask, txt_len, p, num_heads):
    (sh, sc, g), _ = modulation(vec, p["mod"], False)
    x_mod = pallas_ln_mod(x, sc, sh)
    # linear1 split by output columns (qkv | mlp) -> GELU fuses into the mlp half
    qkv = linear(x_mod, p["linear1_qkv"])
    mlp_act = linear(x_mod, p["linear1_mlp"], activation="gelu")
    q, k, v = split_qkv(qkv, num_heads)
    sm = float(q.shape[-1]) ** -0.5
    q = rms_norm(q, p["q_scale"] * sm)
    k = rms_norm(k, p["k_scale"])
    attn = attention(q, k, v, pe, rowmask, txt_len)
    # linear2 split by input rows (attn | mlp): the (attn ++ gelu(mlp)) concat never
    # materializes, and gate + residual fuse into the second GEMM's epilogue.
    part = linear(attn, p["linear2_attn"], out_dtype=jnp.float32)
    return pallas_linear_resgate(
        mlp_act, p["linear2_mlp"]["wt"], p["linear2_mlp"]["b"],
        residual=x, gate=g, extra=part,
    )


def last_layer(x, vec, p):
    mod = xla_linear(jax.nn.silu(vec), p["adaLN"])
    shift, scale = jnp.split(mod, 2, axis=1)
    x = pallas_ln_mod(x, scale[:, None, :], shift[:, None, :])
    return linear(x, p["linear"], out_dtype=jnp.float32)


def modify_mask_to_attend_padding(mask, max_seq_length, num_extra_padding=8):
    seq_length = jnp.sum(mask, axis=-1).astype(jnp.int32)            # (B,)
    pos = jnp.arange(max_seq_length)[None, :]
    unmask = (pos >= seq_length[:, None]) & (
        pos < seq_length[:, None] + num_extra_padding
    )
    return jnp.where(unmask, jnp.ones_like(mask), mask)


def flux_forward(params, cfg, img, img_ids, txt, txt_ids, txt_mask, timesteps, y,
                 guidance=None, attn_padding=0):
    img = linear(img, params["img_in"], out_dtype=jnp.float32)
    vec = mlp_embedder(timestep_embedding(timesteps, 256), params["time_in"])
    if cfg["guidance_embed"]:
        vec = vec + mlp_embedder(timestep_embedding(guidance, 256), params["guidance_in"])
    vec = vec + mlp_embedder(y, params["vector_in"])
    txt = linear(txt, params["txt_in"], out_dtype=jnp.float32)

    ids = jnp.concatenate([txt_ids, img_ids], axis=1)
    pe = embed_nd(ids, cfg["axes_dim"], cfg["theta"])

    txt_len = txt.shape[1]
    txt_mask_w_padding = modify_mask_to_attend_padding(txt_mask, txt_len, attn_padding)
    # Reference builds mask.float().T @ mask.float() -> shared (L, L) mask; we keep only the
    # (B, L) row mask and reproduce that exact outer-product semantics inside the attn kernel.
    rowmask = jnp.concatenate(
        [txt_mask_w_padding.astype(jnp.float32),
         jnp.ones((img.shape[0], img.shape[1]), jnp.float32)], axis=1
    )

    for bp in params["double_blocks"]:
        img, txt = double_block(img, txt, pe, vec, rowmask, bp, cfg["num_heads"])

    x = jnp.concatenate([txt, img], axis=1)
    for bp in params["single_blocks"]:
        x = single_block(x, pe, vec, rowmask, txt_len, bp, cfg["num_heads"])
    img = x[:, txt_len:, ...]
    return last_layer(img, vec, params["final"])


# ----------------------------------------------------------------------------
# Deterministic parameter init (shapes from Flux.__init__); weights stored
# pre-transposed (K, N) and pre-cast to bf16 so no per-call transpose/cast.
# ----------------------------------------------------------------------------
class _KeyGen:
    def __init__(self, key):
        self.key = key
        self.i = 0

    def __call__(self):
        self.i += 1
        return jax.random.fold_in(self.key, self.i)


def init_params(key, cfg):
    kg = _KeyGen(key)
    H = cfg["hidden_size"]
    mlp_h = cfg["mlp_hidden"]
    hd = H // cfg["num_heads"]

    def lin(out_dim, in_dim):
        w = 0.02 * jax.random.normal(kg(), (in_dim, out_dim), jnp.float32)
        b = 0.01 * jax.random.normal(kg(), (out_dim,), jnp.float32)
        return {"wt": w.astype(jnp.bfloat16), "b": b}

    p = {
        "img_in": lin(H, cfg["in_channels"]),
        "time_in": {"in": lin(H, 256), "out": lin(H, H)},
        "vector_in": {"in": lin(H, cfg["vec_in_dim"]), "out": lin(H, H)},
        "txt_in": lin(H, cfg["context_in_dim"]),
        "double_blocks": [],
        "single_blocks": [],
        "final": {"adaLN": lin(2 * H, H), "linear": lin(cfg["out_channels"], H)},
    }
    if cfg["guidance_embed"]:
        p["guidance_in"] = {"in": lin(H, 256), "out": lin(H, H)}

    for _ in range(cfg["depth"]):
        p["double_blocks"].append({
            "img_mod": lin(6 * H, H), "txt_mod": lin(6 * H, H),
            "img_qkv": lin(3 * H, H), "txt_qkv": lin(3 * H, H),
            "img_q_scale": jnp.ones((hd,), jnp.float32),
            "img_k_scale": jnp.ones((hd,), jnp.float32),
            "txt_q_scale": jnp.ones((hd,), jnp.float32),
            "txt_k_scale": jnp.ones((hd,), jnp.float32),
            "img_proj": lin(H, H), "txt_proj": lin(H, H),
            "img_mlp0": lin(mlp_h, H), "img_mlp2": lin(H, mlp_h),
            "txt_mlp0": lin(mlp_h, H), "txt_mlp2": lin(H, mlp_h),
        })
    for _ in range(cfg["depth_single_blocks"]):
        # single Linear(H, 3H+mlp_h) / Linear(H+mlp_h, H) from the reference, stored split
        w1 = 0.02 * jax.random.normal(kg(), (H, 3 * H + mlp_h), jnp.float32)
        b1 = 0.01 * jax.random.normal(kg(), (3 * H + mlp_h,), jnp.float32)
        w2 = 0.02 * jax.random.normal(kg(), (H + mlp_h, H), jnp.float32)
        b2 = 0.01 * jax.random.normal(kg(), (H,), jnp.float32)
        p["single_blocks"].append({
            "mod": lin(3 * H, H),
            "linear1_qkv": {"wt": w1[:, : 3 * H].astype(jnp.bfloat16), "b": b1[: 3 * H]},
            "linear1_mlp": {"wt": w1[:, 3 * H:].astype(jnp.bfloat16), "b": b1[3 * H:]},
            "linear2_attn": {"wt": w2[:H].astype(jnp.bfloat16), "b": b2},
            "linear2_mlp": {"wt": w2[H:].astype(jnp.bfloat16),
                            "b": jnp.zeros((H,), jnp.float32)},
            "q_scale": jnp.ones((hd,), jnp.float32),
            "k_scale": jnp.ones((hd,), jnp.float32),
        })
    return p


# ----------------------------------------------------------------------------
# Main
# ----------------------------------------------------------------------------
if __name__ == "__main__":
    CFG = dict(
        in_channels=16,
        out_channels=16,
        vec_in_dim=32,
        context_in_dim=48,
        hidden_size=64,
        mlp_ratio=4.0,
        mlp_hidden=256,
        num_heads=2,
        depth=1,
        depth_single_blocks=1,
        axes_dim=[16, 8, 8],   # sums to pe_dim = hidden_size // num_heads = 32
        theta=10000,
        qkv_bias=True,
        guidance_embed=False,
    )

    B, IMG_LEN, TXT_LEN = 2, 16, 8

    root = jax.random.PRNGKey(0)
    params = init_params(jax.random.fold_in(root, 1), CFG)

    k = jax.random.fold_in(root, 2)
    k_img, k_txt, k_t, k_y = jax.random.split(k, 4)

    img = jax.random.normal(k_img, (B, IMG_LEN, CFG["in_channels"]), jnp.float32)
    txt = jax.random.normal(k_txt, (B, TXT_LEN, CFG["context_in_dim"]), jnp.float32)
    timesteps = jax.random.uniform(k_t, (B,), jnp.float32)
    y = jax.random.normal(k_y, (B, CFG["vec_in_dim"]), jnp.float32)

    # img_ids: (B, L_img, 3) positional ids for a 4x4 latent grid
    hh, ww = jnp.meshgrid(jnp.arange(4), jnp.arange(4), indexing="ij")
    img_ids = jnp.stack(
        [jnp.zeros_like(hh), hh, ww], axis=-1
    ).reshape(1, IMG_LEN, 3).astype(jnp.float32)
    img_ids = jnp.tile(img_ids, (B, 1, 1))
    txt_ids = jnp.zeros((B, TXT_LEN, 3), jnp.float32)

    # txt_mask: contiguous valid prefixes of length 5 and 8
    txt_mask = (jnp.arange(TXT_LEN)[None, :] < jnp.array([[5], [8]])).astype(jnp.float32)

    fwd = jax.jit(
        lambda img, img_ids, txt, txt_ids, txt_mask, timesteps, y: flux_forward(
            params, CFG, img, img_ids, txt, txt_ids, txt_mask, timesteps, y,
            guidance=None, attn_padding=2,
        )
    )

    out = fwd(img, img_ids, txt, txt_ids, txt_mask, timesteps, y)
    out = jax.block_until_ready(out)

    assert out.shape == (B, IMG_LEN, CFG["out_channels"]), out.shape
    assert bool(jnp.all(jnp.isfinite(out)))
    print("KERNEL_OK")
</pallas_src>

<mosaic_0001>
module attributes {stable_mosaic.version = 11 : i64} {
  func.func @_linear_kernel(%arg0: i32, %arg1: i32, %arg2: i32, %arg3: memref<32x64xbf16, #tpu.memory_space<vmem>>, %arg4: memref<64x192xbf16, #tpu.memory_space<vmem>>, %arg5: memref<1x192xf32, #tpu.memory_space<vmem>>, %arg6: memref<32x192xbf16, #tpu.memory_space<vmem>>, %arg7: memref<32x192xf32, #tpu.memory_space<vmem>>) attributes {dimension_semantics = [#tpu.dimension_semantics<parallel>, #tpu.dimension_semantics<parallel>, #tpu.dimension_semantics<arbitrary>], iteration_bounds = array<i64: 1, 1, 1>, scalar_prefetch = 0 : i64, scratch_operands = 1 : i64, tpu.core_type = #tpu.core_type<tc>, window_params = [{transform_indices = @transform_0, window_bounds = array<i64: 32, 64>}, {transform_indices = @transform_1, window_bounds = array<i64: 64, 192>}, {transform_indices = @transform_2, window_bounds = array<i64: 1, 192>}, {transform_indices = @transform_3, window_bounds = array<i64: 32, 192>}]} {
    %c0_i32 = arith.constant 0 : i32
    %0 = arith.cmpi eq, %arg2, %c0_i32 : i32
    %1 = arith.extui %0 : i1 to i32
    %c0_i32_0 = arith.constant 0 : i32
    %2 = arith.cmpi ne, %1, %c0_i32_0 : i32
    scf.if %2 {
      %cst_10 = arith.constant 0.000000e+00 : f32
      %12 = vector.broadcast %cst_10 : f32 to vector<32x192xf32>
      %c0_11 = arith.constant 0 : index
      %c0_12 = arith.constant 0 : index
      %13 = vector.load %arg7[%c0_11, %c0_12] : memref<32x192xf32, #tpu.memory_space<vmem>>, vector<32x192xf32>
      tpu.vector_store %arg7[%c0_11, %c0_12], %12 {strides = array<i32>} : memref<32x192xf32, #tpu.memory_space<vmem>>, vector<32x192xf32>,
    } else {
    }
    %c0 = arith.constant 0 : index
    %c0_1 = arith.constant 0 : index
    %3 = vector.load %arg7[%c0, %c0_1] : memref<32x192xf32, #tpu.memory_space<vmem>>, vector<32x192xf32>
    %c0_2 = arith.constant 0 : index
    %c0_3 = arith.constant 0 : index
    %4 = vector.load %arg3[%c0_2, %c0_3] : memref<32x64xbf16, #tpu.memory_space<vmem>>, vector<32x64xbf16>
    %c0_4 = arith.constant 0 : index
    %c0_5 = arith.constant 0 : index
    %5 = vector.load %arg4[%c0_4, %c0_5] : memref<64x192xbf16, #tpu.memory_space<vmem>>, vector<64x192xbf16>
    %cst = arith.constant dense<0.000000e+00> : vector<32x192xf32>
    %6 = tpu.matmul %4, %5, %cst {dimension_numbers = #tpu.dot_dimension_numbers<[1], [0], [0], [1], [0, 0, 1, 1], [], []>} : vector<32x64xbf16>, vector<64x192xbf16>, vector<32x192xf32> -> vector<32x192xf32>
    %7 = arith.addf %3, %6 : vector<32x192xf32>
    %c0_6 = arith.constant 0 : index
    %c0_7 = arith.constant 0 : index
    %8 = vector.load %arg7[%c0_6, %c0_7] : memref<32x192xf32, #tpu.memory_space<vmem>>, vector<32x192xf32>
    tpu.vector_store %arg7[%c0_6, %c0_7], %7 {strides = array<i32>} : memref<32x192xf32, #tpu.memory_space<vmem>>, vector<32x192xf32>,
    %c0_i32_8 = arith.constant 0 : i32
    %9 = arith.cmpi eq, %arg2, %c0_i32_8 : i32
    %10 = arith.extui %9 : i1 to i32
    %c0_i32_9 = arith.constant 0 : i32
    %11 = arith.cmpi ne, %10, %c0_i32_9 : i32
    scf.if %11 {
      %c0_10 = arith.constant 0 : index
      %c0_11 = arith.constant 0 : index
      %12 = vector.load %arg7[%c0_10, %c0_11] : memref<32x192xf32, #tpu.memory_space<vmem>>, vector<32x192xf32>
      %c0_12 = arith.constant 0 : index
      %c0_13 = arith.constant 0 : index
      %13 = vector.load %arg5[%c0_12, %c0_13] : memref<1x192xf32, #tpu.memory_space<vmem>>, vector<1x192xf32>
      %14 = vector.broadcast %13 : vector<1x192xf32> to vector<32x192xf32>
      %15 = arith.addf %12, %14 : vector<32x192xf32>
      %16 = arith.truncf %15 : vector<32x192xf32> to vector<32x192xbf16>
      %c0_14 = arith.constant 0 : index
      %c0_15 = arith.constant 0 : index
      %17 = vector.load %arg6[%c0_14, %c0_15] : memref<32x192xbf16, #tpu.memory_space<vmem>>, vector<32x192xbf16>
      tpu.vector_store %arg6[%c0_14, %c0_15], %16 {strides = array<i32>} : memref<32x192xbf16, #tpu.memory_space<vmem>>, vector<32x192xbf16>,
    } else {
    }
    return
  }
  func.func @transform_0(%arg0: i32, %arg1: i32, %arg2: i32) -> (i32, i32) {
    %c0_i32 = arith.constant 0 : i32
    return %arg0, %arg2 : i32, i32
  }
  func.func @transform_1(%arg0: i32, %arg1: i32, %arg2: i32) -> (i32, i32) {
    %c0_i32 = arith.constant 0 : i32
    return %arg2, %arg1 : i32, i32
  }
  func.func @transform_2(%arg0: i32, %arg1: i32, %arg2: i32) -> (i32, i32) {
    %c0_i32 = arith.constant 0 : i32
    %c0_i32_0 = arith.constant 0 : i32
    return %c0_i32, %arg1 : i32, i32
  }
  func.func @transform_3(%arg0: i32, %arg1: i32, %arg2: i32) -> (i32, i32) {
    %c0_i32 = arith.constant 0 : i32
    return %arg0, %arg1 : i32, i32
  }
}

module attributes {stable_mosaic.version = 11 : i64} {
  func.func @_ln_mod_kernel(%arg0: i32, %arg1: i32, %arg2: memref<1x16x64xf32, #tpu.memory_space<vmem>>, %arg3: memref<1x1x64xf32, #tpu.memory_space<vmem>>, %arg4: memref<1x1x64xf32, #tpu.memory_space<vmem>>, %arg5: memref<1x16x64xbf16, #tpu.memory_space<vmem>>) attributes {dimension_semantics = [#tpu.dimension_semantics<parallel>, #tpu.dimension_semantics<parallel>], iteration_bounds = array<i64: 2, 1>, scalar_prefetch = 0 : i64, scratch_operands = 0 : i64, tpu.core_type = #tpu.core_type<tc>, window_params = [{transform_indices = @transform_0, window_bounds = array<i64: 1, 16, 64>}, {transform_indices = @transform_1, window_bounds = array<i64: 1, 1, 64>}, {transform_indices = @transform_2, window_bounds = array<i64: 1, 1, 64>}, {transform_indices = @transform_3, window_bounds = array<i64: 1, 16, 64>}]} {
    %c0 = arith.constant 0 : index
    %c0_0 = arith.constant 0 : index
    %c0_1 = arith.constant 0 : index
    %0 = vector.load %arg2[%c0, %c0_0, %c0_1] : memref<1x16x64xf32, #tpu.memory_space<vmem>>, vector<1x16x64xf32>
    %cst = arith.constant dense<0.000000e+00> : vector<1x16xf32>
    %1 = vector.multi_reduction <add>, %0, %cst [2] : vector<1x16x64xf32> to vector<1x16xf32>
    %2 = vector.shape_cast %1 : vector<1x16xf32> to vector<1x16x1xf32>
    %cst_2 = arith.constant 6.400000e+01 : f32
    %3 = vector.broadcast %cst_2 : f32 to vector<1x16x1xf32>
    %4 = arith.divf %2, %3 : vector<1x16x1xf32>
    %5 = vector.broadcast %4 : vector<1x16x1xf32> to vector<1x16x64xf32>
    %6 = arith.subf %0, %5 : vector<1x16x64xf32>
    %7 = arith.mulf %6, %6 : vector<1x16x64xf32>
    %cst_3 = arith.constant dense<0.000000e+00> : vector<1x16xf32>
    %8 = vector.multi_reduction <add>, %7, %cst_3 [2] : vector<1x16x64xf32> to vector<1x16xf32>
    %9 = vector.shape_cast %8 : vector<1x16xf32> to vector<1x16x1xf32>
    %cst_4 = arith.constant 6.400000e+01 : f32
    %10 = vector.broadcast %cst_4 : f32 to vector<1x16x1xf32>
    %11 = arith.divf %9, %10 : vector<1x16x1xf32>
    %cst_5 = arith.constant 9.99999997E-7 : f32
    %12 = vector.broadcast %cst_5 : f32 to vector<1x16x1xf32>
    %13 = arith.addf %11, %12 : vector<1x16x1xf32>
    %14 = math.rsqrt %13 : vector<1x16x1xf32>
    %15 = vector.broadcast %14 : vector<1x16x1xf32> to vector<1x16x64xf32>
    %16 = arith.mulf %6, %15 : vector<1x16x64xf32>
    %c0_6 = arith.constant 0 : index
    %c0_7 = arith.constant 0 : index
    %c0_8 = arith.constant 0 : index
    %17 = vector.load %arg3[%c0_6, %c0_7, %c0_8] : memref<1x1x64xf32, #tpu.memory_space<vmem>>, vector<1x1x64xf32>
    %cst_9 = arith.constant 1.000000e+00 : f32
    %18 = vector.broadcast %cst_9 : f32 to vector<1x1x64xf32>
    %19 = arith.addf %18, %17 : vector<1x1x64xf32>
    %20 = vector.broadcast %19 : vector<1x1x64xf32> to vector<1x16x64xf32>
    %21 = arith.mulf %20, %16 : vector<1x16x64xf32>
    %c0_10 = arith.constant 0 : index
    %c0_11 = arith.constant 0 : index
    %c0_12 = arith.constant 0 : index
    %22 = vector.load %arg4[%c0_10, %c0_11, %c0_12] : memref<1x1x64xf32, #tpu.memory_space<vmem>>, vector<1x1x64xf32>
    %23 = vector.broadcast %22 : vector<1x1x64xf32> to vector<1x16x64xf32>
    %24 = arith.addf %21, %23 : vector<1x16x64xf32>
    %25 = arith.truncf %24 : vector<1x16x64xf32> to vector<1x16x64xbf16>
    %c0_13 = arith.constant 0 : index
    %c0_14 = arith.constant 0 : index
    %c0_15 = arith.constant 0 : index
    %26 = vector.load %arg5[%c0_13, %c0_14, %c0_15] : memref<1x16x64xbf16, #tpu.memory_space<vmem>>, vector<1x16x64xbf16>
    tpu.vector_store %arg5[%c0_13, %c0_14, %c0_15], %25 {strides = array<i32>} : memref<1x16x64xbf16, #tpu.memory_space<vmem>>, vector<1x16x64xbf16>,
    return
  }
  func.func @transform_0(%arg0: i32, %arg1: i32) -> (i32, i32, i32) {
    %c0_i32 = arith.constant 0 : i32
    %c0_i32_0 = arith.constant 0 : i32
    return %arg0, %arg1, %c0_i32 : i32, i32, i32
  }
  func.func @transform_1(%arg0: i32, %arg1: i32) -> (i32, i32, i32) {
    %c0_i32 = arith.constant 0 : i32
    %c0_i32_0 = arith.constant 0 : i32
    %c0_i32_1 = arith.constant 0 : i32
    return %arg0, %c0_i32, %c0_i32_0 : i32, i32, i32
  }
  func.func @transform_2(%arg0: i32, %arg1: i32) -> (i32, i32, i32) {
    %c0_i32 = arith.constant 0 : i32
    %c0_i32_0 = arith.constant 0 : i32
    %c0_i32_1 = arith.constant 0 : i32
    return %arg0, %c0_i32, %c0_i32_0 : i32, i32, i32
  }
  func.func @transform_3(%arg0: i32, %arg1: i32) -> (i32, i32, i32) {
    %c0_i32 = arith.constant 0 : i32
    %c0_i32_0 = arith.constant 0 : i32
    return %arg0, %arg1, %c0_i32 : i32, i32, i32
  }
}

module attributes {stable_mosaic.version = 11 : i64} {
  func.func @_linear_kernel(%arg0: i32, %arg1: i32, %arg2: i32, %arg3: memref<32x16xbf16, #tpu.memory_space<vmem>>, %arg4: memref<16x64xbf16, #tpu.memory_space<vmem>>, %arg5: memref<1x64xf32, #tpu.memory_space<vmem>>, %arg6: memref<32x64xf32, #tpu.memory_space<vmem>>, %arg7: memref<32x64xf32, #tpu.memory_space<vmem>>) attributes {dimension_semantics = [#tpu.dimension_semantics<parallel>, #tpu.dimension_semantics<parallel>, #tpu.dimension_semantics<arbitrary>], iteration_bounds = array<i64: 1, 1, 1>, scalar_prefetch = 0 : i64, scratch_operands = 1 : i64, tpu.core_type = #tpu.core_type<tc>, window_params = [{transform_indices = @transform_0, window_bounds = array<i64: 32, 16>}, {transform_indices = @transform_1, window_bounds = array<i64: 16, 64>}, {transform_indices = @transform_2, window_bounds = array<i64: 1, 64>}, {transform_indices = @transform_3, window_bounds = array<i64: 32, 64>}]} {
    %c0_i32 = arith.constant 0 : i32
    %0 = arith.cmpi eq, %arg2, %c0_i32 : i32
    %1 = arith.extui %0 : i1 to i32
    %c0_i32_0 = arith.constant 0 : i32
    %2 = arith.cmpi ne, %1, %c0_i32_0 : i32
    scf.if %2 {
      %cst_10 = arith.constant 0.000000e+00 : f32
      %12 = vector.broadcast %cst_10 : f32 to vector<32x64xf32>
      %c0_11 = arith.constant 0 : index
      %c0_12 = arith.constant 0 : index
      %13 = vector.load %arg7[%c0_11, %c0_12] : memref<32x64xf32, #tpu.memory_space<vmem>>, vector<32x64xf32>
      tpu.vector_store %arg7[%c0_11, %c0_12], %12 {strides = array<i32>} : memref<32x64xf32, #tpu.memory_space<vmem>>, vector<32x64xf32>,
    } else {
    }
    %c0 = arith.constant 0 : index
    %c0_1 = arith.constant 0 : index
    %3 = vector.load %arg7[%c0, %c0_1] : memref<32x64xf32, #tpu.memory_space<vmem>>, vector<32x64xf32>
    %c0_2 = arith.constant 0 : index
    %c0_3 = arith.constant 0 : index
    %4 = vector.load %arg3[%c0_2, %c0_3] : memref<32x16xbf16, #tpu.memory_space<vmem>>, vector<32x16xbf16>
    %c0_4 = arith.constant 0 : index
    %c0_5 = arith.constant 0 : index
    %5 = vector.load %arg4[%c0_4, %c0_5] : memref<16x64xbf16, #tpu.memory_space<vmem>>, vector<16x64xbf16>
    %cst = arith.constant dense<0.000000e+00> : vector<32x64xf32>
    %6 = tpu.matmul %4, %5, %cst {dimension_numbers = #tpu.dot_dimension_numbers<[1], [0], [0], [1], [0, 0, 1, 1], [], []>} : vector<32x16xbf16>, vector<16x64xbf16>, vector<32x64xf32> -> vector<32x64xf32>
    %7 = arith.addf %3, %6 : vector<32x64xf32>
    %c0_6 = arith.constant 0 : index
    %c0_7 = arith.constant 0 : index
    %8 = vector.load %arg7[%c0_6, %c0_7] : memref<32x64xf32, #tpu.memory_space<vmem>>, vector<32x64xf32>
    tpu.vector_store %arg7[%c0_6, %c0_7], %7 {strides = array<i32>} : memref<32x64xf32, #tpu.memory_space<vmem>>, vector<32x64xf32>,
    %c0_i32_8 = arith.constant 0 : i32
    %9 = arith.cmpi eq, %arg2, %c0_i32_8 : i32
    %10 = arith.extui %9 : i1 to i32
    %c0_i32_9 = arith.constant 0 : i32
    %11 = arith.cmpi ne, %10, %c0_i32_9 : i32
    scf.if %11 {
      %c0_10 = arith.constant 0 : index
      %c0_11 = arith.constant 0 : index
      %12 = vector.load %arg7[%c0_10, %c0_11] : memref<32x64xf32, #tpu.memory_space<vmem>>, vector<32x64xf32>
      %c0_12 = arith.constant 0 : index
      %c0_13 = arith.constant 0 : index
      %13 = vector.load %arg5[%c0_12, %c0_13] : memref<1x64xf32, #tpu.memory_space<vmem>>, vector<1x64xf32>
      %14 = vector.broadcast %13 : vector<1x64xf32> to vector<32x64xf32>
      %15 = arith.addf %12, %14 : vector<32x64xf32>
      %c0_14 = arith.constant 0 : index
      %c0_15 = arith.constant 0 : index
      %16 = vector.load %arg6[%c0_14, %c0_15] : memref<32x64xf32, #tpu.memory_space<vmem>>, vector<32x64xf32>
      tpu.vector_store %arg6[%c0_14, %c0_15], %15 {strides = array<i32>} : memref<32x64xf32, #tpu.memory_space<vmem>>, vector<32x64xf32>,
    } else {
    }
    return
  }
  func.func @transform_0(%arg0: i32, %arg1: i32, %arg2: i32) -> (i32, i32) {
    %c0_i32 = arith.constant 0 : i32
    return %arg0, %arg2 : i32, i32
  }
  func.func @transform_1(%arg0: i32, %arg1: i32, %arg2: i32) -> (i32, i32) {
    %c0_i32 = arith.constant 0 : i32
    return %arg2, %arg1 : i32, i32
  }
  func.func @transform_2(%arg0: i32, %arg1: i32, %arg2: i32) -> (i32, i32) {
    %c0_i32 = arith.constant 0 : i32
    %c0_i32_0 = arith.constant 0 : i32
    return %c0_i32, %arg1 : i32, i32
  }
  func.func @transform_3(%arg0: i32, %arg1: i32, %arg2: i32) -> (i32, i32) {
    %c0_i32 = arith.constant 0 : i32
    return %arg0, %arg1 : i32, i32
  }
}

module attributes {stable_mosaic.version = 11 : i64} {
  func.func @_linear_kernel(%arg0: i32, %arg1: i32, %arg2: i32, %arg3: memref<16x64xbf16, #tpu.memory_space<vmem>>, %arg4: memref<64x192xbf16, #tpu.memory_space<vmem>>, %arg5: memref<1x192xf32, #tpu.memory_space<vmem>>, %arg6: memref<16x192xbf16, #tpu.memory_space<vmem>>, %arg7: memref<16x192xf32, #tpu.memory_space<vmem>>) attributes {dimension_semantics = [#tpu.dimension_semantics<parallel>, #tpu.dimension_semantics<parallel>, #tpu.dimension_semantics<arbitrary>], iteration_bounds = array<i64: 1, 1, 1>, scalar_prefetch = 0 : i64, scratch_operands = 1 : i64, tpu.core_type = #tpu.core_type<tc>, window_params = [{transform_indices = @transform_0, window_bounds = array<i64: 16, 64>}, {transform_indices = @transform_1, window_bounds = array<i64: 64, 192>}, {transform_indices = @transform_2, window_bounds = array<i64: 1, 192>}, {transform_indices = @transform_3, window_bounds = array<i64: 16, 192>}]} {
    %c0_i32 = arith.constant 0 : i32
    %0 = arith.cmpi eq, %arg2, %c0_i32 : i32
    %1 = arith.extui %0 : i1 to i32
    %c0_i32_0 = arith.constant 0 : i32
    %2 = arith.cmpi ne, %1, %c0_i32_0 : i32
    scf.if %2 {
      %cst_10 = arith.constant 0.000000e+00 : f32
      %12 = vector.broadcast %cst_10 : f32 to vector<16x192xf32>
      %c0_11 = arith.constant 0 : index
      %c0_12 = arith.constant 0 : index
      %13 = vector.load %arg7[%c0_11, %c0_12] : memref<16x192xf32, #tpu.memory_space<vmem>>, vector<16x192xf32>
      tpu.vector_store %arg7[%c0_11, %c0_12], %12 {strides = array<i32>} : memref<16x192xf32, #tpu.memory_space<vmem>>, vector<16x192xf32>,
    } else {
    }
    %c0 = arith.constant 0 : index
    %c0_1 = arith.constant 0 : index
    %3 = vector.load %arg7[%c0, %c0_1] : memref<16x192xf32, #tpu.memory_space<vmem>>, vector<16x192xf32>
    %c0_2 = arith.constant 0 : index
    %c0_3 = arith.constant 0 : index
    %4 = vector.load %arg3[%c0_2, %c0_3] : memref<16x64xbf16, #tpu.memory_space<vmem>>, vector<16x64xbf16>
    %c0_4 = arith.constant 0 : index
    %c0_5 = arith.constant 0 : index
    %5 = vector.load %arg4[%c0_4, %c0_5] : memref<64x192xbf16, #tpu.memory_space<vmem>>, vector<64x192xbf16>
    %cst = arith.constant dense<0.000000e+00> : vector<16x192xf32>
    %6 = tpu.matmul %4, %5, %cst {dimension_numbers = #tpu.dot_dimension_numbers<[1], [0], [0], [1], [0, 0, 1, 1], [], []>} : vector<16x64xbf16>, vector<64x192xbf16>, vector<16x192xf32> -> vector<16x192xf32>
    %7 = arith.addf %3, %6 : vector<16x192xf32>
    %c0_6 = arith.constant 0 : index
    %c0_7 = arith.constant 0 : index
    %8 = vector.load %arg7[%c0_6, %c0_7] : memref<16x192xf32, #tpu.memory_space<vmem>>, vector<16x192xf32>
    tpu.vector_store %arg7[%c0_6, %c0_7], %7 {strides = array<i32>} : memref<16x192xf32, #tpu.memory_space<vmem>>, vector<16x192xf32>,
    %c0_i32_8 = arith.constant 0 : i32
    %9 = arith.cmpi eq, %arg2, %c0_i32_8 : i32
    %10 = arith.extui %9 : i1 to i32
    %c0_i32_9 = arith.constant 0 : i32
    %11 = arith.cmpi ne, %10, %c0_i32_9 : i32
    scf.if %11 {
      %c0_10 = arith.constant 0 : index
      %c0_11 = arith.constant 0 : index
      %12 = vector.load %arg7[%c0_10, %c0_11] : memref<16x192xf32, #tpu.memory_space<vmem>>, vector<16x192xf32>
      %c0_12 = arith.constant 0 : index
      %c0_13 = arith.constant 0 : index
      %13 = vector.load %arg5[%c0_12, %c0_13] : memref<1x192xf32, #tpu.memory_space<vmem>>, vector<1x192xf32>
      %14 = vector.broadcast %13 : vector<1x192xf32> to vector<16x192xf32>
      %15 = arith.addf %12, %14 : vector<16x192xf32>
      %16 = arith.truncf %15 : vector<16x192xf32> to vector<16x192xbf16>
      %c0_14 = arith.constant 0 : index
      %c0_15 = arith.constant 0 : index
      %17 = vector.load %arg6[%c0_14, %c0_15] : memref<16x192xbf16, #tpu.memory_space<vmem>>, vector<16x192xbf16>
      tpu.vector_store %arg6[%c0_14, %c0_15], %16 {strides = array<i32>} : memref<16x192xbf16, #tpu.memory_space<vmem>>, vector<16x192xbf16>,
    } else {
    }
    return
  }
  func.func @transform_0(%arg0: i32, %arg1: i32, %arg2: i32) -> (i32, i32) {
    %c0_i32 = arith.constant 0 : i32
    return %arg0, %arg2 : i32, i32
  }
  func.func @transform_1(%arg0: i32, %arg1: i32, %arg2: i32) -> (i32, i32) {
    %c0_i32 = arith.constant 0 : i32
    return %arg2, %arg1 : i32, i32
  }
  func.func @transform_2(%arg0: i32, %arg1: i32, %arg2: i32) -> (i32, i32) {
    %c0_i32 = arith.constant 0 : i32
    %c0_i32_0 = arith.constant 0 : i32
    return %c0_i32, %arg1 : i32, i32
  }
  func.func @transform_3(%arg0: i32, %arg1: i32, %arg2: i32) -> (i32, i32) {
    %c0_i32 = arith.constant 0 : i32
    return %arg0, %arg1 : i32, i32
  }
}

module attributes {stable_mosaic.version = 11 : i64} {
  func.func @_ln_mod_kernel(%arg0: i32, %arg1: i32, %arg2: memref<1x8x64xf32, #tpu.memory_space<vmem>>, %arg3: memref<1x1x64xf32, #tpu.memory_space<vmem>>, %arg4: memref<1x1x64xf32, #tpu.memory_space<vmem>>, %arg5: memref<1x8x64xbf16, #tpu.memory_space<vmem>>) attributes {dimension_semantics = [#tpu.dimension_semantics<parallel>, #tpu.dimension_semantics<parallel>], iteration_bounds = array<i64: 2, 1>, scalar_prefetch = 0 : i64, scratch_operands = 0 : i64, tpu.core_type = #tpu.core_type<tc>, window_params = [{transform_indices = @transform_0, window_bounds = array<i64: 1, 8, 64>}, {transform_indices = @transform_1, window_bounds = array<i64: 1, 1, 64>}, {transform_indices = @transform_2, window_bounds = array<i64: 1, 1, 64>}, {transform_indices = @transform_3, window_bounds = array<i64: 1, 8, 64>}]} {
    %c0 = arith.constant 0 : index
    %c0_0 = arith.constant 0 : index
    %c0_1 = arith.constant 0 : index
    %0 = vector.load %arg2[%c0, %c0_0, %c0_1] : memref<1x8x64xf32, #tpu.memory_space<vmem>>, vector<1x8x64xf32>
    %cst = arith.constant dense<0.000000e+00> : vector<1x8xf32>
    %1 = vector.multi_reduction <add>, %0, %cst [2] : vector<1x8x64xf32> to vector<1x8xf32>
    %2 = vector.shape_cast %1 : vector<1x8xf32> to vector<1x8x1xf32>
    %cst_2 = arith.constant 6.400000e+01 : f32
    %3 = vector.broadcast %cst_2 : f32 to vector<1x8x1xf32>
    %4 = arith.divf %2, %3 : vector<1x8x1xf32>
    %5 = vector.broadcast %4 : vector<1x8x1xf32> to vector<1x8x64xf32>
    %6 = arith.subf %0, %5 : vector<1x8x64xf32>
    %7 = arith.mulf %6, %6 : vector<1x8x64xf32>
    %cst_3 = arith.constant dense<0.000000e+00> : vector<1x8xf32>
    %8 = vector.multi_reduction <add>, %7, %cst_3 [2] : vector<1x8x64xf32> to vector<1x8xf32>
    %9 = vector.shape_cast %8 : vector<1x8xf32> to vector<1x8x1xf32>
    %cst_4 = arith.constant 6.400000e+01 : f32
    %10 = vector.broadcast %cst_4 : f32 to vector<1x8x1xf32>
    %11 = arith.divf %9, %10 : vector<1x8x1xf32>
    %cst_5 = arith.constant 9.99999997E-7 : f32
    %12 = vector.broadcast %cst_5 : f32 to vector<1x8x1xf32>
    %13 = arith.addf %11, %12 : vector<1x8x1xf32>
    %14 = math.rsqrt %13 : vector<1x8x1xf32>
    %15 = vector.broadcast %14 : vector<1x8x1xf32> to vector<1x8x64xf32>
    %16 = arith.mulf %6, %15 : vector<1x8x64xf32>
    %c0_6 = arith.constant 0 : index
    %c0_7 = arith.constant 0 : index
    %c0_8 = arith.constant 0 : index
    %17 = vector.load %arg3[%c0_6, %c0_7, %c0_8] : memref<1x1x64xf32, #tpu.memory_space<vmem>>, vector<1x1x64xf32>
    %cst_9 = arith.constant 1.000000e+00 : f32
    %18 = vector.broadcast %cst_9 : f32 to vector<1x1x64xf32>
    %19 = arith.addf %18, %17 : vector<1x1x64xf32>
    %20 = vector.broadcast %19 : vector<1x1x64xf32> to vector<1x8x64xf32>
    %21 = arith.mulf %20, %16 : vector<1x8x64xf32>
    %c0_10 = arith.constant 0 : index
    %c0_11 = arith.constant 0 : index
    %c0_12 = arith.constant 0 : index
    %22 = vector.load %arg4[%c0_10, %c0_11, %c0_12] : memref<1x1x64xf32, #tpu.memory_space<vmem>>, vector<1x1x64xf32>
    %23 = vector.broadcast %22 : vector<1x1x64xf32> to vector<1x8x64xf32>
    %24 = arith.addf %21, %23 : vector<1x8x64xf32>
    %25 = arith.truncf %24 : vector<1x8x64xf32> to vector<1x8x64xbf16>
    %c0_13 = arith.constant 0 : index
    %c0_14 = arith.constant 0 : index
    %c0_15 = arith.constant 0 : index
    %26 = vector.load %arg5[%c0_13, %c0_14, %c0_15] : memref<1x8x64xbf16, #tpu.memory_space<vmem>>, vector<1x8x64xbf16>
    tpu.vector_store %arg5[%c0_13, %c0_14, %c0_15], %25 {strides = array<i32>} : memref<1x8x64xbf16, #tpu.memory_space<vmem>>, vector<1x8x64xbf16>,
    return
  }
  func.func @transform_0(%arg0: i32, %arg1: i32) -> (i32, i32, i32) {
    %c0_i32 = arith.constant 0 : i32
    %c0_i32_0 = arith.constant 0 : i32
    return %arg0, %arg1, %c0_i32 : i32, i32, i32
  }
  func.func @transform_1(%arg0: i32, %arg1: i32) -> (i32, i32, i32) {
    %c0_i32 = arith.constant 0 : i32
    %c0_i32_0 = arith.constant 0 : i32
    %c0_i32_1 = arith.constant 0 : i32
    return %arg0, %c0_i32, %c0_i32_0 : i32, i32, i32
  }
  func.func @transform_2(%arg0: i32, %arg1: i32) -> (i32, i32, i32) {
    %c0_i32 = arith.constant 0 : i32
    %c0_i32_0 = arith.constant 0 : i32
    %c0_i32_1 = arith.constant 0 : i32
    return %arg0, %c0_i32, %c0_i32_0 : i32, i32, i32
  }
  func.func @transform_3(%arg0: i32, %arg1: i32) -> (i32, i32, i32) {
    %c0_i32 = arith.constant 0 : i32
    %c0_i32_0 = arith.constant 0 : i32
    return %arg0, %arg1, %c0_i32 : i32, i32, i32
  }
}

module attributes {stable_mosaic.version = 11 : i64} {
  func.func @_linear_kernel(%arg0: i32, %arg1: i32, %arg2: i32, %arg3: memref<16x48xbf16, #tpu.memory_space<vmem>>, %arg4: memref<48x64xbf16, #tpu.memory_space<vmem>>, %arg5: memref<1x64xf32, #tpu.memory_space<vmem>>, %arg6: memref<16x64xf32, #tpu.memory_space<vmem>>, %arg7: memref<16x64xf32, #tpu.memory_space<vmem>>) attributes {dimension_semantics = [#tpu.dimension_semantics<parallel>, #tpu.dimension_semantics<parallel>, #tpu.dimension_semantics<arbitrary>], iteration_bounds = array<i64: 1, 1, 1>, scalar_prefetch = 0 : i64, scratch_operands = 1 : i64, tpu.core_type = #tpu.core_type<tc>, window_params = [{transform_indices = @transform_0, window_bounds = array<i64: 16, 48>}, {transform_indices = @transform_1, window_bounds = array<i64: 48, 64>}, {transform_indices = @transform_2, window_bounds = array<i64: 1, 64>}, {transform_indices = @transform_3, window_bounds = array<i64: 16, 64>}]} {
    %c0_i32 = arith.constant 0 : i32
    %0 = arith.cmpi eq, %arg2, %c0_i32 : i32
    %1 = arith.extui %0 : i1 to i32
    %c0_i32_0 = arith.constant 0 : i32
    %2 = arith.cmpi ne, %1, %c0_i32_0 : i32
    scf.if %2 {
      %cst_10 = arith.constant 0.000000e+00 : f32
      %12 = vector.broadcast %cst_10 : f32 to vector<16x64xf32>
      %c0_11 = arith.constant 0 : index
      %c0_12 = arith.constant 0 : index
      %13 = vector.load %arg7[%c0_11, %c0_12] : memref<16x64xf32, #tpu.memory_space<vmem>>, vector<16x64xf32>
      tpu.vector_store %arg7[%c0_11, %c0_12], %12 {strides = array<i32>} : memref<16x64xf32, #tpu.memory_space<vmem>>, vector<16x64xf32>,
    } else {
    }
    %c0 = arith.constant 0 : index
    %c0_1 = arith.constant 0 : index
    %3 = vector.load %arg7[%c0, %c0_1] : memref<16x64xf32, #tpu.memory_space<vmem>>, vector<16x64xf32>
    %c0_2 = arith.constant 0 : index
    %c0_3 = arith.constant 0 : index
    %4 = vector.load %arg3[%c0_2, %c0_3] : memref<16x48xbf16, #tpu.memory_space<vmem>>, vector<16x48xbf16>
    %c0_4 = arith.constant 0 : index
    %c0_5 = arith.constant 0 : index
    %5 = vector.load %arg4[%c0_4, %c0_5] : memref<48x64xbf16, #tpu.memory_space<vmem>>, vector<48x64xbf16>
    %cst = arith.constant dense<0.000000e+00> : vector<16x64xf32>
    %6 = tpu.matmul %4, %5, %cst {dimension_numbers = #tpu.dot_dimension_numbers<[1], [0], [0], [1], [0, 0, 1, 1], [], []>} : vector<16x48xbf16>, vector<48x64xbf16>, vector<16x64xf32> -> vector<16x64xf32>
    %7 = arith.addf %3, %6 : vector<16x64xf32>
    %c0_6 = arith.constant 0 : index
    %c0_7 = arith.constant 0 : index
    %8 = vector.load %arg7[%c0_6, %c0_7] : memref<16x64xf32, #tpu.memory_space<vmem>>, vector<16x64xf32>
    tpu.vector_store %arg7[%c0_6, %c0_7], %7 {strides = array<i32>} : memref<16x64xf32, #tpu.memory_space<vmem>>, vector<16x64xf32>,
    %c0_i32_8 = arith.constant 0 : i32
    %9 = arith.cmpi eq, %arg2, %c0_i32_8 : i32
    %10 = arith.extui %9 : i1 to i32
    %c0_i32_9 = arith.constant 0 : i32
    %11 = arith.cmpi ne, %10, %c0_i32_9 : i32
    scf.if %11 {
      %c0_10 = arith.constant 0 : index
      %c0_11 = arith.constant 0 : index
      %12 = vector.load %arg7[%c0_10, %c0_11] : memref<16x64xf32, #tpu.memory_space<vmem>>, vector<16x64xf32>
      %c0_12 = arith.constant 0 : index
      %c0_13 = arith.constant 0 : index
      %13 = vector.load %arg5[%c0_12, %c0_13] : memref<1x64xf32, #tpu.memory_space<vmem>>, vector<1x64xf32>
      %14 = vector.broadcast %13 : vector<1x64xf32> to vector<16x64xf32>
      %15 = arith.addf %12, %14 : vector<16x64xf32>
      %c0_14 = arith.constant 0 : index
      %c0_15 = arith.constant 0 : index
      %16 = vector.load %arg6[%c0_14, %c0_15] : memref<16x64xf32, #tpu.memory_space<vmem>>, vector<16x64xf32>
      tpu.vector_store %arg6[%c0_14, %c0_15], %15 {strides = array<i32>} : memref<16x64xf32, #tpu.memory_space<vmem>>, vector<16x64xf32>,
    } else {
    }
    return
  }
  func.func @transform_0(%arg0: i32, %arg1: i32, %arg2: i32) -> (i32, i32) {
    %c0_i32 = arith.constant 0 : i32
    return %arg0, %arg2 : i32, i32
  }
  func.func @transform_1(%arg0: i32, %arg1: i32, %arg2: i32) -> (i32, i32) {
    %c0_i32 = arith.constant 0 : i32
    return %arg2, %arg1 : i32, i32
  }
  func.func @transform_2(%arg0: i32, %arg1: i32, %arg2: i32) -> (i32, i32) {
    %c0_i32 = arith.constant 0 : i32
    %c0_i32_0 = arith.constant 0 : i32
    return %c0_i32, %arg1 : i32, i32
  }
  func.func @transform_3(%arg0: i32, %arg1: i32, %arg2: i32) -> (i32, i32) {
    %c0_i32 = arith.constant 0 : i32
    return %arg0, %arg1 : i32, i32
  }
}

module attributes {stable_mosaic.version = 11 : i64} {
  func.func @_flash_kernel(%arg0: i32, %arg1: i32, %arg2: i32, %arg3: i32, %arg4: memref<1x1x24x32xbf16, #tpu.memory_space<vmem>>, %arg5: memref<1x1x24x32xbf16, #tpu.memory_space<vmem>>, %arg6: memref<1x1x24x32xbf16, #tpu.memory_space<vmem>>, %arg7: memref<24x8xf32, #tpu.memory_space<vmem>>, %arg8: memref<8x24xf32, #tpu.memory_space<vmem>>, %arg9: memref<1x1x24x32xbf16, #tpu.memory_space<vmem>>, %arg10: memref<24x1xf32, #tpu.memory_space<vmem>>, %arg11: memref<24x1xf32, #tpu.memory_space<vmem>>, %arg12: memref<24x32xf32, #tpu.memory_space<vmem>>) attributes {dimension_semantics = [#tpu.dimension_semantics<parallel>, #tpu.dimension_semantics<parallel>, #tpu.dimension_semantics<parallel>, #tpu.dimension_semantics<arbitrary>], iteration_bounds = array<i64: 2, 2, 1, 1>, scalar_prefetch = 0 : i64, scratch_operands = 3 : i64, tpu.core_type = #tpu.core_type<tc>, window_params = [{transform_indices = @transform_0, window_bounds = array<i64: 1, 1, 24, 32>}, {transform_indices = @transform_1, window_bounds = array<i64: 1, 1, 24, 32>}, {transform_indices = @transform_2, window_bounds = array<i64: 1, 1, 24, 32>}, {transform_indices = @transform_3, window_bounds = array<i64: 24, 8>}, {transform_indices = @transform_4, window_bounds = array<i64: 8, 24>}, {transform_indices = @transform_5, window_bounds = array<i64: 1, 1, 24, 32>}]} {
    %c0_i32 = arith.constant 0 : i32
    %0 = arith.cmpi eq, %arg3, %c0_i32 : i32
    %1 = arith.extui %0 : i1 to i32
    %c0_i32_0 = arith.constant 0 : i32
    %2 = arith.cmpi ne, %1, %c0_i32_0 : i32
    scf.if %2 {
      %cst_17 = arith.constant -1.000000e+30 : f32
      %21 = vector.broadcast %cst_17 : f32 to vector<24x1xf32>
      %c0_18 = arith.constant 0 : index
      %c0_19 = arith.constant 0 : index
      %22 = vector.load %arg10[%c0_18, %c0_19] : memref<24x1xf32, #tpu.memory_space<vmem>>, vector<24x1xf32>
      tpu.vector_store %arg10[%c0_18, %c0_19], %21 {strides = array<i32>} : memref<24x1xf32, #tpu.memory_space<vmem>>, vector<24x1xf32>,
      %cst_20 = arith.constant 0.000000e+00 : f32
      %23 = vector.broadcast %cst_20 : f32 to vector<24x1xf32>
      %c0_21 = arith.constant 0 : index
      %c0_22 = arith.constant 0 : index
      %24 = vector.load %arg11[%c0_21, %c0_22] : memref<24x1xf32, #tpu.memory_space<vmem>>, vector<24x1xf32>
      tpu.vector_store %arg11[%c0_21, %c0_22], %23 {strides = array<i32>} : memref<24x1xf32, #tpu.memory_space<vmem>>, vector<24x1xf32>,
      %cst_23 = arith.constant 0.000000e+00 : f32
      %25 = vector.broadcast %cst_23 : f32 to vector<24x32xf32>
      %c0_24 = arith.constant 0 : index
      %c0_25 = arith.constant 0 : index
      %26 = vector.load %arg12[%c0_24, %c0_25] : memref<24x32xf32, #tpu.memory_space<vmem>>, vector<24x32xf32>
      tpu.vector_store %arg12[%c0_24, %c0_25], %25 {strides = array<i32>} : memref<24x32xf32, #tpu.memory_space<vmem>>, vector<24x32xf32>,
    } else {
    }
    %c0 = arith.constant 0 : index
    %c0_1 = arith.constant 0 : index
    %c0_2 = arith.constant 0 : index
    %c0_3 = arith.constant 0 : index
    %3 = vector.load %arg4[%c0, %c0_1, %c0_2, %c0_3] : memref<1x1x24x32xbf16, #tpu.memory_space<vmem>>, vector<1x1x24x32xbf16>
    %4 = vector.shape_cast %3 : vector<1x1x24x32xbf16> to vector<24x32xbf16>
    %c0_4 = arith.constant 0 : index
    %c0_5 = arith.constant 0 : index
    %c0_6 = arith.constant 0 : index
    %c0_7 = arith.constant 0 : index
    %5 = vector.load %arg5[%c0_4, %c0_5, %c0_6, %c0_7] : memref<1x1x24x32xbf16, #tpu.memory_space<vmem>>, vector<1x1x24x32xbf16>
    %6 = vector.shape_cast %5 : vector<1x1x24x32xbf16> to vector<24x32xbf16>
    %c0_8 = arith.constant 0 : index
    %c0_9 = arith.constant 0 : index
    %c0_10 = arith.constant 0 : index
    %c0_11 = arith.constant 0 : index
    %7 = vector.load %arg6[%c0_8, %c0_9, %c0_10, %c0_11] : memref<1x1x24x32xbf16, #tpu.memory_space<vmem>>, vector<1x1x24x32xbf16>
    %8 = vector.shape_cast %7 : vector<1x1x24x32xbf16> to vector<24x32xbf16>
    %cst = arith.constant dense<0.000000e+00> : vector<24x24xf32>
    %9 = tpu.matmul %4, %6, %cst {dimension_numbers = #tpu.dot_dimension_numbers<[1], [1], [0], [0], [0, 0, 1, 0], [], []>} : vector<24x32xbf16>, vector<24x32xbf16>, vector<24x24xf32> -> vector<24x24xf32>
    %c1_i32 = arith.constant 1 : i32
    %10 = arith.cmpi slt, %arg2, %c1_i32 : i32
    %c1_i32_12 = arith.constant 1 : i32
    %11 = arith.cmpi slt, %arg3, %c1_i32_12 : i32
    %12 = arith.ori %10, %11 : i1
    %13 = arith.extui %12 : i1 to i32
    %c0_i32_13 = arith.constant 0 : i32
    %14 = arith.cmpi ne, %13, %c0_i32_13 : i32
    scf.if %14 {
      %c0_17 = arith.constant 0 : index
      %c0_18 = arith.constant 0 : index
      %21 = vector.load %arg7[%c0_17, %c0_18] : memref<24x8xf32, #tpu.memory_space<vmem>>, vector<24x8xf32>
      %c0_19 = arith.constant 0 : index
      %c0_20 = arith.constant 0 : index
      %22 = vector.load %arg8[%c0_19, %c0_20] : memref<8x24xf32, #tpu.memory_space<vmem>>, vector<8x24xf32>
      %cst_21 = arith.constant dense<0.000000e+00> : vector<24x24xf32>
      %23 = tpu.matmul %21, %22, %cst_21 {dimension_numbers = #tpu.dot_dimension_numbers<[1], [0], [0], [1], [0, 0, 1, 1], [], []>} : vector<24x8xf32>, vector<8x24xf32>, vector<24x24xf32> -> vector<24x24xf32>
      %cst_22 = arith.constant 0.000000e+00 : f32
      %24 = vector.broadcast %cst_22 : f32 to vector<24x24xf32>
      %25 = arith.cmpf ogt, %23, %24 : vector<24x24xf32>
      %cst_23 = arith.constant -1.000000e+30 : f32
      %26 = vector.broadcast %cst_23 : f32 to vector<24x24xf32>
      %27 = arith.select %25, %9, %26 : vector<24x24xi1>, vector<24x24xf32>
      %c0_24 = arith.constant 0 : index
      %c0_25 = arith.constant 0 : index
      %28 = vector.load %arg10[%c0_24, %c0_25] : memref<24x1xf32, #tpu.memory_space<vmem>>, vector<24x1xf32>
      %cst_26 = arith.constant dense<0xFF800000> : vector<24xf32>
      %29 = vector.multi_reduction <maximumf>, %27, %cst_26 [1] : vector<24x24xf32> to vector<24xf32>
      %30 = vector.shape_cast %29 : vector<24xf32> to vector<24x1xf32>
      %31 = arith.maximumf %28, %30 : vector<24x1xf32>
      %32 = arith.subf %28, %31 : vector<24x1xf32>
      %33 = math.exp %32 : vector<24x1xf32>
      %34 = vector.broadcast %31 : vector<24x1xf32> to vector<24x24xf32>
      %35 = arith.subf %27, %34 : vector<24x24xf32>
      %36 = math.exp %35 : vector<24x24xf32>
      %c0_27 = arith.constant 0 : index
      %c0_28 = arith.constant 0 : index
      %37 = vector.load %arg11[%c0_27, %c0_28] : memref<24x1xf32, #tpu.memory_space<vmem>>, vector<24x1xf32>
      %38 = arith.mulf %33, %37 : vector<24x1xf32>
      %cst_29 = arith.constant dense<0.000000e+00> : vector<24xf32>
      %39 = vector.multi_reduction <add>, %36, %cst_29 [1] : vector<24x24xf32> to vector<24xf32>
      %40 = vector.shape_cast %39 : vector<24xf32> to vector<24x1xf32>
      %41 = arith.addf %38, %40 : vector<24x1xf32>
      %c0_30 = arith.constant 0 : index
      %c0_31 = arith.constant 0 : index
      %42 = vector.load %arg11[%c0_30, %c0_31] : memref<24x1xf32, #tpu.memory_space<vmem>>, vector<24x1xf32>
      tpu.vector_store %arg11[%c0_30, %c0_31], %41 {strides = array<i32>} : memref<24x1xf32, #tpu.memory_space<vmem>>, vector<24x1xf32>,
      %c0_32 = arith.constant 0 : index
      %c0_33 = arith.constant 0 : index
      %43 = vector.load %arg12[%c0_32, %c0_33] : memref<24x32xf32, #tpu.memory_space<vmem>>, vector<24x32xf32>
      %44 = vector.broadcast %33 : vector<24x1xf32> to vector<24x32xf32>
      %45 = arith.mulf %44, %43 : vector<24x32xf32>
      %46 = arith.truncf %36 : vector<24x24xf32> to vector<24x24xbf16>
      %cst_34 = arith.constant dense<0.000000e+00> : vector<24x32xf32>
      %47 = tpu.matmul %46, %8, %cst_34 {dimension_numbers = #tpu.dot_dimension_numbers<[1], [0], [0], [1], [0, 0, 1, 1], [], []>} : vector<24x24xbf16>, vector<24x32xbf16>, vector<24x32xf32> -> vector<24x32xf32>
      %48 = arith.addf %45, %47 : vector<24x32xf32>
      %c0_35 = arith.constant 0 : index
      %c0_36 = arith.constant 0 : index
      %49 = vector.load %arg12[%c0_35, %c0_36] : memref<24x32xf32, #tpu.memory_space<vmem>>, vector<24x32xf32>
      tpu.vector_store %arg12[%c0_35, %c0_36], %48 {strides = array<i32>} : memref<24x32xf32, #tpu.memory_space<vmem>>, vector<24x32xf32>,
      %c0_37 = arith.constant 0 : index
      %c0_38 = arith.constant 0 : index
      %50 = vector.load %arg10[%c0_37, %c0_38] : memref<24x1xf32, #tpu.memory_space<vmem>>, vector<24x1xf32>
      tpu.vector_store %arg10[%c0_37, %c0_38], %31 {strides = array<i32>} : memref<24x1xf32, #tpu.memory_space<vmem>>, vector<24x1xf32>,
    } else {
    }
    %true = arith.constant true
    %15 = arith.xori %12, %true : i1
    %16 = arith.extui %15 : i1 to i32
    %c0_i32_14 = arith.constant 0 : i32
    %17 = arith.cmpi ne, %16, %c0_i32_14 : i32
    scf.if %17 {
      %c0_17 = arith.constant 0 : index
      %c0_18 = arith.constant 0 : index
      %21 = vector.load %arg10[%c0_17, %c0_18] : memref<24x1xf32, #tpu.memory_space<vmem>>, vector<24x1xf32>
      %cst_19 = arith.constant dense<0xFF800000> : vector<24xf32>
      %22 = vector.multi_reduction <maximumf>, %9, %cst_19 [1] : vector<24x24xf32> to vector<24xf32>
      %23 = vector.shape_cast %22 : vector<24xf32> to vector<24x1xf32>
      %24 = arith.maximumf %21, %23 : vector<24x1xf32>
      %25 = arith.subf %21, %24 : vector<24x1xf32>
      %26 = math.exp %25 : vector<24x1xf32>
      %27 = vector.broadcast %24 : vector<24x1xf32> to vector<24x24xf32>
      %28 = arith.subf %9, %27 : vector<24x24xf32>
      %29 = math.exp %28 : vector<24x24xf32>
      %c0_20 = arith.constant 0 : index
      %c0_21 = arith.constant 0 : index
      %30 = vector.load %arg11[%c0_20, %c0_21] : memref<24x1xf32, #tpu.memory_space<vmem>>, vector<24x1xf32>
      %31 = arith.mulf %26, %30 : vector<24x1xf32>
      %cst_22 = arith.constant dense<0.000000e+00> : vector<24xf32>
      %32 = vector.multi_reduction <add>, %29, %cst_22 [1] : vector<24x24xf32> to vector<24xf32>
      %33 = vector.shape_cast %32 : vector<24xf32> to vector<24x1xf32>
      %34 = arith.addf %31, %33 : vector<24x1xf32>
      %c0_23 = arith.constant 0 : index
      %c0_24 = arith.constant 0 : index
      %35 = vector.load %arg11[%c0_23, %c0_24] : memref<24x1xf32, #tpu.memory_space<vmem>>, vector<24x1xf32>
      tpu.vector_store %arg11[%c0_23, %c0_24], %34 {strides = array<i32>} : memref<24x1xf32, #tpu.memory_space<vmem>>, vector<24x1xf32>,
      %c0_25 = arith.constant 0 : index
      %c0_26 = arith.constant 0 : index
      %36 = vector.load %arg12[%c0_25, %c0_26] : memref<24x32xf32, #tpu.memory_space<vmem>>, vector<24x32xf32>
      %37 = vector.broadcast %26 : vector<24x1xf32> to vector<24x32xf32>
      %38 = arith.mulf %37, %36 : vector<24x32xf32>
      %39 = arith.truncf %29 : vector<24x24xf32> to vector<24x24xbf16>
      %cst_27 = arith.constant dense<0.000000e+00> : vector<24x32xf32>
      %40 = tpu.matmul %39, %8, %cst_27 {dimension_numbers = #tpu.dot_dimension_numbers<[1], [0], [0], [1], [0, 0, 1, 1], [], []>} : vector<24x24xbf16>, vector<24x32xbf16>, vector<24x32xf32> -> vector<24x32xf32>
      %41 = arith.addf %38, %40 : vector<24x32xf32>
      %c0_28 = arith.constant 0 : index
      %c0_29 = arith.constant 0 : index
      %42 = vector.load %arg12[%c0_28, %c0_29] : memref<24x32xf32, #tpu.memory_space<vmem>>, vector<24x32xf32>
      tpu.vector_store %arg12[%c0_28, %c0_29], %41 {strides = array<i32>} : memref<24x32xf32, #tpu.memory_space<vmem>>, vector<24x32xf32>,
      %c0_30 = arith.constant 0 : index
      %c0_31 = arith.constant 0 : index
      %43 = vector.load %arg10[%c0_30, %c0_31] : memref<24x1xf32, #tpu.memory_space<vmem>>, vector<24x1xf32>
      tpu.vector_store %arg10[%c0_30, %c0_31], %24 {strides = array<i32>} : memref<24x1xf32, #tpu.memory_space<vmem>>, vector<24x1xf32>,
    } else {
    }
    %c0_i32_15 = arith.constant 0 : i32
    %18 = arith.cmpi eq, %arg3, %c0_i32_15 : i32
    %19 = arith.extui %18 : i1 to i32
    %c0_i32_16 = arith.constant 0 : i32
    %20 = arith.cmpi ne, %19, %c0_i32_16 : i32
    scf.if %20 {
      %c0_17 = arith.constant 0 : index
      %c0_18 = arith.constant 0 : index
      %21 = vector.load %arg11[%c0_17, %c0_18] : memref<24x1xf32, #tpu.memory_space<vmem>>, vector<24x1xf32>
      %22 = tpu.reciprocal %21 : vector<24x1xf32> -> vector<24x1xf32>
      %c0_19 = arith.constant 0 : index
      %c0_20 = arith.constant 0 : index
      %23 = vector.load %arg12[%c0_19, %c0_20] : memref<24x32xf32, #tpu.memory_space<vmem>>, vector<24x32xf32>
      %24 = vector.broadcast %22 : vector<24x1xf32> to vector<24x32xf32>
      %25 = arith.mulf %23, %24 : vector<24x32xf32>
      %26 = vector.shape_cast %25 : vector<24x32xf32> to vector<1x1x24x32xf32>
      %27 = arith.truncf %26 : vector<1x1x24x32xf32> to vector<1x1x24x32xbf16>
      %c0_21 = arith.constant 0 : index
      %c0_22 = arith.constant 0 : index
      %c0_23 = arith.constant 0 : index
      %c0_24 = arith.constant 0 : index
      %28 = vector.load %arg9[%c0_21, %c0_22, %c0_23, %c0_24] : memref<1x1x24x32xbf16, #tpu.memory_space<vmem>>, vector<1x1x24x32xbf16>
      tpu.vector_store %arg9[%c0_21, %c0_22, %c0_23, %c0_24], %27 {strides = array<i32>} : memref<1x1x24x32xbf16, #tpu.memory_space<vmem>>, vector<1x1x24x32xbf16>,
    } else {
    }
    return
  }
  func.func @transform_0(%arg0: i32, %arg1: i32, %arg2: i32, %arg3: i32) -> (i32, i32, i32, i32) {
    %c0_i32 = arith.constant 0 : i32
    %c0_i32_0 = arith.constant 0 : i32
    return %arg0, %arg1, %arg2, %c0_i32 : i32, i32, i32, i32
  }
  func.func @transform_1(%arg0: i32, %arg1: i32, %arg2: i32, %arg3: i32) -> (i32, i32, i32, i32) {
    %c0_i32 = arith.constant 0 : i32
    %c0_i32_0 = arith.constant 0 : i32
    return %arg0, %arg1, %arg3, %c0_i32 : i32, i32, i32, i32
  }
  func.func @transform_2(%arg0: i32, %arg1: i32, %arg2: i32, %arg3: i32) -> (i32, i32, i32, i32) {
    %c0_i32 = arith.constant 0 : i32
    %c0_i32_0 = arith.constant 0 : i32
    return %arg0, %arg1, %arg3, %c0_i32 : i32, i32, i32, i32
  }
  func.func @transform_3(%arg0: i32, %arg1: i32, %arg2: i32, %arg3: i32) -> (i32, i32) {
    %c0_i32 = arith.constant 0 : i32
    %c0_i32_0 = arith.constant 0 : i32
    return %arg2, %c0_i32 : i32, i32
  }
  func.func @transform_4(%arg0: i32, %arg1: i32, %arg2: i32, %arg3: i32) -> (i32, i32) {
    %c0_i32 = arith.constant 0 : i32
    %c0_i32_0 = arith.constant 0 : i32
    return %c0_i32, %arg3 : i32, i32
  }
  func.func @transform_5(%arg0: i32, %arg1: i32, %arg2: i32, %arg3: i32) -> (i32, i32, i32, i32) {
    %c0_i32 = arith.constant 0 : i32
    %c0_i32_0 = arith.constant 0 : i32
    return %arg0, %arg1, %arg2, %c0_i32 : i32, i32, i32, i32
  }
}

module attributes {stable_mosaic.version = 11 : i64} {
  func.func @_linear_resgate_kernel(%arg0: i32, %arg1: i32, %arg2: i32, %arg3: i32, %arg4: memref<1x8x64xbf16, #tpu.memory_space<vmem>>, %arg5: memref<64x64xbf16, #tpu.memory_space<vmem>>, %arg6: memref<1x64xf32, #tpu.memory_space<vmem>>, %arg7: memref<1x8x64xf32, #tpu.memory_space<vmem>>, %arg8: memref<1x1x64xf32, #tpu.memory_space<vmem>>, %arg9: memref<1x8x64xf32, #tpu.memory_space<vmem>>, %arg10: memref<8x64xf32, #tpu.memory_space<vmem>>) attributes {dimension_semantics = [#tpu.dimension_semantics<parallel>, #tpu.dimension_semantics<parallel>, #tpu.dimension_semantics<parallel>, #tpu.dimension_semantics<arbitrary>], iteration_bounds = array<i64: 2, 1, 1, 1>, scalar_prefetch = 0 : i64, scratch_operands = 1 : i64, tpu.core_type = #tpu.core_type<tc>, window_params = [{transform_indices = @transform_0, window_bounds = array<i64: 1, 8, 64>}, {transform_indices = @transform_1, window_bounds = array<i64: 64, 64>}, {transform_indices = @transform_2, window_bounds = array<i64: 1, 64>}, {transform_indices = @transform_3, window_bounds = array<i64: 1, 8, 64>}, {transform_indices = @transform_4, window_bounds = array<i64: 1, 1, 64>}, {transform_indices = @transform_5, window_bounds = array<i64: 1, 8, 64>}]} {
    %c0_i32 = arith.constant 0 : i32
    %0 = arith.cmpi eq, %arg3, %c0_i32 : i32
    %1 = arith.extui %0 : i1 to i32
    %c0_i32_0 = arith.constant 0 : i32
    %2 = arith.cmpi ne, %1, %c0_i32_0 : i32
    scf.if %2 {
      %cst_11 = arith.constant 0.000000e+00 : f32
      %13 = vector.broadcast %cst_11 : f32 to vector<8x64xf32>
      %c0_12 = arith.constant 0 : index
      %c0_13 = arith.constant 0 : index
      %14 = vector.load %arg10[%c0_12, %c0_13] : memref<8x64xf32, #tpu.memory_space<vmem>>, vector<8x64xf32>
      tpu.vector_store %arg10[%c0_12, %c0_13], %13 {strides = array<i32>} : memref<8x64xf32, #tpu.memory_space<vmem>>, vector<8x64xf32>,
    } else {
    }
    %c0 = arith.constant 0 : index
    %c0_1 = arith.constant 0 : index
    %3 = vector.load %arg10[%c0, %c0_1] : memref<8x64xf32, #tpu.memory_space<vmem>>, vector<8x64xf32>
    %c0_2 = arith.constant 0 : index
    %c0_3 = arith.constant 0 : index
    %c0_4 = arith.constant 0 : index
    %4 = vector.load %arg4[%c0_2, %c0_3, %c0_4] : memref<1x8x64xbf16, #tpu.memory_space<vmem>>, vector<1x8x64xbf16>
    %5 = vector.shape_cast %4 : vector<1x8x64xbf16> to vector<8x64xbf16>
    %c0_5 = arith.constant 0 : index
    %c0_6 = arith.constant 0 : index
    %6 = vector.load %arg5[%c0_5, %c0_6] : memref<64x64xbf16, #tpu.memory_space<vmem>>, vector<64x64xbf16>
    %cst = arith.constant dense<0.000000e+00> : vector<8x64xf32>
    %7 = tpu.matmul %5, %6, %cst {dimension_numbers = #tpu.dot_dimension_numbers<[1], [0], [0], [1], [0, 0, 1, 1], [], []>} : vector<8x64xbf16>, vector<64x64xbf16>, vector<8x64xf32> -> vector<8x64xf32>
    %8 = arith.addf %3, %7 : vector<8x64xf32>
    %c0_7 = arith.constant 0 : index
    %c0_8 = arith.constant 0 : index
    %9 = vector.load %arg10[%c0_7, %c0_8] : memref<8x64xf32, #tpu.memory_space<vmem>>, vector<8x64xf32>
    tpu.vector_store %arg10[%c0_7, %c0_8], %8 {strides = array<i32>} : memref<8x64xf32, #tpu.memory_space<vmem>>, vector<8x64xf32>,
    %c0_i32_9 = arith.constant 0 : i32
    %10 = arith.cmpi eq, %arg3, %c0_i32_9 : i32
    %11 = arith.extui %10 : i1 to i32
    %c0_i32_10 = arith.constant 0 : i32
    %12 = arith.cmpi ne, %11, %c0_i32_10 : i32
    scf.if %12 {
      %c0_11 = arith.constant 0 : index
      %c0_12 = arith.constant 0 : index
      %13 = vector.load %arg10[%c0_11, %c0_12] : memref<8x64xf32, #tpu.memory_space<vmem>>, vector<8x64xf32>
      %c0_13 = arith.constant 0 : index
      %c0_14 = arith.constant 0 : index
      %14 = vector.load %arg6[%c0_13, %c0_14] : memref<1x64xf32, #tpu.memory_space<vmem>>, vector<1x64xf32>
      %15 = vector.broadcast %14 : vector<1x64xf32> to vector<8x64xf32>
      %16 = arith.addf %13, %15 : vector<8x64xf32>
      %c0_15 = arith.constant 0 : index
      %c0_16 = arith.constant 0 : index
      %c0_17 = arith.constant 0 : index
      %17 = vector.load %arg7[%c0_15, %c0_16, %c0_17] : memref<1x8x64xf32, #tpu.memory_space<vmem>>, vector<1x8x64xf32>
      %18 = vector.shape_cast %17 : vector<1x8x64xf32> to vector<8x64xf32>
      %c0_18 = arith.constant 0 : index
      %c0_19 = arith.constant 0 : index
      %c0_20 = arith.constant 0 : index
      %19 = vector.load %arg8[%c0_18, %c0_19, %c0_20] : memref<1x1x64xf32, #tpu.memory_space<vmem>>, vector<1x1x64xf32>
      %20 = vector.shape_cast %19 : vector<1x1x64xf32> to vector<1x64xf32>
      %21 = vector.broadcast %20 : vector<1x64xf32> to vector<8x64xf32>
      %22 = arith.mulf %21, %16 : vector<8x64xf32>
      %23 = arith.addf %18, %22 : vector<8x64xf32>
      %24 = vector.shape_cast %23 : vector<8x64xf32> to vector<1x8x64xf32>
      %c0_21 = arith.constant 0 : index
      %c0_22 = arith.constant 0 : index
      %c0_23 = arith.constant 0 : index
      %25 = vector.load %arg9[%c0_21, %c0_22, %c0_23] : memref<1x8x64xf32, #tpu.memory_space<vmem>>, vector<1x8x64xf32>
      tpu.vector_store %arg9[%c0_21, %c0_22, %c0_23], %24 {strides = array<i32>} : memref<1x8x64xf32, #tpu.memory_space<vmem>>, vector<1x8x64xf32>,
    } else {
    }
    return
  }
  func.func @transform_0(%arg0: i32, %arg1: i32, %arg2: i32, %arg3: i32) -> (i32, i32, i32) {
    %c0_i32 = arith.constant 0 : i32
    return %arg0, %arg1, %arg3 : i32, i32, i32
  }
  func.func @transform_1(%arg0: i32, %arg1: i32, %arg2: i32, %arg3: i32) -> (i32, i32) {
    %c0_i32 = arith.constant 0 : i32
    return %arg3, %arg2 : i32, i32
  }
  func.func @transform_2(%arg0: i32, %arg1: i32, %arg2: i32, %arg3: i32) -> (i32, i32) {
    %c0_i32 = arith.constant 0 : i32
    %c0_i32_0 = arith.constant 0 : i32
    return %c0_i32, %arg2 : i32, i32
  }
  func.func @transform_3(%arg0: i32, %arg1: i32, %arg2: i32, %arg3: i32) -> (i32, i32, i32) {
    %c0_i32 = arith.constant 0 : i32
    return %arg0, %arg1, %arg2 : i32, i32, i32
  }
  func.func @transform_4(%arg0: i32, %arg1: i32, %arg2: i32, %arg3: i32) -> (i32, i32, i32) {
    %c0_i32 = arith.constant 0 : i32
    %c0_i32_0 = arith.constant 0 : i32
    return %arg0, %c0_i32, %arg2 : i32, i32, i32
  }
  func.func @transform_5(%arg0: i32, %arg1: i32, %arg2: i32, %arg3: i32) -> (i32, i32, i32) {
    %c0_i32 = arith.constant 0 : i32
    return %arg0, %arg1, %arg2 : i32, i32, i32
  }
}

module attributes {stable_mosaic.version = 11 : i64} {
  func.func @_linear_kernel(%arg0: i32, %arg1: i32, %arg2: i32, %arg3: memref<16x64xbf16, #tpu.memory_space<vmem>>, %arg4: memref<64x256xbf16, #tpu.memory_space<vmem>>, %arg5: memref<1x256xf32, #tpu.memory_space<vmem>>, %arg6: memref<16x256xbf16, #tpu.memory_space<vmem>>, %arg7: memref<16x256xf32, #tpu.memory_space<vmem>>) attributes {dimension_semantics = [#tpu.dimension_semantics<parallel>, #tpu.dimension_semantics<parallel>, #tpu.dimension_semantics<arbitrary>], iteration_bounds = array<i64: 1, 1, 1>, scalar_prefetch = 0 : i64, scratch_operands = 1 : i64, tpu.core_type = #tpu.core_type<tc>, window_params = [{transform_indices = @transform_0, window_bounds = array<i64: 16, 64>}, {transform_indices = @transform_1, window_bounds = array<i64: 64, 256>}, {transform_indices = @transform_2, window_bounds = array<i64: 1, 256>}, {transform_indices = @transform_3, window_bounds = array<i64: 16, 256>}]} {
    %c0_i32 = arith.constant 0 : i32
    %0 = arith.cmpi eq, %arg2, %c0_i32 : i32
    %1 = arith.extui %0 : i1 to i32
    %c0_i32_0 = arith.constant 0 : i32
    %2 = arith.cmpi ne, %1, %c0_i32_0 : i32
    scf.if %2 {
      %cst_10 = arith.constant 0.000000e+00 : f32
      %12 = vector.broadcast %cst_10 : f32 to vector<16x256xf32>
      %c0_11 = arith.constant 0 : index
      %c0_12 = arith.constant 0 : index
      %13 = vector.load %arg7[%c0_11, %c0_12] : memref<16x256xf32, #tpu.memory_space<vmem>>, vector<16x256xf32>
      tpu.vector_store %arg7[%c0_11, %c0_12], %12 {strides = array<i32>} : memref<16x256xf32, #tpu.memory_space<vmem>>, vector<16x256xf32>,
    } else {
    }
    %c0 = arith.constant 0 : index
    %c0_1 = arith.constant 0 : index
    %3 = vector.load %arg7[%c0, %c0_1] : memref<16x256xf32, #tpu.memory_space<vmem>>, vector<16x256xf32>
    %c0_2 = arith.constant 0 : index
    %c0_3 = arith.constant 0 : index
    %4 = vector.load %arg3[%c0_2, %c0_3] : memref<16x64xbf16, #tpu.memory_space<vmem>>, vector<16x64xbf16>
    %c0_4 = arith.constant 0 : index
    %c0_5 = arith.constant 0 : index
    %5 = vector.load %arg4[%c0_4, %c0_5] : memref<64x256xbf16, #tpu.memory_space<vmem>>, vector<64x256xbf16>
    %cst = arith.constant dense<0.000000e+00> : vector<16x256xf32>
    %6 = tpu.matmul %4, %5, %cst {dimension_numbers = #tpu.dot_dimension_numbers<[1], [0], [0], [1], [0, 0, 1, 1], [], []>} : vector<16x64xbf16>, vector<64x256xbf16>, vector<16x256xf32> -> vector<16x256xf32>
    %7 = arith.addf %3, %6 : vector<16x256xf32>
    %c0_6 = arith.constant 0 : index
    %c0_7 = arith.constant 0 : index
    %8 = vector.load %arg7[%c0_6, %c0_7] : memref<16x256xf32, #tpu.memory_space<vmem>>, vector<16x256xf32>
    tpu.vector_store %arg7[%c0_6, %c0_7], %7 {strides = array<i32>} : memref<16x256xf32, #tpu.memory_space<vmem>>, vector<16x256xf32>,
    %c0_i32_8 = arith.constant 0 : i32
    %9 = arith.cmpi eq, %arg2, %c0_i32_8 : i32
    %10 = arith.extui %9 : i1 to i32
    %c0_i32_9 = arith.constant 0 : i32
    %11 = arith.cmpi ne, %10, %c0_i32_9 : i32
    scf.if %11 {
      %c0_10 = arith.constant 0 : index
      %c0_11 = arith.constant 0 : index
      %12 = vector.load %arg7[%c0_10, %c0_11] : memref<16x256xf32, #tpu.memory_space<vmem>>, vector<16x256xf32>
      %c0_12 = arith.constant 0 : index
      %c0_13 = arith.constant 0 : index
      %13 = vector.load %arg5[%c0_12, %c0_13] : memref<1x256xf32, #tpu.memory_space<vmem>>, vector<1x256xf32>
      %14 = vector.broadcast %13 : vector<1x256xf32> to vector<16x256xf32>
      %15 = arith.addf %12, %14 : vector<16x256xf32>
      %16 = arith.mulf %15, %15 : vector<16x256xf32>
      %17 = arith.mulf %15, %16 : vector<16x256xf32>
      %cst_14 = arith.constant 4.471500e-02 : f32
      %18 = vector.broadcast %cst_14 : f32 to vector<16x256xf32>
      %19 = arith.mulf %18, %17 : vector<16x256xf32>
      %20 = arith.addf %15, %19 : vector<16x256xf32>
      %cst_15 = arith.constant 0.797884583 : f32
      %21 = vector.broadcast %cst_15 : f32 to vector<16x256xf32>
      %22 = arith.mulf %21, %20 : vector<16x256xf32>
      %23 = math.tanh %22 : vector<16x256xf32>
      %cst_16 = arith.constant 1.000000e+00 : f32
      %24 = vector.broadcast %cst_16 : f32 to vector<16x256xf32>
      %25 = arith.addf %24, %23 : vector<16x256xf32>
      %cst_17 = arith.constant 5.000000e-01 : f32
      %26 = vector.broadcast %cst_17 : f32 to vector<16x256xf32>
      %27 = arith.mulf %26, %25 : vector<16x256xf32>
      %28 = arith.mulf %15, %27 : vector<16x256xf32>
      %29 = arith.truncf %28 : vector<16x256xf32> to vector<16x256xbf16>
      %c0_18 = arith.constant 0 : index
      %c0_19 = arith.constant 0 : index
      %30 = vector.load %arg6[%c0_18, %c0_19] : memref<16x256xbf16, #tpu.memory_space<vmem>>, vector<16x256xbf16>
      tpu.vector_store %arg6[%c0_18, %c0_19], %29 {strides = array<i32>} : memref<16x256xbf16, #tpu.memory_space<vmem>>, vector<16x256xbf16>,
    } else {
    }
    return
  }
  func.func @transform_0(%arg0: i32, %arg1: i32, %arg2: i32) -> (i32, i32) {
    %c0_i32 = arith.constant 0 : i32
    return %arg0, %arg2 : i32, i32
  }
  func.func @transform_1(%arg0: i32, %arg1: i32, %arg2: i32) -> (i32, i32) {
    %c0_i32 = arith.constant 0 : i32
    return %arg2, %arg1 : i32, i32
  }
  func.func @transform_2(%arg0: i32, %arg1: i32, %arg2: i32) -> (i32, i32) {
    %c0_i32 = arith.constant 0 : i32
    %c0_i32_0 = arith.constant 0 : i32
    return %c0_i32, %arg1 : i32, i32
  }
  func.func @transform_3(%arg0: i32, %arg1: i32, %arg2: i32) -> (i32, i32) {
    %c0_i32 = arith.constant 0 : i32
    return %arg0, %arg1 : i32, i32
  }
}

module attributes {stable_mosaic.version = 11 : i64} {
  func.func @_linear_resgate_kernel(%arg0: i32, %arg1: i32, %arg2: i32, %arg3: i32, %arg4: memref<1x8x256xbf16, #tpu.memory_space<vmem>>, %arg5: memref<256x64xbf16, #tpu.memory_space<vmem>>, %arg6: memref<1x64xf32, #tpu.memory_space<vmem>>, %arg7: memref<1x8x64xf32, #tpu.memory_space<vmem>>, %arg8: memref<1x1x64xf32, #tpu.memory_space<vmem>>, %arg9: memref<1x8x64xf32, #tpu.memory_space<vmem>>, %arg10: memref<8x64xf32, #tpu.memory_space<vmem>>) attributes {dimension_semantics = [#tpu.dimension_semantics<parallel>, #tpu.dimension_semantics<parallel>, #tpu.dimension_semantics<parallel>, #tpu.dimension_semantics<arbitrary>], iteration_bounds = array<i64: 2, 1, 1, 1>, scalar_prefetch = 0 : i64, scratch_operands = 1 : i64, tpu.core_type = #tpu.core_type<tc>, window_params = [{transform_indices = @transform_0, window_bounds = array<i64: 1, 8, 256>}, {transform_indices = @transform_1, window_bounds = array<i64: 256, 64>}, {transform_indices = @transform_2, window_bounds = array<i64: 1, 64>}, {transform_indices = @transform_3, window_bounds = array<i64: 1, 8, 64>}, {transform_indices = @transform_4, window_bounds = array<i64: 1, 1, 64>}, {transform_indices = @transform_5, window_bounds = array<i64: 1, 8, 64>}]} {
    %c0_i32 = arith.constant 0 : i32
    %0 = arith.cmpi eq, %arg3, %c0_i32 : i32
    %1 = arith.extui %0 : i1 to i32
    %c0_i32_0 = arith.constant 0 : i32
    %2 = arith.cmpi ne, %1, %c0_i32_0 : i32
    scf.if %2 {
      %cst_11 = arith.constant 0.000000e+00 : f32
      %13 = vector.broadcast %cst_11 : f32 to vector<8x64xf32>
      %c0_12 = arith.constant 0 : index
      %c0_13 = arith.constant 0 : index
      %14 = vector.load %arg10[%c0_12, %c0_13] : memref<8x64xf32, #tpu.memory_space<vmem>>, vector<8x64xf32>
      tpu.vector_store %arg10[%c0_12, %c0_13], %13 {strides = array<i32>} : memref<8x64xf32, #tpu.memory_space<vmem>>, vector<8x64xf32>,
    } else {
    }
    %c0 = arith.constant 0 : index
    %c0_1 = arith.constant 0 : index
    %3 = vector.load %arg10[%c0, %c0_1] : memref<8x64xf32, #tpu.memory_space<vmem>>, vector<8x64xf32>
    %c0_2 = arith.constant 0 : index
    %c0_3 = arith.constant 0 : index
    %c0_4 = arith.constant 0 : index
    %4 = vector.load %arg4[%c0_2, %c0_3, %c0_4] : memref<1x8x256xbf16, #tpu.memory_space<vmem>>, vector<1x8x256xbf16>
    %5 = vector.shape_cast %4 : vector<1x8x256xbf16> to vector<8x256xbf16>
    %c0_5 = arith.constant 0 : index
    %c0_6 = arith.constant 0 : index
    %6 = vector.load %arg5[%c0_5, %c0_6] : memref<256x64xbf16, #tpu.memory_space<vmem>>, vector<256x64xbf16>
    %cst = arith.constant dense<0.000000e+00> : vector<8x64xf32>
    %7 = tpu.matmul %5, %6, %cst {dimension_numbers = #tpu.dot_dimension_numbers<[1], [0], [0], [1], [0, 0, 1, 1], [], []>} : vector<8x256xbf16>, vector<256x64xbf16>, vector<8x64xf32> -> vector<8x64xf32>
    %8 = arith.addf %3, %7 : vector<8x64xf32>
    %c0_7 = arith.constant 0 : index
    %c0_8 = arith.constant 0 : index
    %9 = vector.load %arg10[%c0_7, %c0_8] : memref<8x64xf32, #tpu.memory_space<vmem>>, vector<8x64xf32>
    tpu.vector_store %arg10[%c0_7, %c0_8], %8 {strides = array<i32>} : memref<8x64xf32, #tpu.memory_space<vmem>>, vector<8x64xf32>,
    %c0_i32_9 = arith.constant 0 : i32
    %10 = arith.cmpi eq, %arg3, %c0_i32_9 : i32
    %11 = arith.extui %10 : i1 to i32
    %c0_i32_10 = arith.constant 0 : i32
    %12 = arith.cmpi ne, %11, %c0_i32_10 : i32
    scf.if %12 {
      %c0_11 = arith.constant 0 : index
      %c0_12 = arith.constant 0 : index
      %13 = vector.load %arg10[%c0_11, %c0_12] : memref<8x64xf32, #tpu.memory_space<vmem>>, vector<8x64xf32>
      %c0_13 = arith.constant 0 : index
      %c0_14 = arith.constant 0 : index
      %14 = vector.load %arg6[%c0_13, %c0_14] : memref<1x64xf32, #tpu.memory_space<vmem>>, vector<1x64xf32>
      %15 = vector.broadcast %14 : vector<1x64xf32> to vector<8x64xf32>
      %16 = arith.addf %13, %15 : vector<8x64xf32>
      %c0_15 = arith.constant 0 : index
      %c0_16 = arith.constant 0 : index
      %c0_17 = arith.constant 0 : index
      %17 = vector.load %arg7[%c0_15, %c0_16, %c0_17] : memref<1x8x64xf32, #tpu.memory_space<vmem>>, vector<1x8x64xf32>
      %18 = vector.shape_cast %17 : vector<1x8x64xf32> to vector<8x64xf32>
      %c0_18 = arith.constant 0 : index
      %c0_19 = arith.constant 0 : index
      %c0_20 = arith.constant 0 : index
      %19 = vector.load %arg8[%c0_18, %c0_19, %c0_20] : memref<1x1x64xf32, #tpu.memory_space<vmem>>, vector<1x1x64xf32>
      %20 = vector.shape_cast %19 : vector<1x1x64xf32> to vector<1x64xf32>
      %21 = vector.broadcast %20 : vector<1x64xf32> to vector<8x64xf32>
      %22 = arith.mulf %21, %16 : vector<8x64xf32>
      %23 = arith.addf %18, %22 : vector<8x64xf32>
      %24 = vector.shape_cast %23 : vector<8x64xf32> to vector<1x8x64xf32>
      %c0_21 = arith.constant 0 : index
      %c0_22 = arith.constant 0 : index
      %c0_23 = arith.constant 0 : index
      %25 = vector.load %arg9[%c0_21, %c0_22, %c0_23] : memref<1x8x64xf32, #tpu.memory_space<vmem>>, vector<1x8x64xf32>
      tpu.vector_store %arg9[%c0_21, %c0_22, %c0_23], %24 {strides = array<i32>} : memref<1x8x64xf32, #tpu.memory_space<vmem>>, vector<1x8x64xf32>,
    } else {
    }
    return
  }
  func.func @transform_0(%arg0: i32, %arg1: i32, %arg2: i32, %arg3: i32) -> (i32, i32, i32) {
    %c0_i32 = arith.constant 0 : i32
    return %arg0, %arg1, %arg3 : i32, i32, i32
  }
  func.func @transform_1(%arg0: i32, %arg1: i32, %arg2: i32, %arg3: i32) -> (i32, i32) {
    %c0_i32 = arith.constant 0 : i32
    return %arg3, %arg2 : i32, i32
  }
  func.func @transform_2(%arg0: i32, %arg1: i32, %arg2: i32, %arg3: i32) -> (i32, i32) {
    %c0_i32 = arith.constant 0 : i32
    %c0_i32_0 = arith.constant 0 : i32
    return %c0_i32, %arg2 : i32, i32
  }
  func.func @transform_3(%arg0: i32, %arg1: i32, %arg2: i32, %arg3: i32) -> (i32, i32, i32) {
    %c0_i32 = arith.constant 0 : i32
    return %arg0, %arg1, %arg2 : i32, i32, i32
  }
  func.func @transform_4(%arg0: i32, %arg1: i32, %arg2: i32, %arg3: i32) -> (i32, i32, i32) {
    %c0_i32 = arith.constant 0 : i32
    %c0_i32_0 = arith.constant 0 : i32
    return %arg0, %c0_i32, %arg2 : i32, i32, i32
  }
  func.func @transform_5(%arg0: i32, %arg1: i32, %arg2: i32, %arg3: i32) -> (i32, i32, i32) {
    %c0_i32 = arith.constant 0 : i32
    return %arg0, %arg1, %arg2 : i32, i32, i32
  }
}

module attributes {stable_mosaic.version = 11 : i64} {
  func.func @_linear_resgate_kernel(%arg0: i32, %arg1: i32, %arg2: i32, %arg3: i32, %arg4: memref<1x16x256xbf16, #tpu.memory_space<vmem>>, %arg5: memref<256x64xbf16, #tpu.memory_space<vmem>>, %arg6: memref<1x64xf32, #tpu.memory_space<vmem>>, %arg7: memref<1x16x64xf32, #tpu.memory_space<vmem>>, %arg8: memref<1x1x64xf32, #tpu.memory_space<vmem>>, %arg9: memref<1x16x64xf32, #tpu.memory_space<vmem>>, %arg10: memref<16x64xf32, #tpu.memory_space<vmem>>) attributes {dimension_semantics = [#tpu.dimension_semantics<parallel>, #tpu.dimension_semantics<parallel>, #tpu.dimension_semantics<parallel>, #tpu.dimension_semantics<arbitrary>], iteration_bounds = array<i64: 2, 1, 1, 1>, scalar_prefetch = 0 : i64, scratch_operands = 1 : i64, tpu.core_type = #tpu.core_type<tc>, window_params = [{transform_indices = @transform_0, window_bounds = array<i64: 1, 16, 256>}, {transform_indices = @transform_1, window_bounds = array<i64: 256, 64>}, {transform_indices = @transform_2, window_bounds = array<i64: 1, 64>}, {transform_indices = @transform_3, window_bounds = array<i64: 1, 16, 64>}, {transform_indices = @transform_4, window_bounds = array<i64: 1, 1, 64>}, {transform_indices = @transform_5, window_bounds = array<i64: 1, 16, 64>}]} {
    %c0_i32 = arith.constant 0 : i32
    %0 = arith.cmpi eq, %arg3, %c0_i32 : i32
    %1 = arith.extui %0 : i1 to i32
    %c0_i32_0 = arith.constant 0 : i32
    %2 = arith.cmpi ne, %1, %c0_i32_0 : i32
    scf.if %2 {
      %cst_11 = arith.constant 0.000000e+00 : f32
      %13 = vector.broadcast %cst_11 : f32 to vector<16x64xf32>
      %c0_12 = arith.constant 0 : index
      %c0_13 = arith.constant 0 : index
      %14 = vector.load %arg10[%c0_12, %c0_13] : memref<16x64xf32, #tpu.memory_space<vmem>>, vector<16x64xf32>
      tpu.vector_store %arg10[%c0_12, %c0_13], %13 {strides = array<i32>} : memref<16x64xf32, #tpu.memory_space<vmem>>, vector<16x64xf32>,
    } else {
    }
    %c0 = arith.constant 0 : index
    %c0_1 = arith.constant 0 : index
    %3 = vector.load %arg10[%c0, %c0_1] : memref<16x64xf32, #tpu.memory_space<vmem>>, vector<16x64xf32>
    %c0_2 = arith.constant 0 : index
    %c0_3 = arith.constant 0 : index
    %c0_4 = arith.constant 0 : index
    %4 = vector.load %arg4[%c0_2, %c0_3, %c0_4] : memref<1x16x256xbf16, #tpu.memory_space<vmem>>, vector<1x16x256xbf16>
    %5 = vector.shape_cast %4 : vector<1x16x256xbf16> to vector<16x256xbf16>
    %c0_5 = arith.constant 0 : index
    %c0_6 = arith.constant 0 : index
    %6 = vector.load %arg5[%c0_5, %c0_6] : memref<256x64xbf16, #tpu.memory_space<vmem>>, vector<256x64xbf16>
    %cst = arith.constant dense<0.000000e+00> : vector<16x64xf32>
    %7 = tpu.matmul %5, %6, %cst {dimension_numbers = #tpu.dot_dimension_numbers<[1], [0], [0], [1], [0, 0, 1, 1], [], []>} : vector<16x256xbf16>, vector<256x64xbf16>, vector<16x64xf32> -> vector<16x64xf32>
    %8 = arith.addf %3, %7 : vector<16x64xf32>
    %c0_7 = arith.constant 0 : index
    %c0_8 = arith.constant 0 : index
    %9 = vector.load %arg10[%c0_7, %c0_8] : memref<16x64xf32, #tpu.memory_space<vmem>>, vector<16x64xf32>
    tpu.vector_store %arg10[%c0_7, %c0_8], %8 {strides = array<i32>} : memref<16x64xf32, #tpu.memory_space<vmem>>, vector<16x64xf32>,
    %c0_i32_9 = arith.constant 0 : i32
    %10 = arith.cmpi eq, %arg3, %c0_i32_9 : i32
    %11 = arith.extui %10 : i1 to i32
    %c0_i32_10 = arith.constant 0 : i32
    %12 = arith.cmpi ne, %11, %c0_i32_10 : i32
    scf.if %12 {
      %c0_11 = arith.constant 0 : index
      %c0_12 = arith.constant 0 : index
      %13 = vector.load %arg10[%c0_11, %c0_12] : memref<16x64xf32, #tpu.memory_space<vmem>>, vector<16x64xf32>
      %c0_13 = arith.constant 0 : index
      %c0_14 = arith.constant 0 : index
      %14 = vector.load %arg6[%c0_13, %c0_14] : memref<1x64xf32, #tpu.memory_space<vmem>>, vector<1x64xf32>
      %15 = vector.broadcast %14 : vector<1x64xf32> to vector<16x64xf32>
      %16 = arith.addf %13, %15 : vector<16x64xf32>
      %c0_15 = arith.constant 0 : index
      %c0_16 = arith.constant 0 : index
      %c0_17 = arith.constant 0 : index
      %17 = vector.load %arg7[%c0_15, %c0_16, %c0_17] : memref<1x16x64xf32, #tpu.memory_space<vmem>>, vector<1x16x64xf32>
      %18 = vector.shape_cast %17 : vector<1x16x64xf32> to vector<16x64xf32>
      %c0_18 = arith.constant 0 : index
      %c0_19 = arith.constant 0 : index
      %c0_20 = arith.constant 0 : index
      %19 = vector.load %arg8[%c0_18, %c0_19, %c0_20] : memref<1x1x64xf32, #tpu.memory_space<vmem>>, vector<1x1x64xf32>
      %20 = vector.shape_cast %19 : vector<1x1x64xf32> to vector<1x64xf32>
      %21 = vector.broadcast %20 : vector<1x64xf32> to vector<16x64xf32>
      %22 = arith.mulf %21, %16 : vector<16x64xf32>
      %23 = arith.addf %18, %22 : vector<16x64xf32>
      %24 = vector.shape_cast %23 : vector<16x64xf32> to vector<1x16x64xf32>
      %c0_21 = arith.constant 0 : index
      %c0_22 = arith.constant 0 : index
      %c0_23 = arith.constant 0 : index
      %25 = vector.load %arg9[%c0_21, %c0_22, %c0_23] : memref<1x16x64xf32, #tpu.memory_space<vmem>>, vector<1x16x64xf32>
      tpu.vector_store %arg9[%c0_21, %c0_22, %c0_23], %24 {strides = array<i32>} : memref<1x16x64xf32, #tpu.memory_space<vmem>>, vector<1x16x64xf32>,
    } else {
    }
    return
  }
  func.func @transform_0(%arg0: i32, %arg1: i32, %arg2: i32, %arg3: i32) -> (i32, i32, i32) {
    %c0_i32 = arith.constant 0 : i32
    return %arg0, %arg1, %arg3 : i32, i32, i32
  }
  func.func @transform_1(%arg0: i32, %arg1: i32, %arg2: i32, %arg3: i32) -> (i32, i32) {
    %c0_i32 = arith.constant 0 : i32
    return %arg3, %arg2 : i32, i32
  }
  func.func @transform_2(%arg0: i32, %arg1: i32, %arg2: i32, %arg3: i32) -> (i32, i32) {
    %c0_i32 = arith.constant 0 : i32
    %c0_i32_0 = arith.constant 0 : i32
    return %c0_i32, %arg2 : i32, i32
  }
  func.func @transform_3(%arg0: i32, %arg1: i32, %arg2: i32, %arg3: i32) -> (i32, i32, i32) {
    %c0_i32 = arith.constant 0 : i32
    return %arg0, %arg1, %arg2 : i32, i32, i32
  }
  func.func @transform_4(%arg0: i32, %arg1: i32, %arg2: i32, %arg3: i32) -> (i32, i32, i32) {
    %c0_i32 = arith.constant 0 : i32
    %c0_i32_0 = arith.constant 0 : i32
    return %arg0, %c0_i32, %arg2 : i32, i32, i32
  }
  func.func @transform_5(%arg0: i32, %arg1: i32, %arg2: i32, %arg3: i32) -> (i32, i32, i32) {
    %c0_i32 = arith.constant 0 : i32
    return %arg0, %arg1, %arg2 : i32, i32, i32
  }
}

module attributes {stable_mosaic.version = 11 : i64} {
  func.func @_linear_kernel(%arg0: i32, %arg1: i32, %arg2: i32, %arg3: memref<32x64xbf16, #tpu.memory_space<vmem>>, %arg4: memref<64x256xbf16, #tpu.memory_space<vmem>>, %arg5: memref<1x256xf32, #tpu.memory_space<vmem>>, %arg6: memref<32x256xbf16, #tpu.memory_space<vmem>>, %arg7: memref<32x256xf32, #tpu.memory_space<vmem>>) attributes {dimension_semantics = [#tpu.dimension_semantics<parallel>, #tpu.dimension_semantics<parallel>, #tpu.dimension_semantics<arbitrary>], iteration_bounds = array<i64: 1, 1, 1>, scalar_prefetch = 0 : i64, scratch_operands = 1 : i64, tpu.core_type = #tpu.core_type<tc>, window_params = [{transform_indices = @transform_0, window_bounds = array<i64: 32, 64>}, {transform_indices = @transform_1, window_bounds = array<i64: 64, 256>}, {transform_indices = @transform_2, window_bounds = array<i64: 1, 256>}, {transform_indices = @transform_3, window_bounds = array<i64: 32, 256>}]} {
    %c0_i32 = arith.constant 0 : i32
    %0 = arith.cmpi eq, %arg2, %c0_i32 : i32
    %1 = arith.extui %0 : i1 to i32
    %c0_i32_0 = arith.constant 0 : i32
    %2 = arith.cmpi ne, %1, %c0_i32_0 : i32
    scf.if %2 {
      %cst_10 = arith.constant 0.000000e+00 : f32
      %12 = vector.broadcast %cst_10 : f32 to vector<32x256xf32>
      %c0_11 = arith.constant 0 : index
      %c0_12 = arith.constant 0 : index
      %13 = vector.load %arg7[%c0_11, %c0_12] : memref<32x256xf32, #tpu.memory_space<vmem>>, vector<32x256xf32>
      tpu.vector_store %arg7[%c0_11, %c0_12], %12 {strides = array<i32>} : memref<32x256xf32, #tpu.memory_space<vmem>>, vector<32x256xf32>,
    } else {
    }
    %c0 = arith.constant 0 : index
    %c0_1 = arith.constant 0 : index
    %3 = vector.load %arg7[%c0, %c0_1] : memref<32x256xf32, #tpu.memory_space<vmem>>, vector<32x256xf32>
    %c0_2 = arith.constant 0 : index
    %c0_3 = arith.constant 0 : index
    %4 = vector.load %arg3[%c0_2, %c0_3] : memref<32x64xbf16, #tpu.memory_space<vmem>>, vector<32x64xbf16>
    %c0_4 = arith.constant 0 : index
    %c0_5 = arith.constant 0 : index
    %5 = vector.load %arg4[%c0_4, %c0_5] : memref<64x256xbf16, #tpu.memory_space<vmem>>, vector<64x256xbf16>
    %cst = arith.constant dense<0.000000e+00> : vector<32x256xf32>
    %6 = tpu.matmul %4, %5, %cst {dimension_numbers = #tpu.dot_dimension_numbers<[1], [0], [0], [1], [0, 0, 1, 1], [], []>} : vector<32x64xbf16>, vector<64x256xbf16>, vector<32x256xf32> -> vector<32x256xf32>
    %7 = arith.addf %3, %6 : vector<32x256xf32>
    %c0_6 = arith.constant 0 : index
    %c0_7 = arith.constant 0 : index
    %8 = vector.load %arg7[%c0_6, %c0_7] : memref<32x256xf32, #tpu.memory_space<vmem>>, vector<32x256xf32>
    tpu.vector_store %arg7[%c0_6, %c0_7], %7 {strides = array<i32>} : memref<32x256xf32, #tpu.memory_space<vmem>>, vector<32x256xf32>,
    %c0_i32_8 = arith.constant 0 : i32
    %9 = arith.cmpi eq, %arg2, %c0_i32_8 : i32
    %10 = arith.extui %9 : i1 to i32
    %c0_i32_9 = arith.constant 0 : i32
    %11 = arith.cmpi ne, %10, %c0_i32_9 : i32
    scf.if %11 {
      %c0_10 = arith.constant 0 : index
      %c0_11 = arith.constant 0 : index
      %12 = vector.load %arg7[%c0_10, %c0_11] : memref<32x256xf32, #tpu.memory_space<vmem>>, vector<32x256xf32>
      %c0_12 = arith.constant 0 : index
      %c0_13 = arith.constant 0 : index
      %13 = vector.load %arg5[%c0_12, %c0_13] : memref<1x256xf32, #tpu.memory_space<vmem>>, vector<1x256xf32>
      %14 = vector.broadcast %13 : vector<1x256xf32> to vector<32x256xf32>
      %15 = arith.addf %12, %14 : vector<32x256xf32>
      %16 = arith.mulf %15, %15 : vector<32x256xf32>
      %17 = arith.mulf %15, %16 : vector<32x256xf32>
      %cst_14 = arith.constant 4.471500e-02 : f32
      %18 = vector.broadcast %cst_14 : f32 to vector<32x256xf32>
      %19 = arith.mulf %18, %17 : vector<32x256xf32>
      %20 = arith.addf %15, %19 : vector<32x256xf32>
      %cst_15 = arith.constant 0.797884583 : f32
      %21 = vector.broadcast %cst_15 : f32 to vector<32x256xf32>
      %22 = arith.mulf %21, %20 : vector<32x256xf32>
      %23 = math.tanh %22 : vector<32x256xf32>
      %cst_16 = arith.constant 1.000000e+00 : f32
      %24 = vector.broadcast %cst_16 : f32 to vector<32x256xf32>
      %25 = arith.addf %24, %23 : vector<32x256xf32>
      %cst_17 = arith.constant 5.000000e-01 : f32
      %26 = vector.broadcast %cst_17 : f32 to vector<32x256xf32>
      %27 = arith.mulf %26, %25 : vector<32x256xf32>
      %28 = arith.mulf %15, %27 : vector<32x256xf32>
      %29 = arith.truncf %28 : vector<32x256xf32> to vector<32x256xbf16>
      %c0_18 = arith.constant 0 : index
      %c0_19 = arith.constant 0 : index
      %30 = vector.load %arg6[%c0_18, %c0_19] : memref<32x256xbf16, #tpu.memory_space<vmem>>, vector<32x256xbf16>
      tpu.vector_store %arg6[%c0_18, %c0_19], %29 {strides = array<i32>} : memref<32x256xbf16, #tpu.memory_space<vmem>>, vector<32x256xbf16>,
    } else {
    }
    return
  }
  func.func @transform_0(%arg0: i32, %arg1: i32, %arg2: i32) -> (i32, i32) {
    %c0_i32 = arith.constant 0 : i32
    return %arg0, %arg2 : i32, i32
  }
  func.func @transform_1(%arg0: i32, %arg1: i32, %arg2: i32) -> (i32, i32) {
    %c0_i32 = arith.constant 0 : i32
    return %arg2, %arg1 : i32, i32
  }
  func.func @transform_2(%arg0: i32, %arg1: i32, %arg2: i32) -> (i32, i32) {
    %c0_i32 = arith.constant 0 : i32
    %c0_i32_0 = arith.constant 0 : i32
    return %c0_i32, %arg1 : i32, i32
  }
  func.func @transform_3(%arg0: i32, %arg1: i32, %arg2: i32) -> (i32, i32) {
    %c0_i32 = arith.constant 0 : i32
    return %arg0, %arg1 : i32, i32
  }
}

module attributes {stable_mosaic.version = 11 : i64} {
  func.func @_linear_resgate_kernel(%arg0: i32, %arg1: i32, %arg2: i32, %arg3: i32, %arg4: memref<1x16x64xbf16, #tpu.memory_space<vmem>>, %arg5: memref<64x64xbf16, #tpu.memory_space<vmem>>, %arg6: memref<1x64xf32, #tpu.memory_space<vmem>>, %arg7: memref<1x16x64xf32, #tpu.memory_space<vmem>>, %arg8: memref<1x1x64xf32, #tpu.memory_space<vmem>>, %arg9: memref<1x16x64xf32, #tpu.memory_space<vmem>>, %arg10: memref<16x64xf32, #tpu.memory_space<vmem>>) attributes {dimension_semantics = [#tpu.dimension_semantics<parallel>, #tpu.dimension_semantics<parallel>, #tpu.dimension_semantics<parallel>, #tpu.dimension_semantics<arbitrary>], iteration_bounds = array<i64: 2, 1, 1, 1>, scalar_prefetch = 0 : i64, scratch_operands = 1 : i64, tpu.core_type = #tpu.core_type<tc>, window_params = [{transform_indices = @transform_0, window_bounds = array<i64: 1, 16, 64>}, {transform_indices = @transform_1, window_bounds = array<i64: 64, 64>}, {transform_indices = @transform_2, window_bounds = array<i64: 1, 64>}, {transform_indices = @transform_3, window_bounds = array<i64: 1, 16, 64>}, {transform_indices = @transform_4, window_bounds = array<i64: 1, 1, 64>}, {transform_indices = @transform_5, window_bounds = array<i64: 1, 16, 64>}]} {
    %c0_i32 = arith.constant 0 : i32
    %0 = arith.cmpi eq, %arg3, %c0_i32 : i32
    %1 = arith.extui %0 : i1 to i32
    %c0_i32_0 = arith.constant 0 : i32
    %2 = arith.cmpi ne, %1, %c0_i32_0 : i32
    scf.if %2 {
      %cst_11 = arith.constant 0.000000e+00 : f32
      %13 = vector.broadcast %cst_11 : f32 to vector<16x64xf32>
      %c0_12 = arith.constant 0 : index
      %c0_13 = arith.constant 0 : index
      %14 = vector.load %arg10[%c0_12, %c0_13] : memref<16x64xf32, #tpu.memory_space<vmem>>, vector<16x64xf32>
      tpu.vector_store %arg10[%c0_12, %c0_13], %13 {strides = array<i32>} : memref<16x64xf32, #tpu.memory_space<vmem>>, vector<16x64xf32>,
    } else {
    }
    %c0 = arith.constant 0 : index
    %c0_1 = arith.constant 0 : index
    %3 = vector.load %arg10[%c0, %c0_1] : memref<16x64xf32, #tpu.memory_space<vmem>>, vector<16x64xf32>
    %c0_2 = arith.constant 0 : index
    %c0_3 = arith.constant 0 : index
    %c0_4 = arith.constant 0 : index
    %4 = vector.load %arg4[%c0_2, %c0_3, %c0_4] : memref<1x16x64xbf16, #tpu.memory_space<vmem>>, vector<1x16x64xbf16>
    %5 = vector.shape_cast %4 : vector<1x16x64xbf16> to vector<16x64xbf16>
    %c0_5 = arith.constant 0 : index
    %c0_6 = arith.constant 0 : index
    %6 = vector.load %arg5[%c0_5, %c0_6] : memref<64x64xbf16, #tpu.memory_space<vmem>>, vector<64x64xbf16>
    %cst = arith.constant dense<0.000000e+00> : vector<16x64xf32>
    %7 = tpu.matmul %5, %6, %cst {dimension_numbers = #tpu.dot_dimension_numbers<[1], [0], [0], [1], [0, 0, 1, 1], [], []>} : vector<16x64xbf16>, vector<64x64xbf16>, vector<16x64xf32> -> vector<16x64xf32>
    %8 = arith.addf %3, %7 : vector<16x64xf32>
    %c0_7 = arith.constant 0 : index
    %c0_8 = arith.constant 0 : index
    %9 = vector.load %arg10[%c0_7, %c0_8] : memref<16x64xf32, #tpu.memory_space<vmem>>, vector<16x64xf32>
    tpu.vector_store %arg10[%c0_7, %c0_8], %8 {strides = array<i32>} : memref<16x64xf32, #tpu.memory_space<vmem>>, vector<16x64xf32>,
    %c0_i32_9 = arith.constant 0 : i32
    %10 = arith.cmpi eq, %arg3, %c0_i32_9 : i32
    %11 = arith.extui %10 : i1 to i32
    %c0_i32_10 = arith.constant 0 : i32
    %12 = arith.cmpi ne, %11, %c0_i32_10 : i32
    scf.if %12 {
      %c0_11 = arith.constant 0 : index
      %c0_12 = arith.constant 0 : index
      %13 = vector.load %arg10[%c0_11, %c0_12] : memref<16x64xf32, #tpu.memory_space<vmem>>, vector<16x64xf32>
      %c0_13 = arith.constant 0 : index
      %c0_14 = arith.constant 0 : index
      %14 = vector.load %arg6[%c0_13, %c0_14] : memref<1x64xf32, #tpu.memory_space<vmem>>, vector<1x64xf32>
      %15 = vector.broadcast %14 : vector<1x64xf32> to vector<16x64xf32>
      %16 = arith.addf %13, %15 : vector<16x64xf32>
      %c0_15 = arith.constant 0 : index
      %c0_16 = arith.constant 0 : index
      %c0_17 = arith.constant 0 : index
      %17 = vector.load %arg7[%c0_15, %c0_16, %c0_17] : memref<1x16x64xf32, #tpu.memory_space<vmem>>, vector<1x16x64xf32>
      %18 = vector.shape_cast %17 : vector<1x16x64xf32> to vector<16x64xf32>
      %c0_18 = arith.constant 0 : index
      %c0_19 = arith.constant 0 : index
      %c0_20 = arith.constant 0 : index
      %19 = vector.load %arg8[%c0_18, %c0_19, %c0_20] : memref<1x1x64xf32, #tpu.memory_space<vmem>>, vector<1x1x64xf32>
      %20 = vector.shape_cast %19 : vector<1x1x64xf32> to vector<1x64xf32>
      %21 = vector.broadcast %20 : vector<1x64xf32> to vector<16x64xf32>
      %22 = arith.mulf %21, %16 : vector<16x64xf32>
      %23 = arith.addf %18, %22 : vector<16x64xf32>
      %24 = vector.shape_cast %23 : vector<16x64xf32> to vector<1x16x64xf32>
      %c0_21 = arith.constant 0 : index
      %c0_22 = arith.constant 0 : index
      %c0_23 = arith.constant 0 : index
      %25 = vector.load %arg9[%c0_21, %c0_22, %c0_23] : memref<1x16x64xf32, #tpu.memory_space<vmem>>, vector<1x16x64xf32>
      tpu.vector_store %arg9[%c0_21, %c0_22, %c0_23], %24 {strides = array<i32>} : memref<1x16x64xf32, #tpu.memory_space<vmem>>, vector<1x16x64xf32>,
    } else {
    }
    return
  }
  func.func @transform_0(%arg0: i32, %arg1: i32, %arg2: i32, %arg3: i32) -> (i32, i32, i32) {
    %c0_i32 = arith.constant 0 : i32
    return %arg0, %arg1, %arg3 : i32, i32, i32
  }
  func.func @transform_1(%arg0: i32, %arg1: i32, %arg2: i32, %arg3: i32) -> (i32, i32) {
    %c0_i32 = arith.constant 0 : i32
    return %arg3, %arg2 : i32, i32
  }
  func.func @transform_2(%arg0: i32, %arg1: i32, %arg2: i32, %arg3: i32) -> (i32, i32) {
    %c0_i32 = arith.constant 0 : i32
    %c0_i32_0 = arith.constant 0 : i32
    return %c0_i32, %arg2 : i32, i32
  }
  func.func @transform_3(%arg0: i32, %arg1: i32, %arg2: i32, %arg3: i32) -> (i32, i32, i32) {
    %c0_i32 = arith.constant 0 : i32
    return %arg0, %arg1, %arg2 : i32, i32, i32
  }
  func.func @transform_4(%arg0: i32, %arg1: i32, %arg2: i32, %arg3: i32) -> (i32, i32, i32) {
    %c0_i32 = arith.constant 0 : i32
    %c0_i32_0 = arith.constant 0 : i32
    return %arg0, %c0_i32, %arg2 : i32, i32, i32
  }
  func.func @transform_5(%arg0: i32, %arg1: i32, %arg2: i32, %arg3: i32) -> (i32, i32, i32) {
    %c0_i32 = arith.constant 0 : i32
    return %arg0, %arg1, %arg2 : i32, i32, i32
  }
}

module attributes {stable_mosaic.version = 11 : i64} {
  func.func @_ln_mod_kernel(%arg0: i32, %arg1: i32, %arg2: memref<1x24x64xf32, #tpu.memory_space<vmem>>, %arg3: memref<1x1x64xf32, #tpu.memory_space<vmem>>, %arg4: memref<1x1x64xf32, #tpu.memory_space<vmem>>, %arg5: memref<1x24x64xbf16, #tpu.memory_space<vmem>>) attributes {dimension_semantics = [#tpu.dimension_semantics<parallel>, #tpu.dimension_semantics<parallel>], iteration_bounds = array<i64: 2, 1>, scalar_prefetch = 0 : i64, scratch_operands = 0 : i64, tpu.core_type = #tpu.core_type<tc>, window_params = [{transform_indices = @transform_0, window_bounds = array<i64: 1, 24, 64>}, {transform_indices = @transform_1, window_bounds = array<i64: 1, 1, 64>}, {transform_indices = @transform_2, window_bounds = array<i64: 1, 1, 64>}, {transform_indices = @transform_3, window_bounds = array<i64: 1, 24, 64>}]} {
    %c0 = arith.constant 0 : index
    %c0_0 = arith.constant 0 : index
    %c0_1 = arith.constant 0 : index
    %0 = vector.load %arg2[%c0, %c0_0, %c0_1] : memref<1x24x64xf32, #tpu.memory_space<vmem>>, vector<1x24x64xf32>
    %cst = arith.constant dense<0.000000e+00> : vector<1x24xf32>
    %1 = vector.multi_reduction <add>, %0, %cst [2] : vector<1x24x64xf32> to vector<1x24xf32>
    %2 = vector.shape_cast %1 : vector<1x24xf32> to vector<1x24x1xf32>
    %cst_2 = arith.constant 6.400000e+01 : f32
    %3 = vector.broadcast %cst_2 : f32 to vector<1x24x1xf32>
    %4 = arith.divf %2, %3 : vector<1x24x1xf32>
    %5 = vector.broadcast %4 : vector<1x24x1xf32> to vector<1x24x64xf32>
    %6 = arith.subf %0, %5 : vector<1x24x64xf32>
    %7 = arith.mulf %6, %6 : vector<1x24x64xf32>
    %cst_3 = arith.constant dense<0.000000e+00> : vector<1x24xf32>
    %8 = vector.multi_reduction <add>, %7, %cst_3 [2] : vector<1x24x64xf32> to vector<1x24xf32>
    %9 = vector.shape_cast %8 : vector<1x24xf32> to vector<1x24x1xf32>
    %cst_4 = arith.constant 6.400000e+01 : f32
    %10 = vector.broadcast %cst_4 : f32 to vector<1x24x1xf32>
    %11 = arith.divf %9, %10 : vector<1x24x1xf32>
    %cst_5 = arith.constant 9.99999997E-7 : f32
    %12 = vector.broadcast %cst_5 : f32 to vector<1x24x1xf32>
    %13 = arith.addf %11, %12 : vector<1x24x1xf32>
    %14 = math.rsqrt %13 : vector<1x24x1xf32>
    %15 = vector.broadcast %14 : vector<1x24x1xf32> to vector<1x24x64xf32>
    %16 = arith.mulf %6, %15 : vector<1x24x64xf32>
    %c0_6 = arith.constant 0 : index
    %c0_7 = arith.constant 0 : index
    %c0_8 = arith.constant 0 : index
    %17 = vector.load %arg3[%c0_6, %c0_7, %c0_8] : memref<1x1x64xf32, #tpu.memory_space<vmem>>, vector<1x1x64xf32>
    %cst_9 = arith.constant 1.000000e+00 : f32
    %18 = vector.broadcast %cst_9 : f32 to vector<1x1x64xf32>
    %19 = arith.addf %18, %17 : vector<1x1x64xf32>
    %20 = vector.broadcast %19 : vector<1x1x64xf32> to vector<1x24x64xf32>
    %21 = arith.mulf %20, %16 : vector<1x24x64xf32>
    %c0_10 = arith.constant 0 : index
    %c0_11 = arith.constant 0 : index
    %c0_12 = arith.constant 0 : index
    %22 = vector.load %arg4[%c0_10, %c0_11, %c0_12] : memref<1x1x64xf32, #tpu.memory_space<vmem>>, vector<1x1x64xf32>
    %23 = vector.broadcast %22 : vector<1x1x64xf32> to vector<1x24x64xf32>
    %24 = arith.addf %21, %23 : vector<1x24x64xf32>
    %25 = arith.truncf %24 : vector<1x24x64xf32> to vector<1x24x64xbf16>
    %c0_13 = arith.constant 0 : index
    %c0_14 = arith.constant 0 : index
    %c0_15 = arith.constant 0 : index
    %26 = vector.load %arg5[%c0_13, %c0_14, %c0_15] : memref<1x24x64xbf16, #tpu.memory_space<vmem>>, vector<1x24x64xbf16>
    tpu.vector_store %arg5[%c0_13, %c0_14, %c0_15], %25 {strides = array<i32>} : memref<1x24x64xbf16, #tpu.memory_space<vmem>>, vector<1x24x64xbf16>,
    return
  }
  func.func @transform_0(%arg0: i32, %arg1: i32) -> (i32, i32, i32) {
    %c0_i32 = arith.constant 0 : i32
    %c0_i32_0 = arith.constant 0 : i32
    return %arg0, %arg1, %c0_i32 : i32, i32, i32
  }
  func.func @transform_1(%arg0: i32, %arg1: i32) -> (i32, i32, i32) {
    %c0_i32 = arith.constant 0 : i32
    %c0_i32_0 = arith.constant 0 : i32
    %c0_i32_1 = arith.constant 0 : i32
    return %arg0, %c0_i32, %c0_i32_0 : i32, i32, i32
  }
  func.func @transform_2(%arg0: i32, %arg1: i32) -> (i32, i32, i32) {
    %c0_i32 = arith.constant 0 : i32
    %c0_i32_0 = arith.constant 0 : i32
    %c0_i32_1 = arith.constant 0 : i32
    return %arg0, %c0_i32, %c0_i32_0 : i32, i32, i32
  }
  func.func @transform_3(%arg0: i32, %arg1: i32) -> (i32, i32, i32) {
    %c0_i32 = arith.constant 0 : i32
    %c0_i32_0 = arith.constant 0 : i32
    return %arg0, %arg1, %c0_i32 : i32, i32, i32
  }
}

module attributes {stable_mosaic.version = 11 : i64} {
  func.func @_linear_kernel(%arg0: i32, %arg1: i32, %arg2: i32, %arg3: memref<48x64xbf16, #tpu.memory_space<vmem>>, %arg4: memref<64x192xbf16, #tpu.memory_space<vmem>>, %arg5: memref<1x192xf32, #tpu.memory_space<vmem>>, %arg6: memref<48x192xbf16, #tpu.memory_space<vmem>>, %arg7: memref<48x192xf32, #tpu.memory_space<vmem>>) attributes {dimension_semantics = [#tpu.dimension_semantics<parallel>, #tpu.dimension_semantics<parallel>, #tpu.dimension_semantics<arbitrary>], iteration_bounds = array<i64: 1, 1, 1>, scalar_prefetch = 0 : i64, scratch_operands = 1 : i64, tpu.core_type = #tpu.core_type<tc>, window_params = [{transform_indices = @transform_0, window_bounds = array<i64: 48, 64>}, {transform_indices = @transform_1, window_bounds = array<i64: 64, 192>}, {transform_indices = @transform_2, window_bounds = array<i64: 1, 192>}, {transform_indices = @transform_3, window_bounds = array<i64: 48, 192>}]} {
    %c0_i32 = arith.constant 0 : i32
    %0 = arith.cmpi eq, %arg2, %c0_i32 : i32
    %1 = arith.extui %0 : i1 to i32
    %c0_i32_0 = arith.constant 0 : i32
    %2 = arith.cmpi ne, %1, %c0_i32_0 : i32
    scf.if %2 {
      %cst_10 = arith.constant 0.000000e+00 : f32
      %12 = vector.broadcast %cst_10 : f32 to vector<48x192xf32>
      %c0_11 = arith.constant 0 : index
      %c0_12 = arith.constant 0 : index
      %13 = vector.load %arg7[%c0_11, %c0_12] : memref<48x192xf32, #tpu.memory_space<vmem>>, vector<48x192xf32>
      tpu.vector_store %arg7[%c0_11, %c0_12], %12 {strides = array<i32>} : memref<48x192xf32, #tpu.memory_space<vmem>>, vector<48x192xf32>,
    } else {
    }
    %c0 = arith.constant 0 : index
    %c0_1 = arith.constant 0 : index
    %3 = vector.load %arg7[%c0, %c0_1] : memref<48x192xf32, #tpu.memory_space<vmem>>, vector<48x192xf32>
    %c0_2 = arith.constant 0 : index
    %c0_3 = arith.constant 0 : index
    %4 = vector.load %arg3[%c0_2, %c0_3] : memref<48x64xbf16, #tpu.memory_space<vmem>>, vector<48x64xbf16>
    %c0_4 = arith.constant 0 : index
    %c0_5 = arith.constant 0 : index
    %5 = vector.load %arg4[%c0_4, %c0_5] : memref<64x192xbf16, #tpu.memory_space<vmem>>, vector<64x192xbf16>
    %cst = arith.constant dense<0.000000e+00> : vector<48x192xf32>
    %6 = tpu.matmul %4, %5, %cst {dimension_numbers = #tpu.dot_dimension_numbers<[1], [0], [0], [1], [0, 0, 1, 1], [], []>} : vector<48x64xbf16>, vector<64x192xbf16>, vector<48x192xf32> -> vector<48x192xf32>
    %7 = arith.addf %3, %6 : vector<48x192xf32>
    %c0_6 = arith.constant 0 : index
    %c0_7 = arith.constant 0 : index
    %8 = vector.load %arg7[%c0_6, %c0_7] : memref<48x192xf32, #tpu.memory_space<vmem>>, vector<48x192xf32>
    tpu.vector_store %arg7[%c0_6, %c0_7], %7 {strides = array<i32>} : memref<48x192xf32, #tpu.memory_space<vmem>>, vector<48x192xf32>,
    %c0_i32_8 = arith.constant 0 : i32
    %9 = arith.cmpi eq, %arg2, %c0_i32_8 : i32
    %10 = arith.extui %9 : i1 to i32
    %c0_i32_9 = arith.constant 0 : i32
    %11 = arith.cmpi ne, %10, %c0_i32_9 : i32
    scf.if %11 {
      %c0_10 = arith.constant 0 : index
      %c0_11 = arith.constant 0 : index
      %12 = vector.load %arg7[%c0_10, %c0_11] : memref<48x192xf32, #tpu.memory_space<vmem>>, vector<48x192xf32>
      %c0_12 = arith.constant 0 : index
      %c0_13 = arith.constant 0 : index
      %13 = vector.load %arg5[%c0_12, %c0_13] : memref<1x192xf32, #tpu.memory_space<vmem>>, vector<1x192xf32>
      %14 = vector.broadcast %13 : vector<1x192xf32> to vector<48x192xf32>
      %15 = arith.addf %12, %14 : vector<48x192xf32>
      %16 = arith.truncf %15 : vector<48x192xf32> to vector<48x192xbf16>
      %c0_14 = arith.constant 0 : index
      %c0_15 = arith.constant 0 : index
      %17 = vector.load %arg6[%c0_14, %c0_15] : memref<48x192xbf16, #tpu.memory_space<vmem>>, vector<48x192xbf16>
      tpu.vector_store %arg6[%c0_14, %c0_15], %16 {strides = array<i32>} : memref<48x192xbf16, #tpu.memory_space<vmem>>, vector<48x192xbf16>,
    } else {
    }
    return
  }
  func.func @transform_0(%arg0: i32, %arg1: i32, %arg2: i32) -> (i32, i32) {
    %c0_i32 = arith.constant 0 : i32
    return %arg0, %arg2 : i32, i32
  }
  func.func @transform_1(%arg0: i32, %arg1: i32, %arg2: i32) -> (i32, i32) {
    %c0_i32 = arith.constant 0 : i32
    return %arg2, %arg1 : i32, i32
  }
  func.func @transform_2(%arg0: i32, %arg1: i32, %arg2: i32) -> (i32, i32) {
    %c0_i32 = arith.constant 0 : i32
    %c0_i32_0 = arith.constant 0 : i32
    return %c0_i32, %arg1 : i32, i32
  }
  func.func @transform_3(%arg0: i32, %arg1: i32, %arg2: i32) -> (i32, i32) {
    %c0_i32 = arith.constant 0 : i32
    return %arg0, %arg1 : i32, i32
  }
}

module attributes {stable_mosaic.version = 11 : i64} {
  func.func @_linear_kernel(%arg0: i32, %arg1: i32, %arg2: i32, %arg3: memref<48x64xbf16, #tpu.memory_space<vmem>>, %arg4: memref<64x64xbf16, #tpu.memory_space<vmem>>, %arg5: memref<1x64xf32, #tpu.memory_space<vmem>>, %arg6: memref<48x64xf32, #tpu.memory_space<vmem>>, %arg7: memref<48x64xf32, #tpu.memory_space<vmem>>) attributes {dimension_semantics = [#tpu.dimension_semantics<parallel>, #tpu.dimension_semantics<parallel>, #tpu.dimension_semantics<arbitrary>], iteration_bounds = array<i64: 1, 1, 1>, scalar_prefetch = 0 : i64, scratch_operands = 1 : i64, tpu.core_type = #tpu.core_type<tc>, window_params = [{transform_indices = @transform_0, window_bounds = array<i64: 48, 64>}, {transform_indices = @transform_1, window_bounds = array<i64: 64, 64>}, {transform_indices = @transform_2, window_bounds = array<i64: 1, 64>}, {transform_indices = @transform_3, window_bounds = array<i64: 48, 64>}]} {
    %c0_i32 = arith.constant 0 : i32
    %0 = arith.cmpi eq, %arg2, %c0_i32 : i32
    %1 = arith.extui %0 : i1 to i32
    %c0_i32_0 = arith.constant 0 : i32
    %2 = arith.cmpi ne, %1, %c0_i32_0 : i32
    scf.if %2 {
      %cst_10 = arith.constant 0.000000e+00 : f32
      %12 = vector.broadcast %cst_10 : f32 to vector<48x64xf32>
      %c0_11 = arith.constant 0 : index
      %c0_12 = arith.constant 0 : index
      %13 = vector.load %arg7[%c0_11, %c0_12] : memref<48x64xf32, #tpu.memory_space<vmem>>, vector<48x64xf32>
      tpu.vector_store %arg7[%c0_11, %c0_12], %12 {strides = array<i32>} : memref<48x64xf32, #tpu.memory_space<vmem>>, vector<48x64xf32>,
    } else {
    }
    %c0 = arith.constant 0 : index
    %c0_1 = arith.constant 0 : index
    %3 = vector.load %arg7[%c0, %c0_1] : memref<48x64xf32, #tpu.memory_space<vmem>>, vector<48x64xf32>
    %c0_2 = arith.constant 0 : index
    %c0_3 = arith.constant 0 : index
    %4 = vector.load %arg3[%c0_2, %c0_3] : memref<48x64xbf16, #tpu.memory_space<vmem>>, vector<48x64xbf16>
    %c0_4 = arith.constant 0 : index
    %c0_5 = arith.constant 0 : index
    %5 = vector.load %arg4[%c0_4, %c0_5] : memref<64x64xbf16, #tpu.memory_space<vmem>>, vector<64x64xbf16>
    %cst = arith.constant dense<0.000000e+00> : vector<48x64xf32>
    %6 = tpu.matmul %4, %5, %cst {dimension_numbers = #tpu.dot_dimension_numbers<[1], [0], [0], [1], [0, 0, 1, 1], [], []>} : vector<48x64xbf16>, vector<64x64xbf16>, vector<48x64xf32> -> vector<48x64xf32>
    %7 = arith.addf %3, %6 : vector<48x64xf32>
    %c0_6 = arith.constant 0 : index
    %c0_7 = arith.constant 0 : index
    %8 = vector.load %arg7[%c0_6, %c0_7] : memref<48x64xf32, #tpu.memory_space<vmem>>, vector<48x64xf32>
    tpu.vector_store %arg7[%c0_6, %c0_7], %7 {strides = array<i32>} : memref<48x64xf32, #tpu.memory_space<vmem>>, vector<48x64xf32>,
    %c0_i32_8 = arith.constant 0 : i32
    %9 = arith.cmpi eq, %arg2, %c0_i32_8 : i32
    %10 = arith.extui %9 : i1 to i32
    %c0_i32_9 = arith.constant 0 : i32
    %11 = arith.cmpi ne, %10, %c0_i32_9 : i32
    scf.if %11 {
      %c0_10 = arith.constant 0 : index
      %c0_11 = arith.constant 0 : index
      %12 = vector.load %arg7[%c0_10, %c0_11] : memref<48x64xf32, #tpu.memory_space<vmem>>, vector<48x64xf32>
      %c0_12 = arith.constant 0 : index
      %c0_13 = arith.constant 0 : index
      %13 = vector.load %arg5[%c0_12, %c0_13] : memref<1x64xf32, #tpu.memory_space<vmem>>, vector<1x64xf32>
      %14 = vector.broadcast %13 : vector<1x64xf32> to vector<48x64xf32>
      %15 = arith.addf %12, %14 : vector<48x64xf32>
      %c0_14 = arith.constant 0 : index
      %c0_15 = arith.constant 0 : index
      %16 = vector.load %arg6[%c0_14, %c0_15] : memref<48x64xf32, #tpu.memory_space<vmem>>, vector<48x64xf32>
      tpu.vector_store %arg6[%c0_14, %c0_15], %15 {strides = array<i32>} : memref<48x64xf32, #tpu.memory_space<vmem>>, vector<48x64xf32>,
    } else {
    }
    return
  }
  func.func @transform_0(%arg0: i32, %arg1: i32, %arg2: i32) -> (i32, i32) {
    %c0_i32 = arith.constant 0 : i32
    return %arg0, %arg2 : i32, i32
  }
  func.func @transform_1(%arg0: i32, %arg1: i32, %arg2: i32) -> (i32, i32) {
    %c0_i32 = arith.constant 0 : i32
    return %arg2, %arg1 : i32, i32
  }
  func.func @transform_2(%arg0: i32, %arg1: i32, %arg2: i32) -> (i32, i32) {
    %c0_i32 = arith.constant 0 : i32
    %c0_i32_0 = arith.constant 0 : i32
    return %c0_i32, %arg1 : i32, i32
  }
  func.func @transform_3(%arg0: i32, %arg1: i32, %arg2: i32) -> (i32, i32) {
    %c0_i32 = arith.constant 0 : i32
    return %arg0, %arg1 : i32, i32
  }
}

module attributes {stable_mosaic.version = 11 : i64} {
  func.func @_linear_kernel(%arg0: i32, %arg1: i32, %arg2: i32, %arg3: memref<32x64xbf16, #tpu.memory_space<vmem>>, %arg4: memref<64x16xbf16, #tpu.memory_space<vmem>>, %arg5: memref<1x16xf32, #tpu.memory_space<vmem>>, %arg6: memref<32x16xf32, #tpu.memory_space<vmem>>, %arg7: memref<32x16xf32, #tpu.memory_space<vmem>>) attributes {dimension_semantics = [#tpu.dimension_semantics<parallel>, #tpu.dimension_semantics<parallel>, #tpu.dimension_semantics<arbitrary>], iteration_bounds = array<i64: 1, 1, 1>, scalar_prefetch = 0 : i64, scratch_operands = 1 : i64, tpu.core_type = #tpu.core_type<tc>, window_params = [{transform_indices = @transform_0, window_bounds = array<i64: 32, 64>}, {transform_indices = @transform_1, window_bounds = array<i64: 64, 16>}, {transform_indices = @transform_2, window_bounds = array<i64: 1, 16>}, {transform_indices = @transform_3, window_bounds = array<i64: 32, 16>}]} {
    %c0_i32 = arith.constant 0 : i32
    %0 = arith.cmpi eq, %arg2, %c0_i32 : i32
    %1 = arith.extui %0 : i1 to i32
    %c0_i32_0 = arith.constant 0 : i32
    %2 = arith.cmpi ne, %1, %c0_i32_0 : i32
    scf.if %2 {
      %cst_10 = arith.constant 0.000000e+00 : f32
      %12 = vector.broadcast %cst_10 : f32 to vector<32x16xf32>
      %c0_11 = arith.constant 0 : index
      %c0_12 = arith.constant 0 : index
      %13 = vector.load %arg7[%c0_11, %c0_12] : memref<32x16xf32, #tpu.memory_space<vmem>>, vector<32x16xf32>
      tpu.vector_store %arg7[%c0_11, %c0_12], %12 {strides = array<i32>} : memref<32x16xf32, #tpu.memory_space<vmem>>, vector<32x16xf32>,
    } else {
    }
    %c0 = arith.constant 0 : index
    %c0_1 = arith.constant 0 : index
    %3 = vector.load %arg7[%c0, %c0_1] : memref<32x16xf32, #tpu.memory_space<vmem>>, vector<32x16xf32>
    %c0_2 = arith.constant 0 : index
    %c0_3 = arith.constant 0 : index
    %4 = vector.load %arg3[%c0_2, %c0_3] : memref<32x64xbf16, #tpu.memory_space<vmem>>, vector<32x64xbf16>
    %c0_4 = arith.constant 0 : index
    %c0_5 = arith.constant 0 : index
    %5 = vector.load %arg4[%c0_4, %c0_5] : memref<64x16xbf16, #tpu.memory_space<vmem>>, vector<64x16xbf16>
    %cst = arith.constant dense<0.000000e+00> : vector<32x16xf32>
    %6 = tpu.matmul %4, %5, %cst {dimension_numbers = #tpu.dot_dimension_numbers<[1], [0], [0], [1], [0, 0, 1, 1], [], []>} : vector<32x64xbf16>, vector<64x16xbf16>, vector<32x16xf32> -> vector<32x16xf32>
    %7 = arith.addf %3, %6 : vector<32x16xf32>
    %c0_6 = arith.constant 0 : index
    %c0_7 = arith.constant 0 : index
    %8 = vector.load %arg7[%c0_6, %c0_7] : memref<32x16xf32, #tpu.memory_space<vmem>>, vector<32x16xf32>
    tpu.vector_store %arg7[%c0_6, %c0_7], %7 {strides = array<i32>} : memref<32x16xf32, #tpu.memory_space<vmem>>, vector<32x16xf32>,
    %c0_i32_8 = arith.constant 0 : i32
    %9 = arith.cmpi eq, %arg2, %c0_i32_8 : i32
    %10 = arith.extui %9 : i1 to i32
    %c0_i32_9 = arith.constant 0 : i32
    %11 = arith.cmpi ne, %10, %c0_i32_9 : i32
    scf.if %11 {
      %c0_10 = arith.constant 0 : index
      %c0_11 = arith.constant 0 : index
      %12 = vector.load %arg7[%c0_10, %c0_11] : memref<32x16xf32, #tpu.memory_space<vmem>>, vector<32x16xf32>
      %c0_12 = arith.constant 0 : index
      %c0_13 = arith.constant 0 : index
      %13 = vector.load %arg5[%c0_12, %c0_13] : memref<1x16xf32, #tpu.memory_space<vmem>>, vector<1x16xf32>
      %14 = vector.broadcast %13 : vector<1x16xf32> to vector<32x16xf32>
      %15 = arith.addf %12, %14 : vector<32x16xf32>
      %c0_14 = arith.constant 0 : index
      %c0_15 = arith.constant 0 : index
      %16 = vector.load %arg6[%c0_14, %c0_15] : memref<32x16xf32, #tpu.memory_space<vmem>>, vector<32x16xf32>
      tpu.vector_store %arg6[%c0_14, %c0_15], %15 {strides = array<i32>} : memref<32x16xf32, #tpu.memory_space<vmem>>, vector<32x16xf32>,
    } else {
    }
    return
  }
  func.func @transform_0(%arg0: i32, %arg1: i32, %arg2: i32) -> (i32, i32) {
    %c0_i32 = arith.constant 0 : i32
    return %arg0, %arg2 : i32, i32
  }
  func.func @transform_1(%arg0: i32, %arg1: i32, %arg2: i32) -> (i32, i32) {
    %c0_i32 = arith.constant 0 : i32
    return %arg2, %arg1 : i32, i32
  }
  func.func @transform_2(%arg0: i32, %arg1: i32, %arg2: i32) -> (i32, i32) {
    %c0_i32 = arith.constant 0 : i32
    %c0_i32_0 = arith.constant 0 : i32
    return %c0_i32, %arg1 : i32, i32
  }
  func.func @transform_3(%arg0: i32, %arg1: i32, %arg2: i32) -> (i32, i32) {
    %c0_i32 = arith.constant 0 : i32
    return %arg0, %arg1 : i32, i32
  }
}

module attributes {stable_mosaic.version = 11 : i64} {
  func.func @_linear_kernel(%arg0: i32, %arg1: i32, %arg2: i32, %arg3: memref<48x64xbf16, #tpu.memory_space<vmem>>, %arg4: memref<64x256xbf16, #tpu.memory_space<vmem>>, %arg5: memref<1x256xf32, #tpu.memory_space<vmem>>, %arg6: memref<48x256xbf16, #tpu.memory_space<vmem>>, %arg7: memref<48x256xf32, #tpu.memory_space<vmem>>) attributes {dimension_semantics = [#tpu.dimension_semantics<parallel>, #tpu.dimension_semantics<parallel>, #tpu.dimension_semantics<arbitrary>], iteration_bounds = array<i64: 1, 1, 1>, scalar_prefetch = 0 : i64, scratch_operands = 1 : i64, tpu.core_type = #tpu.core_type<tc>, window_params = [{transform_indices = @transform_0, window_bounds = array<i64: 48, 64>}, {transform_indices = @transform_1, window_bounds = array<i64: 64, 256>}, {transform_indices = @transform_2, window_bounds = array<i64: 1, 256>}, {transform_indices = @transform_3, window_bounds = array<i64: 48, 256>}]} {
    %c0_i32 = arith.constant 0 : i32
    %0 = arith.cmpi eq, %arg2, %c0_i32 : i32
    %1 = arith.extui %0 : i1 to i32
    %c0_i32_0 = arith.constant 0 : i32
    %2 = arith.cmpi ne, %1, %c0_i32_0 : i32
    scf.if %2 {
      %cst_10 = arith.constant 0.000000e+00 : f32
      %12 = vector.broadcast %cst_10 : f32 to vector<48x256xf32>
      %c0_11 = arith.constant 0 : index
      %c0_12 = arith.constant 0 : index
      %13 = vector.load %arg7[%c0_11, %c0_12] : memref<48x256xf32, #tpu.memory_space<vmem>>, vector<48x256xf32>
      tpu.vector_store %arg7[%c0_11, %c0_12], %12 {strides = array<i32>} : memref<48x256xf32, #tpu.memory_space<vmem>>, vector<48x256xf32>,
    } else {
    }
    %c0 = arith.constant 0 : index
    %c0_1 = arith.constant 0 : index
    %3 = vector.load %arg7[%c0, %c0_1] : memref<48x256xf32, #tpu.memory_space<vmem>>, vector<48x256xf32>
    %c0_2 = arith.constant 0 : index
    %c0_3 = arith.constant 0 : index
    %4 = vector.load %arg3[%c0_2, %c0_3] : memref<48x64xbf16, #tpu.memory_space<vmem>>, vector<48x64xbf16>
    %c0_4 = arith.constant 0 : index
    %c0_5 = arith.constant 0 : index
    %5 = vector.load %arg4[%c0_4, %c0_5] : memref<64x256xbf16, #tpu.memory_space<vmem>>, vector<64x256xbf16>
    %cst = arith.constant dense<0.000000e+00> : vector<48x256xf32>
    %6 = tpu.matmul %4, %5, %cst {dimension_numbers = #tpu.dot_dimension_numbers<[1], [0], [0], [1], [0, 0, 1, 1], [], []>} : vector<48x64xbf16>, vector<64x256xbf16>, vector<48x256xf32> -> vector<48x256xf32>
    %7 = arith.addf %3, %6 : vector<48x256xf32>
    %c0_6 = arith.constant 0 : index
    %c0_7 = arith.constant 0 : index
    %8 = vector.load %arg7[%c0_6, %c0_7] : memref<48x256xf32, #tpu.memory_space<vmem>>, vector<48x256xf32>
    tpu.vector_store %arg7[%c0_6, %c0_7], %7 {strides = array<i32>} : memref<48x256xf32, #tpu.memory_space<vmem>>, vector<48x256xf32>,
    %c0_i32_8 = arith.constant 0 : i32
    %9 = arith.cmpi eq, %arg2, %c0_i32_8 : i32
    %10 = arith.extui %9 : i1 to i32
    %c0_i32_9 = arith.constant 0 : i32
    %11 = arith.cmpi ne, %10, %c0_i32_9 : i32
    scf.if %11 {
      %c0_10 = arith.constant 0 : index
      %c0_11 = arith.constant 0 : index
      %12 = vector.load %arg7[%c0_10, %c0_11] : memref<48x256xf32, #tpu.memory_space<vmem>>, vector<48x256xf32>
      %c0_12 = arith.constant 0 : index
      %c0_13 = arith.constant 0 : index
      %13 = vector.load %arg5[%c0_12, %c0_13] : memref<1x256xf32, #tpu.memory_space<vmem>>, vector<1x256xf32>
      %14 = vector.broadcast %13 : vector<1x256xf32> to vector<48x256xf32>
      %15 = arith.addf %12, %14 : vector<48x256xf32>
      %16 = arith.mulf %15, %15 : vector<48x256xf32>
      %17 = arith.mulf %15, %16 : vector<48x256xf32>
      %cst_14 = arith.constant 4.471500e-02 : f32
      %18 = vector.broadcast %cst_14 : f32 to vector<48x256xf32>
      %19 = arith.mulf %18, %17 : vector<48x256xf32>
      %20 = arith.addf %15, %19 : vector<48x256xf32>
      %cst_15 = arith.constant 0.797884583 : f32
      %21 = vector.broadcast %cst_15 : f32 to vector<48x256xf32>
      %22 = arith.mulf %21, %20 : vector<48x256xf32>
      %23 = math.tanh %22 : vector<48x256xf32>
      %cst_16 = arith.constant 1.000000e+00 : f32
      %24 = vector.broadcast %cst_16 : f32 to vector<48x256xf32>
      %25 = arith.addf %24, %23 : vector<48x256xf32>
      %cst_17 = arith.constant 5.000000e-01 : f32
      %26 = vector.broadcast %cst_17 : f32 to vector<48x256xf32>
      %27 = arith.mulf %26, %25 : vector<48x256xf32>
      %28 = arith.mulf %15, %27 : vector<48x256xf32>
      %29 = arith.truncf %28 : vector<48x256xf32> to vector<48x256xbf16>
      %c0_18 = arith.constant 0 : index
      %c0_19 = arith.constant 0 : index
      %30 = vector.load %arg6[%c0_18, %c0_19] : memref<48x256xbf16, #tpu.memory_space<vmem>>, vector<48x256xbf16>
      tpu.vector_store %arg6[%c0_18, %c0_19], %29 {strides = array<i32>} : memref<48x256xbf16, #tpu.memory_space<vmem>>, vector<48x256xbf16>,
    } else {
    }
    return
  }
  func.func @transform_0(%arg0: i32, %arg1: i32, %arg2: i32) -> (i32, i32) {
    %c0_i32 = arith.constant 0 : i32
    return %arg0, %arg2 : i32, i32
  }
  func.func @transform_1(%arg0: i32, %arg1: i32, %arg2: i32) -> (i32, i32) {
    %c0_i32 = arith.constant 0 : i32
    return %arg2, %arg1 : i32, i32
  }
  func.func @transform_2(%arg0: i32, %arg1: i32, %arg2: i32) -> (i32, i32) {
    %c0_i32 = arith.constant 0 : i32
    %c0_i32_0 = arith.constant 0 : i32
    return %c0_i32, %arg1 : i32, i32
  }
  func.func @transform_3(%arg0: i32, %arg1: i32, %arg2: i32) -> (i32, i32) {
    %c0_i32 = arith.constant 0 : i32
    return %arg0, %arg1 : i32, i32
  }
}

module attributes {stable_mosaic.version = 11 : i64} {
  func.func @_linear_resgate_kernel(%arg0: i32, %arg1: i32, %arg2: i32, %arg3: i32, %arg4: memref<1x24x256xbf16, #tpu.memory_space<vmem>>, %arg5: memref<256x64xbf16, #tpu.memory_space<vmem>>, %arg6: memref<1x64xf32, #tpu.memory_space<vmem>>, %arg7: memref<1x24x64xf32, #tpu.memory_space<vmem>>, %arg8: memref<1x1x64xf32, #tpu.memory_space<vmem>>, %arg9: memref<1x24x64xf32, #tpu.memory_space<vmem>>, %arg10: memref<1x24x64xf32, #tpu.memory_space<vmem>>, %arg11: memref<24x64xf32, #tpu.memory_space<vmem>>) attributes {dimension_semantics = [#tpu.dimension_semantics<parallel>, #tpu.dimension_semantics<parallel>, #tpu.dimension_semantics<parallel>, #tpu.dimension_semantics<arbitrary>], iteration_bounds = array<i64: 2, 1, 1, 1>, scalar_prefetch = 0 : i64, scratch_operands = 1 : i64, tpu.core_type = #tpu.core_type<tc>, window_params = [{transform_indices = @transform_0, window_bounds = array<i64: 1, 24, 256>}, {transform_indices = @transform_1, window_bounds = array<i64: 256, 64>}, {transform_indices = @transform_2, window_bounds = array<i64: 1, 64>}, {transform_indices = @transform_3, window_bounds = array<i64: 1, 24, 64>}, {transform_indices = @transform_4, window_bounds = array<i64: 1, 1, 64>}, {transform_indices = @transform_5, window_bounds = array<i64: 1, 24, 64>}, {transform_indices = @transform_6, window_bounds = array<i64: 1, 24, 64>}]} {
    %c0_i32 = arith.constant 0 : i32
    %0 = arith.cmpi eq, %arg3, %c0_i32 : i32
    %1 = arith.extui %0 : i1 to i32
    %c0_i32_0 = arith.constant 0 : i32
    %2 = arith.cmpi ne, %1, %c0_i32_0 : i32
    scf.if %2 {
      %cst_11 = arith.constant 0.000000e+00 : f32
      %13 = vector.broadcast %cst_11 : f32 to vector<24x64xf32>
      %c0_12 = arith.constant 0 : index
      %c0_13 = arith.constant 0 : index
      %14 = vector.load %arg11[%c0_12, %c0_13] : memref<24x64xf32, #tpu.memory_space<vmem>>, vector<24x64xf32>
      tpu.vector_store %arg11[%c0_12, %c0_13], %13 {strides = array<i32>} : memref<24x64xf32, #tpu.memory_space<vmem>>, vector<24x64xf32>,
    } else {
    }
    %c0 = arith.constant 0 : index
    %c0_1 = arith.constant 0 : index
    %3 = vector.load %arg11[%c0, %c0_1] : memref<24x64xf32, #tpu.memory_space<vmem>>, vector<24x64xf32>
    %c0_2 = arith.constant 0 : index
    %c0_3 = arith.constant 0 : index
    %c0_4 = arith.constant 0 : index
    %4 = vector.load %arg4[%c0_2, %c0_3, %c0_4] : memref<1x24x256xbf16, #tpu.memory_space<vmem>>, vector<1x24x256xbf16>
    %5 = vector.shape_cast %4 : vector<1x24x256xbf16> to vector<24x256xbf16>
    %c0_5 = arith.constant 0 : index
    %c0_6 = arith.constant 0 : index
    %6 = vector.load %arg5[%c0_5, %c0_6] : memref<256x64xbf16, #tpu.memory_space<vmem>>, vector<256x64xbf16>
    %cst = arith.constant dense<0.000000e+00> : vector<24x64xf32>
    %7 = tpu.matmul %5, %6, %cst {dimension_numbers = #tpu.dot_dimension_numbers<[1], [0], [0], [1], [0, 0, 1, 1], [], []>} : vector<24x256xbf16>, vector<256x64xbf16>, vector<24x64xf32> -> vector<24x64xf32>
    %8 = arith.addf %3, %7 : vector<24x64xf32>
    %c0_7 = arith.constant 0 : index
    %c0_8 = arith.constant 0 : index
    %9 = vector.load %arg11[%c0_7, %c0_8] : memref<24x64xf32, #tpu.memory_space<vmem>>, vector<24x64xf32>
    tpu.vector_store %arg11[%c0_7, %c0_8], %8 {strides = array<i32>} : memref<24x64xf32, #tpu.memory_space<vmem>>, vector<24x64xf32>,
    %c0_i32_9 = arith.constant 0 : i32
    %10 = arith.cmpi eq, %arg3, %c0_i32_9 : i32
    %11 = arith.extui %10 : i1 to i32
    %c0_i32_10 = arith.constant 0 : i32
    %12 = arith.cmpi ne, %11, %c0_i32_10 : i32
    scf.if %12 {
      %c0_11 = arith.constant 0 : index
      %c0_12 = arith.constant 0 : index
      %13 = vector.load %arg11[%c0_11, %c0_12] : memref<24x64xf32, #tpu.memory_space<vmem>>, vector<24x64xf32>
      %c0_13 = arith.constant 0 : index
      %c0_14 = arith.constant 0 : index
      %14 = vector.load %arg6[%c0_13, %c0_14] : memref<1x64xf32, #tpu.memory_space<vmem>>, vector<1x64xf32>
      %15 = vector.broadcast %14 : vector<1x64xf32> to vector<24x64xf32>
      %16 = arith.addf %13, %15 : vector<24x64xf32>
      %c0_15 = arith.constant 0 : index
      %c0_16 = arith.constant 0 : index
      %c0_17 = arith.constant 0 : index
      %17 = vector.load %arg9[%c0_15, %c0_16, %c0_17] : memref<1x24x64xf32, #tpu.memory_space<vmem>>, vector<1x24x64xf32>
      %18 = vector.shape_cast %17 : vector<1x24x64xf32> to vector<24x64xf32>
      %19 = arith.addf %16, %18 : vector<24x64xf32>
      %c0_18 = arith.constant 0 : index
      %c0_19 = arith.constant 0 : index
      %c0_20 = arith.constant 0 : index
      %20 = vector.load %arg7[%c0_18, %c0_19, %c0_20] : memref<1x24x64xf32, #tpu.memory_space<vmem>>, vector<1x24x64xf32>
      %21 = vector.shape_cast %20 : vector<1x24x64xf32> to vector<24x64xf32>
      %c0_21 = arith.constant 0 : index
      %c0_22 = arith.constant 0 : index
      %c0_23 = arith.constant 0 : index
      %22 = vector.load %arg8[%c0_21, %c0_22, %c0_23] : memref<1x1x64xf32, #tpu.memory_space<vmem>>, vector<1x1x64xf32>
      %23 = vector.shape_cast %22 : vector<1x1x64xf32> to vector<1x64xf32>
      %24 = vector.broadcast %23 : vector<1x64xf32> to vector<24x64xf32>
      %25 = arith.mulf %24, %19 : vector<24x64xf32>
      %26 = arith.addf %21, %25 : vector<24x64xf32>
      %27 = vector.shape_cast %26 : vector<24x64xf32> to vector<1x24x64xf32>
      %c0_24 = arith.constant 0 : index
      %c0_25 = arith.constant 0 : index
      %c0_26 = arith.constant 0 : index
      %28 = vector.load %arg10[%c0_24, %c0_25, %c0_26] : memref<1x24x64xf32, #tpu.memory_space<vmem>>, vector<1x24x64xf32>
      tpu.vector_store %arg10[%c0_24, %c0_25, %c0_26], %27 {strides = array<i32>} : memref<1x24x64xf32, #tpu.memory_space<vmem>>, vector<1x24x64xf32>,
    } else {
    }
    return
  }
  func.func @transform_0(%arg0: i32, %arg1: i32, %arg2: i32, %arg3: i32) -> (i32, i32, i32) {
    %c0_i32 = arith.constant 0 : i32
    return %arg0, %arg1, %arg3 : i32, i32, i32
  }
  func.func @transform_1(%arg0: i32, %arg1: i32, %arg2: i32, %arg3: i32) -> (i32, i32) {
    %c0_i32 = arith.constant 0 : i32
    return %arg3, %arg2 : i32, i32
  }
  func.func @transform_2(%arg0: i32, %arg1: i32, %arg2: i32, %arg3: i32) -> (i32, i32) {
    %c0_i32 = arith.constant 0 : i32
    %c0_i32_0 = arith.constant 0 : i32
    return %c0_i32, %arg2 : i32, i32
  }
  func.func @transform_3(%arg0: i32, %arg1: i32, %arg2: i32, %arg3: i32) -> (i32, i32, i32) {
    %c0_i32 = arith.constant 0 : i32
    return %arg0, %arg1, %arg2 : i32, i32, i32
  }
  func.func @transform_4(%arg0: i32, %arg1: i32, %arg2: i32, %arg3: i32) -> (i32, i32, i32) {
    %c0_i32 = arith.constant 0 : i32
    %c0_i32_0 = arith.constant 0 : i32
    return %arg0, %c0_i32, %arg2 : i32, i32, i32
  }
  func.func @transform_5(%arg0: i32, %arg1: i32, %arg2: i32, %arg3: i32) -> (i32, i32, i32) {
    %c0_i32 = arith.constant 0 : i32
    return %arg0, %arg1, %arg2 : i32, i32, i32
  }
  func.func @transform_6(%arg0: i32, %arg1: i32, %arg2: i32, %arg3: i32) -> (i32, i32, i32) {
    %c0_i32 = arith.constant 0 : i32
    return %arg0, %arg1, %arg2 : i32, i32, i32
  }
}

</mosaic_0001>

<bundles_post_ra>
// kernel: _lambda_.25
= control target key start
LH: loop header
LB: loop body
LE: loop exit
PB: predicated region body
PF: predicated region fallthrough
CT: control target
= control target key end

     0   :  { %s493_s12 = smov 0   ;;  %s495_s13 = smov 0   ;;  %s542_s0 = inlined_call_operand.vmem [shape: f32[2,16,64], index: 0, kind: input, shape index: {}]   ;;  %s543_s1 = inlined_call_operand.vmem [shape: f32[2,1,64], index: 1, kind: input, shape index: {}]   ;;  %s544_s2 = inlined_call_operand.vmem [shape: f32[2,1,64], index: 2, kind: input, shape index: {}]   ;;  %s545_s3 = inlined_call_operand.vmem [shape: bf16[2,16,64], index: 3, kind: output, shape index: {}]  }
   0x1   :  { %s497_s14 = smov 0  }
   0x2 LB: > { %s25_s15 = sadd.s32 1, %s467_s13  ;;  %p407_p0 = scmp.ge.s32.totalorder %s471_s14, 1  ;;  %s471_s14 = sphi %s497_s14, %s13_s14   ;;  %s467_s13 = sphi %s495_s13, %s547_s13   ;;  %s463_s12 = sphi %s493_s12, %s546_s12  }
   0x3   : > { %p27_p1 = scmp.ge.s32.totalorder %s25_s15, 2  ;;  %p174_p2 = scmp.lt.s32.totalorder %s471_s14, 3 }
   0x5   : > { %s549_s15 = smov (%p27_p1, %s25_s15), 0  ;;  %p175_p3 = pnand %p407_p0, %p174_p2 }
   0x6   : > { %p213_p4 = scmp.lt.s32.totalorder (!%p175_p3), %s463_s12, 1  ;;  %vm240_vm0 = vcmask (!%p175_p3), 523264   ;;  %v271_v16 = vlaneseq (!%p175_p3)  ;;  %vm295_vm1 = vcmask (!%p175_p3), 519168  }
   0x7   : > { %178 = sbr.rel (%p175_p3) target bundleno = 338 (0x152), region = 32 }
   0x8   : > { %v272_v20 = vshrl.u32 (!%p175_p3), %v271_v16, 7 }
   0xa   : > { %v273_v24 = vsub.s32 (!%p175_p3), 0, %v272_v20 }
   0xe   : > { %s551_s12 = smov (!%p213_p4, %s463_s12), 1 }
   0xf   : > { %s417_s16 = sshll.u32 %s551_s12, 4  ;;  %s224_s22 = scalar_lea.vmem %s543_s1, %s551_s12 }
  0x10   : > { %s220_s19 = scalar_lea.vmem %s542_s0, %s417_s16  ;;  %v268_v21 = vld [vmem:[%s224_s22] sm:$0x1]  ;;  %s227_s25 = scalar_lea.vmem %s544_s2, %s551_s12 }
  0x11   : > { %v238_v0 = vld [vmem:[%s220_s19] sm:$0xff]  ;;  %v239_v1 = vld [vmem:[%s220_s19 + $0x8] sm:$0xff]  ;;  %v269_v23 = vadd.f32 1.0, %v268_v21  ;;  %s418_s26 = sshll.u32 %s551_s12, 3 }
  0x12   : > { %v241_v2 = vsel %vm240_vm0, %v238_v0, 0.0  ;;  %v244_v3 = vsel %vm240_vm0, %v239_v1, 0.0  ;;  %v412_v28 = vld [vmem:[%s227_s25] ss:$0 sm:$0xff]  ;;  %s236_s29 = scalar_lea.vmem %s545_s3, %s418_s26 }
  0x13   : > { %242 = vadd.xlane.f32.xlu0 %v241_v2  ;;  %v274_v25 = vrot.slane %v269_v23, %v273_v24 }
  0x17   : > { %245 = vadd.xlane.f32.xlu0 %v244_v3 }
  0xa0   : > { %v243_v4 = vpop.xlane.xlu0 %242 }
  0xa1   : > { %v248_v5 = vmul.f32 0.015625, %v243_v4 }
  0xa3   : > { %v250_v6 = vsub.f32 %v238_v0, %v248_v5 }
  0xa4   : > { %v246_v7 = vpop.xlane.xlu0 %245 }
  0xa5   : > { %v249_v8 = vmul.f32 0.015625, %v246_v7  ;;  %v252_v9 = vmul.f32 %v250_v6, %v250_v6 }
  0xa7   : > { %v251_v10 = vsub.f32 %v239_v1, %v249_v8  ;;  %v254_v11 = vsel %vm240_vm0, %v252_v9, 0.0 }
  0xa8   : > { %255 = vadd.xlane.f32.xlu1 %v254_v11 }
  0xa9   : > { %v253_v12 = vmul.f32 %v251_v10, %v251_v10 }
  0xab   : > { %v257_v13 = vsel %vm240_vm0, %v253_v12, 0.0 }
  0xac   : > { %258 = vadd.xlane.f32.xlu1 %v257_v13 }
 0x135   : > { %v256_v14 = vpop.xlane.xlu1 %255 }
 0x136   : > { %v260_v15 = vmul.f32 0.015625, %v256_v14 }
 0x138   : > { %v262_v17 = vadd.f32 1e-06, %v260_v15 }
 0x139   : > { %v259_v18 = vpop.xlane.xlu1 %258 }
 0x13a   : > { %445 = vrsqrt.f32 %v262_v17  ;;  %v261_v19 = vmul.f32 0.015625, %v259_v18 }
 0x13c   : > { %v263_v22 = vadd.f32 1e-06, %v261_v19 }
 0x13e   : > { %447 = vrsqrt.f32 %v263_v22 }
 0x144   : > { %v446_v26 = vpop.eup %445 }
 0x145   : > { %v266_v27 = vmul.f32 %v446_v26, %v250_v6 }
 0x147   : > { %v276_v29 = vmul.f32 %v274_v25, %v266_v27 }
 0x148   : > { %v448_v30 = vpop.eup %447 }
 0x149   : > { %v285_v31 = vadd.f32 %v412_v28, %v276_v29  ;;  %v267_v32 = vmul.f32 %v448_v30, %v251_v10 }
 0x14b   : > { %v419_v33 = vpack.c.bf16 %v285_v31, %v285_v31  ;;  %v277_v34 = vmul.f32 %v274_v25, %v267_v32 }
 0x14d   : > { %296 = vst.msk [vmem:[%s236_s29] sm:$0xf] %vm295_vm1, %v419_v33  ;;  %v286_v35 = vadd.f32 %v412_v28, %v277_v34 }
 0x14f   : > { %v420_v36 = vpack.c.bf16 %v286_v35, %v286_v35 }
 0x151   : > { %297 = vst.msk [vmem:[%s236_s29 + $0x4] sm:$0xf] %vm295_vm1, %v420_v36 }
 0x152 PF: > { %s13_s14 = sadd.s32 1, %s471_s14   ;;  %s546_s12 = smov %s467_s13 }
 0x153   : > { %p10_p5 = scmp.ge.s32.totalorder %s13_s14, 4   ;;  %s547_s13 = smov %s549_s15 }
 0x155   :  { %12 = sbr.rel (!%p10_p5) target bundleno = 2 (0x2), region = 68 }

// kernel: _lambda_.23
= control target key start
LH: loop header
LB: loop body
LE: loop exit
PB: predicated region body
PF: predicated region fallthrough
CT: control target
= control target key end

     0   :  { %vm19_vm0 = vcmask 523264   ;;  %vm50_vm1 = vcmask 130048   ;;  %v160_v1 = vmov 0.0   ;;  %s217_s1 = inlined_call_operand.vmem [shape: bf16[16,64], index: 1, kind: input, shape index: {}]   ;;  %s218_s0 = inlined_call_operand.vmem [shape: bf16[32,16], index: 0, kind: input, shape index: {}]   ;;  %s219_s2 = inlined_call_operand.vmem [shape: f32[1,64], index: 2, kind: input, shape index: {}]   ;;  %s220_s3 = inlined_call_operand.vmem [shape: f32[32,64], index: 3, kind: output, shape index: {}]  }
   0x1   :  { %v157_v0 = vld [vmem:[%s217_s1] sm:$0xff]   ;;  %22 = vst.msk [vmem:[#allocation2 + $0x10] sm:$0xff] %vm19_vm0, %v160_v1  ;;  %20 = vst.msk [vmem:[#allocation2] sm:$0xff] %vm19_vm0, %v160_v1  ;;  %v159_v3 = vld [vmem:[%s218_s0 + $0x8] sm:$0xff]  }
   0x2   :  { %21 = vst.msk [vmem:[#allocation2 + $0x8] sm:$0xff] %vm19_vm0, %v160_v1  ;;  %23 = vst.msk [vmem:[#allocation2 + $0x18] sm:$0xff] %vm19_vm0, %v160_v1  ;;  %v158_v2 = vld [vmem:[%s218_s0] sm:$0xff]   ;;  %150 = vmatprep.subr.bf16.mxu0 %v157_v0 }
   0x3   :  { %151 = vmatpush3.bf16.msra.mxu0 %v157_v0  ;;  %152 = vmatprep.mubr.msk.bf16.mxu0 %vm50_vm1, %v158_v2  ;;  %v146_v16 = vld [vmem:[%s219_s2] ss:$0 sm:$0xff] }
   0x6   :  { %153 = vmatmul.mubr.msk.bf16.vlgmr.msra.gmra.mrb[0].mxu0 %vm50_vm1, %v159_v3 }
   0x8   :  { %v26_v4 = vld [vmem:[#allocation2 + $0x10] sm:$0xff]  ;;  %v24_v5 = vld [vmem:[#allocation2] sm:$0xff] }
   0x9   :  { %v27_v7 = vld [vmem:[#allocation2 + $0x18] sm:$0xff]  ;;  %v25_v10 = vld [vmem:[#allocation2 + $0x8] sm:$0xff] }
  0xd9   :  { %v154_v6 = vpop.f32.mrb[0].mxu0 }
  0xda   :  { %v108_v8 = vadd.f32 %v154_v6, %v26_v4  ;;  %v91_v9 = vpop.f32.mrb[1].mxu0 }
  0xdb   :  { %v106_v11 = vadd.f32 %v91_v9, %v24_v5  ;;  %v155_v12 = vpop.f32.mrb[2].mxu0 }
  0xdc   :  { %113 = vst.msk [vmem:[#allocation2 + $0x10] sm:$0xff] %vm19_vm0, %v108_v8  ;;  %v109_v13 = vadd.f32 %v155_v12, %v27_v7  ;;  %v94_v14 = vpop.f32.mrb[3].mxu0 }
  0xdd   :  { %111 = vst.msk [vmem:[#allocation2] sm:$0xff] %vm19_vm0, %v106_v11  ;;  %v107_v15 = vadd.f32 %v94_v14, %v25_v10 }
  0xde   :  { %114 = vst.msk [vmem:[#allocation2 + $0x18] sm:$0xff] %vm19_vm0, %v109_v13 }
  0xdf   :  { %112 = vst.msk [vmem:[#allocation2 + $0x8] sm:$0xff] %vm19_vm0, %v107_v15 }
  0xe3   :  { %v120_v17 = vld [vmem:[#allocation2 + $0x10] sm:$0xff] }
  0xe4   :  { %v131_v18 = vadd.f32 %v146_v16, %v120_v17  ;;  %v118_v19 = vld [vmem:[#allocation2] sm:$0xff] }
  0xe5   :  { %v129_v20 = vadd.f32 %v146_v16, %v118_v19  ;;  %v121_v21 = vld [vmem:[#allocation2 + $0x18] sm:$0xff] }
  0xe6   :  { %135 = vst.msk [vmem:[%s220_s3 + $0x10] sm:$0xff] %vm19_vm0, %v131_v18  ;;  %v132_v22 = vadd.f32 %v146_v16, %v121_v21  ;;  %v119_v23 = vld [vmem:[#allocation2 + $0x8] sm:$0xff] }
  0xe7   :  { %133 = vst.msk [vmem:[%s220_s3] sm:$0xff] %vm19_vm0, %v129_v20  ;;  %v130_v24 = vadd.f32 %v146_v16, %v119_v23 }
  0xe8   :  { %136 = vst.msk [vmem:[%s220_s3 + $0x18] sm:$0xff] %vm19_vm0, %v132_v22 }
  0xe9   :  { %134 = vst.msk [vmem:[%s220_s3 + $0x8] sm:$0xff] %vm19_vm0, %v130_v24 }

// kernel: _lambda_.26
= control target key start
LH: loop header
LB: loop body
LE: loop exit
PB: predicated region body
PF: predicated region fallthrough
CT: control target
= control target key end

     0   :  { %vm20_vm0 = vcmask 523264   ;;  %v284_v1 = vmov 0   ;;  %v285_v2 = vmov 0.0   ;;  %v187_v12 = vlaneseq  ;;  %s361_s1 = inlined_call_operand.vmem [shape: bf16[64,192], index: 1, kind: input, shape index: {}]   ;;  %s362_s0 = inlined_call_operand.vmem [shape: bf16[32,64], index: 0, kind: input, shape index: {}]   ;;  %s363_s2 = inlined_call_operand.vmem [shape: f32[1,192], index: 2, kind: input, shape index: {}]   ;;  %s364_s3 = inlined_call_operand.vmem [shape: bf16[32,192], index: 3, kind: output, shape index: {}]  }
   0x1   :  { %v270_v0 = vld [vmem:[%s361_s1 + $0x4] ss:$8 sps:$4 sm:$0xff]   ;;  %137 = vmatprep.mubr.bf16.mxu0 %v284_v1  ;;  %147 = vmatprep.mubr.bf16.mxu1 %v284_v1  ;;  %21 = vst.msk [vmem:[#allocation2 + $0x8] sm:$0xff] %vm20_vm0, %v285_v2  ;;  %23 = vst.msk [vmem:[#allocation2 + $0x18] sm:$0xff] %vm20_vm0, %v285_v2  ;;  %v272_v3 = vld [vmem:[%s361_s1] ss:$8 sps:$4 sm:$0xff]  }
   0x2   :  { %25 = vst.msk [vmem:[#allocation2 + $0x28] sm:$0xff] %vm20_vm0, %v285_v2  ;;  %27 = vst.msk [vmem:[#allocation2 + $0x38] sm:$0xff] %vm20_vm0, %v285_v2  ;;  %105 = vmatprep.subr.bf16.mxu0 %v270_v0  ;;  %260 = vmatprep.subr.bf16.mxu1 %v270_v0  ;;  %v273_v4 = vld [vmem:[%s361_s1 + $0x14] ss:$8 sps:$4 sm:$0xff]   ;;  %v275_v5 = vld [vmem:[%s361_s1 + $0x10] ss:$8 sps:$4 sm:$0xff]  }
   0x3   :  { %106 = vmatpush1.bf16.msra.mxu0 %v272_v3  ;;  %264 = vmatpush1.bf16.msra.mxu1 %v272_v3  ;;  %v276_v6 = vld [vmem:[%s361_s1 + $0x24] ss:$8 sps:$4 sm:$0xff]   ;;  %v278_v7 = vld [vmem:[%s361_s1 + $0x20] ss:$8 sps:$4 sm:$0xff]   ;;  %v279_v8 = vld [vmem:[%s361_s1 + $0x34] ss:$8 sps:$4 sm:$0xff]  }
   0x4   :  { %107 = vmatprep.subr.bf16.mxu0 %v273_v4  ;;  %261 = vmatprep.subr.bf16.mxu1 %v273_v4  ;;  %v281_v9 = vld [vmem:[%s361_s1 + $0x30] ss:$8 sps:$4 sm:$0xff]   ;;  %v282_v10 = vld [vmem:[%s362_s0] sm:$0xff]   ;;  %v283_v11 = vld [vmem:[%s362_s0 + $0x8] sm:$0xff]   ;;  %v188_v16 = vshrl.u32 %v187_v12, 7  ;;  %vm229_vm1 = vcmask 1043456  }
   0x5   :  { %v185_v32 = vld [vmem:[%s363_s2] sm:$0x3]  ;;  %vm230_vm2 = vcmask 523268  }
   0x6   :  { %v189_v28 = vsub.s32 0, %v188_v16  ;;  %v193_v29 = vsub.s32 1, %v188_v16  ;;  %vm231_vm3 = vmor %vm230_vm2, %vm229_vm1 }
   0x7   :  { %108 = vmatpush1.bf16.msra.mxu0 %v275_v5  ;;  %265 = vmatpush1.bf16.msra.mxu1 %v275_v5 }
   0x8   :  { %109 = vmatprep.subr.bf16.mxu0 %v276_v6  ;;  %262 = vmatprep.subr.bf16.mxu1 %v276_v6  ;;  %v29_v13 = vld [vmem:[#allocation2 + $0x8] sm:$0xff]  ;;  %v31_v20 = vld [vmem:[#allocation2 + $0x18] sm:$0xff]  ;;  %v190_v33 = vrot.slane %v185_v32, %v189_v28  ;;  %v194_v34 = vrot.slane %v185_v32, %v193_v29 }
   0x9   :  { %v33_v14 = vld [vmem:[#allocation2 + $0x28] sm:$0xff]  ;;  %v35_v21 = vld [vmem:[#allocation2 + $0x38] sm:$0xff] }
   0xb   :  { %110 = vmatpush1.bf16.msra.mxu0 %v278_v7  ;;  %266 = vmatpush1.bf16.msra.mxu1 %v278_v7 }
   0xc   :  { %111 = vmatprep.subr.bf16.mxu0 %v279_v8  ;;  %263 = vmatprep.subr.bf16.mxu1 %v279_v8 }
   0xf   :  { %112 = vmatpush1.bf16.msra.mxu0 %v281_v9  ;;  %267 = vmatpush1.bf16.msra.mxu1 %v281_v9 }
  0x12   :  { %250 = vmatmul.mubr.msk.bf16.vlgmr.msra.gmra.mrb[0].mxu0 %vm20_vm0, %v282_v10  ;;  %251 = vmatmul.mubr.msk.bf16.vlgmr.msra.gmra.mrb[0].mxu1 %vm20_vm0, %v283_v11 }
  0xe5   :  { %v139_v15 = vpop.f32.mrb[0].mxu0  ;;  %v149_v17 = vpop.f32.mrb[0].mxu1 }
  0xe6   :  { %v141_v18 = vpop.f32.mrb[1].mxu0  ;;  %v151_v19 = vpop.f32.mrb[1].mxu1  ;;  %v197_v37 = vadd.f32 %v190_v33, %v139_v15  ;;  %v201_v38 = vadd.f32 %v190_v33, %v149_v17 }
  0xe7   :  { %v159_v22 = vadd.f32 %v141_v18, %v29_v13  ;;  %v163_v23 = vadd.f32 %v151_v19, %v33_v14  ;;  %v143_v24 = vpop.f32.mrb[2].mxu0  ;;  %v153_v25 = vpop.f32.mrb[2].mxu1 }
  0xe8   :  { %v145_v26 = vpop.f32.mrb[3].mxu0  ;;  %v155_v27 = vpop.f32.mrb[3].mxu1  ;;  %v199_v41 = vadd.f32 %v190_v33, %v143_v24  ;;  %v203_v42 = vadd.f32 %v190_v33, %v153_v25 }
  0xe9   :  { %167 = vst.msk [vmem:[#allocation2 + $0x8] sm:$0xff] %vm20_vm0, %v159_v22  ;;  %171 = vst.msk [vmem:[#allocation2 + $0x28] sm:$0xff] %vm20_vm0, %v163_v23  ;;  %v161_v30 = vadd.f32 %v145_v26, %v31_v20  ;;  %v165_v31 = vadd.f32 %v155_v27, %v35_v21 }
  0xeb   :  { %169 = vst.msk [vmem:[#allocation2 + $0x18] sm:$0xff] %vm20_vm0, %v161_v30  ;;  %173 = vst.msk [vmem:[#allocation2 + $0x38] sm:$0xff] %vm20_vm0, %v165_v31 }
  0xf0   :  { %v178_v35 = vld [vmem:[#allocation2 + $0x8] sm:$0xff] }
  0xf1   :  { %v182_v36 = vld [vmem:[#allocation2 + $0x28] sm:$0xff]  ;;  %v198_v39 = vadd.f32 %v194_v34, %v178_v35 }
  0xf2   :  { %v202_v40 = vadd.f32 %v194_v34, %v182_v36  ;;  %v180_v43 = vld [vmem:[#allocation2 + $0x18] sm:$0xff] }
  0xf3   :  { %v184_v44 = vld [vmem:[#allocation2 + $0x38] sm:$0xff]  ;;  %v256_v45 = vpack.c.bf16 %v198_v39, %v197_v37  ;;  %v200_v47 = vadd.f32 %v194_v34, %v180_v43 }
  0xf4   :  { %v258_v46 = vpack.c.bf16 %v202_v40, %v201_v38  ;;  %v204_v48 = vadd.f32 %v194_v34, %v184_v44 }
  0xf5   :  { %232 = vst.msk [vmem:[%s364_s3] sm:$0xff] %vm231_vm3, %v256_v45  ;;  %v257_v49 = vpack.c.bf16 %v200_v47, %v199_v41 }
  0xf6   :  { %234 = vst.msk [vmem:[%s364_s3 + $0x10] sm:$0xff] %vm231_vm3, %v258_v46  ;;  %v259_v50 = vpack.c.bf16 %v204_v48, %v203_v42 }
  0xf7   :  { %233 = vst.msk [vmem:[%s364_s3 + $0x8] sm:$0xff] %vm231_vm3, %v257_v49 }
  0xf8   :  { %235 = vst.msk [vmem:[%s364_s3 + $0x18] sm:$0xff] %vm231_vm3, %v259_v50 }

// kernel: _lambda_.28
= control target key start
LH: loop header
LB: loop body
LE: loop exit
PB: predicated region body
PF: predicated region fallthrough
CT: control target
= control target key end

     0   :  { %vm20_vm0 = vcmask 523264   ;;  %v211_v1 = vmov 0   ;;  %v212_v2 = vmov 0.0   ;;  %v147_v11 = vlaneseq  ;;  %s274_s1 = inlined_call_operand.vmem [shape: bf16[64,192], index: 1, kind: input, shape index: {}]   ;;  %s275_s0 = inlined_call_operand.vmem [shape: bf16[16,64], index: 0, kind: input, shape index: {}]   ;;  %s276_s2 = inlined_call_operand.vmem [shape: f32[1,192], index: 2, kind: input, shape index: {}]   ;;  %s277_s3 = inlined_call_operand.vmem [shape: bf16[16,192], index: 3, kind: output, shape index: {}]  }
   0x1   :  { %v198_v0 = vld [vmem:[%s274_s1 + $0x4] ss:$8 sps:$4 sm:$0xff]   ;;  %119 = vmatprep.mubr.bf16.mxu0 %v211_v1  ;;  %21 = vst.msk [vmem:[#allocation2 + $0x8] sm:$0xff] %vm20_vm0, %v212_v2  ;;  %23 = vst.msk [vmem:[#allocation2 + $0x18] sm:$0xff] %vm20_vm0, %v212_v2  ;;  %v200_v3 = vld [vmem:[%s274_s1] ss:$8 sps:$4 sm:$0xff]  }
   0x2   :  { %87 = vmatprep.subr.bf16.mxu0 %v198_v0  ;;  %v201_v4 = vld [vmem:[%s274_s1 + $0x14] ss:$8 sps:$4 sm:$0xff]   ;;  %v203_v5 = vld [vmem:[%s274_s1 + $0x10] ss:$8 sps:$4 sm:$0xff]   ;;  %v204_v6 = vld [vmem:[%s274_s1 + $0x24] ss:$8 sps:$4 sm:$0xff]  }
   0x3   :  { %88 = vmatpush1.bf16.msra.mxu0 %v200_v3  ;;  %v206_v7 = vld [vmem:[%s274_s1 + $0x20] ss:$8 sps:$4 sm:$0xff]   ;;  %v207_v8 = vld [vmem:[%s274_s1 + $0x34] ss:$8 sps:$4 sm:$0xff]   ;;  %v209_v9 = vld [vmem:[%s274_s1 + $0x30] ss:$8 sps:$4 sm:$0xff]  }
   0x4   :  { %89 = vmatprep.subr.bf16.mxu0 %v201_v4  ;;  %v210_v10 = vld [vmem:[%s275_s0] sm:$0xff]   ;;  %v148_v14 = vshrl.u32 %v147_v11, 7  ;;  %vm173_vm1 = vcmask 1043456   ;;  %vm174_vm2 = vcmask 523268  }
   0x5   :  { %v145_v23 = vld [vmem:[%s276_s2] sm:$0x3]  ;;  %vm175_vm3 = vmor %vm174_vm2, %vm173_vm1 }
   0x6   :  { %v149_v20 = vsub.s32 0, %v148_v14  ;;  %v153_v21 = vsub.s32 1, %v148_v14 }
   0x7   :  { %90 = vmatpush1.bf16.msra.mxu0 %v203_v5 }
   0x8   :  { %91 = vmatprep.subr.bf16.mxu0 %v204_v6  ;;  %v25_v12 = vld [vmem:[#allocation2 + $0x8] sm:$0xff]  ;;  %v27_v16 = vld [vmem:[#allocation2 + $0x18] sm:$0xff]  ;;  %v150_v24 = vrot.slane %v145_v23, %v149_v20  ;;  %v154_v25 = vrot.slane %v145_v23, %v153_v21 }
   0xb   :  { %92 = vmatpush1.bf16.msra.mxu0 %v206_v7 }
   0xc   :  { %93 = vmatprep.subr.bf16.mxu0 %v207_v8 }
   0xf   :  { %94 = vmatpush1.bf16.msra.mxu0 %v209_v9 }
  0x12   :  { %191 = vmatmul.mubr.msk.bf16.vlgmr.msra.gmra.mrb[0].mxu0 %vm20_vm0, %v210_v10 }
  0xe5   :  { %v121_v13 = vpop.f32.mrb[0].mxu0 }
  0xe6   :  { %v123_v15 = vpop.f32.mrb[1].mxu0  ;;  %v157_v27 = vadd.f32 %v150_v24, %v121_v13 }
  0xe7   :  { %v131_v17 = vadd.f32 %v123_v15, %v25_v12  ;;  %v125_v18 = vpop.f32.mrb[2].mxu0 }
  0xe8   :  { %v127_v19 = vpop.f32.mrb[3].mxu0  ;;  %v159_v31 = vadd.f32 %v150_v24, %v125_v18 }
  0xe9   :  { %135 = vst.msk [vmem:[#allocation2 + $0x8] sm:$0xff] %vm20_vm0, %v131_v17  ;;  %v133_v22 = vadd.f32 %v127_v19, %v27_v16 }
  0xeb   :  { %137 = vst.msk [vmem:[#allocation2 + $0x18] sm:$0xff] %vm20_vm0, %v133_v22 }
  0xf0   :  { %v142_v26 = vld [vmem:[#allocation2 + $0x8] sm:$0xff] }
  0xf1   :  { %v158_v28 = vadd.f32 %v154_v25, %v142_v26 }
  0xf2   :  { %v144_v29 = vld [vmem:[#allocation2 + $0x18] sm:$0xff] }
  0xf3   :  { %v194_v30 = vpack.c.bf16 %v158_v28, %v157_v27  ;;  %v160_v32 = vadd.f32 %v154_v25, %v144_v29 }
  0xf5   :  { %176 = vst.msk [vmem:[%s277_s3] sm:$0xff] %vm175_vm3, %v194_v30  ;;  %v195_v33 = vpack.c.bf16 %v160_v32, %v159_v31 }
  0xf7   :  { %177 = vst.msk [vmem:[%s277_s3 + $0x8] sm:$0xff] %vm175_vm3, %v195_v33 }

// kernel: _lambda_.27
= control target key start
LH: loop header
LB: loop body
LE: loop exit
PB: predicated region body
PF: predicated region fallthrough
CT: control target
= control target key end

     0   :  { %s433_s12 = smov 0   ;;  %s435_s13 = smov 0   ;;  %s478_s0 = inlined_call_operand.vmem [shape: f32[2,8,64], index: 0, kind: input, shape index: {}]   ;;  %s479_s1 = inlined_call_operand.vmem [shape: f32[2,1,64], index: 1, kind: input, shape index: {}]   ;;  %s480_s2 = inlined_call_operand.vmem [shape: f32[2,1,64], index: 2, kind: input, shape index: {}]   ;;  %s481_s3 = inlined_call_operand.vmem [shape: bf16[2,8,64], index: 3, kind: output, shape index: {}]  }
   0x1   :  { %s437_s14 = smov 0  }
   0x2 LB: > { %s25_s15 = sadd.s32 1, %s407_s13  ;;  %p357_p0 = scmp.ge.s32.totalorder %s411_s14, 1  ;;  %s411_s14 = sphi %s437_s14, %s13_s14   ;;  %s407_s13 = sphi %s435_s13, %s483_s13   ;;  %s403_s12 = sphi %s433_s12, %s482_s12  }
   0x3   : > { %p27_p1 = scmp.ge.s32.totalorder %s25_s15, 2  ;;  %p171_p2 = scmp.lt.s32.totalorder %s411_s14, 3 }
   0x5   : > { %s485_s15 = smov (%p27_p1, %s25_s15), 0  ;;  %p172_p3 = pnand %p357_p0, %p171_p2 }
   0x6   : > { %p205_p4 = scmp.lt.s32.totalorder (!%p172_p3), %s403_s12, 1  ;;  %vm226_vm0 = vcmask (!%p172_p3), 523264   ;;  %v244_v9 = vlaneseq (!%p172_p3)  ;;  %vm259_vm1 = vcmask (!%p172_p3), 519168  }
   0x7   : > { %175 = sbr.rel (%p172_p3) target bundleno = 334 (0x14e), region = 32 }
   0x8   : > { %v245_v11 = vshrl.u32 (!%p172_p3), %v244_v9, 7 }
   0xa   : > { %v246_v14 = vsub.s32 (!%p172_p3), 0, %v245_v11 }
   0xe   : > { %s487_s12 = smov (!%p205_p4, %s403_s12), 1 }
   0xf   : > { %s358_s16 = sshll.u32 %s487_s12, 3  ;;  %s214_s22 = scalar_lea.vmem %s479_s1, %s487_s12 }
  0x10   : > { %s211_s19 = scalar_lea.vmem %s478_s0, %s358_s16  ;;  %v241_v12 = vld [vmem:[%s214_s22] sm:$0x1]  ;;  %s217_s25 = scalar_lea.vmem %s480_s2, %s487_s12 }
  0x11   : > { %v225_v0 = vld [vmem:[%s211_s19] sm:$0xff]  ;;  %v242_v13 = vadd.f32 1.0, %v241_v12  ;;  %s359_s26 = sshll.u32 %s487_s12, 2 }
  0x12   : > { %v227_v1 = vsel %vm226_vm0, %v225_v0, 0.0  ;;  %v360_v18 = vld [vmem:[%s217_s25] ss:$0 sm:$0xff]  ;;  %s224_s29 = scalar_lea.vmem %s481_s3, %s359_s26 }
  0x13   : > { %228 = vadd.xlane.f32.xlu0 %v227_v1  ;;  %v247_v15 = vrot.slane %v242_v13, %v246_v14 }
  0xa0   : > { %v229_v2 = vpop.xlane.xlu0 %228 }
  0xa1   : > { %v231_v3 = vmul.f32 0.015625, %v229_v2 }
  0xa3   : > { %v232_v4 = vsub.f32 %v225_v0, %v231_v3 }
  0xa5   : > { %v233_v5 = vmul.f32 %v232_v4, %v232_v4 }
  0xa7   : > { %v234_v6 = vsel %vm226_vm0, %v233_v5, 0.0 }
  0xa8   : > { %235 = vadd.xlane.f32.xlu0 %v234_v6 }
 0x135   : > { %v236_v7 = vpop.xlane.xlu0 %235 }
 0x136   : > { %v237_v8 = vmul.f32 0.015625, %v236_v7 }
 0x138   : > { %v238_v10 = vadd.f32 1e-06, %v237_v8 }
 0x13a   : > { %387 = vrsqrt.f32 %v238_v10 }
 0x144   : > { %v388_v16 = vpop.eup %387 }
 0x145   : > { %v240_v17 = vmul.f32 %v388_v16, %v232_v4 }
 0x147   : > { %v249_v19 = vmul.f32 %v247_v15, %v240_v17 }
 0x149   : > { %v257_v20 = vadd.f32 %v360_v18, %v249_v19 }
 0x14b   : > { %v258_v21 = vpack.c.bf16 %v257_v20, %v257_v20 }
 0x14d   : > { %260 = vst.msk [vmem:[%s224_s29] sm:$0xf] %vm259_vm1, %v258_v21 }
 0x14e PF: > { %s13_s14 = sadd.s32 1, %s411_s14   ;;  %s482_s12 = smov %s407_s13 }
 0x14f   : > { %p10_p5 = scmp.ge.s32.totalorder %s13_s14, 4   ;;  %s483_s13 = smov %s485_s15 }
 0x151   :  { %12 = sbr.rel (!%p10_p5) target bundleno = 2 (0x2), region = 68 }

// kernel: _lambda_.24
= control target key start
LH: loop header
LB: loop body
LE: loop exit
PB: predicated region body
PF: predicated region fallthrough
CT: control target
= control target key end

     0   :  { %vm19_vm0 = vcmask 523264   ;;  %v151_v0 = vmov 0.0   ;;  %vm152_vm1 = vmmov 0   ;;  %vm55_vm2 = vcmask 392192   ;;  %s200_s1 = inlined_call_operand.vmem [shape: bf16[48,64], index: 1, kind: input, shape index: {}]   ;;  %s201_s0 = inlined_call_operand.vmem [shape: bf16[16,48], index: 0, kind: input, shape index: {}]   ;;  %s202_s2 = inlined_call_operand.vmem [shape: f32[1,64], index: 2, kind: input, shape index: {}]   ;;  %s203_s3 = inlined_call_operand.vmem [shape: f32[16,64], index: 3, kind: output, shape index: {}]  }
   0x1   :  { %135 = vmatprep.subr.bf16.mxu0 %v151_v0  ;;  %v147_v1 = vld [vmem:[%s200_s1] sm:$0xff]   ;;  %141 = vmatprep.mubr.msk.bf16.mxu0 %vm152_vm1, %v151_v0  ;;  %20 = vst.msk [vmem:[#allocation2] sm:$0xff] %vm19_vm0, %v151_v0  ;;  %21 = vst.msk [vmem:[#allocation2 + $0x8] sm:$0xff] %vm19_vm0, %v151_v0  ;;  %v148_v2 = vld [vmem:[%s200_s1 + $0x8] sm:$0xff]  }
   0x2   :  { %136 = vmatpush3.bf16.msra.mxu0 %v147_v1  ;;  %v149_v3 = vld [vmem:[%s200_s1 + $0x10] sm:$0xff]   ;;  %v150_v4 = vld [vmem:[%s201_s0] sm:$0xff]  }
   0x3   :  { %137 = vmatprep.subr.bf16.mxu0 %v151_v0  ;;  %v130_v13 = vld [vmem:[%s202_s2] ss:$0 sm:$0xff] }
   0x6   :  { %138 = vmatpush3.bf16.msra.mxu0 %v148_v2 }
   0x7   :  { %139 = vmatprep.subr.bf16.mxu0 %v151_v0 }
   0x8   :  { %v22_v5 = vld [vmem:[#allocation2] sm:$0xff]  ;;  %v23_v7 = vld [vmem:[#allocation2 + $0x8] sm:$0xff] }
   0xa   :  { %140 = vmatpush3.bf16.msra.mxu0 %v149_v3 }
   0xd   :  { %142 = vmatmul.mubr.msk.bf16.vlgmr.msra.gmra.mrb[0].mxu0 %vm55_vm2, %v150_v4 }
  0xe0   :  { %v93_v6 = vpop.f32.mrb[0].mxu0 }
  0xe1   :  { %v100_v8 = vadd.f32 %v93_v6, %v22_v5  ;;  %v143_v9 = vpop.f32.mrb[1].mxu0 }
  0xe2   :  { %v96_v10 = vpop.f32.mrb[2].mxu0 }
  0xe3   :  { %103 = vst.msk [vmem:[#allocation2] sm:$0xff] %vm19_vm0, %v100_v8  ;;  %v101_v11 = vadd.f32 %v96_v10, %v23_v7  ;;  %v144_v12 = vpop.f32.mrb[3].mxu0 }
  0xe5   :  { %104 = vst.msk [vmem:[#allocation2 + $0x8] sm:$0xff] %vm19_vm0, %v101_v11 }
  0xea   :  { %v108_v14 = vld [vmem:[#allocation2] sm:$0xff] }
  0xeb   :  { %v117_v15 = vadd.f32 %v130_v13, %v108_v14 }
  0xec   :  { %v109_v16 = vld [vmem:[#allocation2 + $0x8] sm:$0xff] }
  0xed   :  { %119 = vst.msk [vmem:[%s203_s3] sm:$0xff] %vm19_vm0, %v117_v15  ;;  %v118_v17 = vadd.f32 %v130_v13, %v109_v16 }
  0xef   :  { %120 = vst.msk [vmem:[%s203_s3 + $0x8] sm:$0xff] %vm19_vm0, %v118_v17 }

// kernel: _lambda_.29
= control target key start
LH: loop header
LB: loop body
LE: loop exit
PB: predicated region body
PF: predicated region fallthrough
CT: control target
= control target key end

     0   :  { %s1459_s18 = smov 0   ;;  %s1461_s19 = smov 0   ;;  %s1575_s0 = inlined_call_operand.vmem [shape: bf16[2,2,24,32], index: 0, kind: input, shape index: {}]   ;;  %s1576_s1 = inlined_call_operand.vmem [shape: bf16[2,2,24,32], index: 1, kind: input, shape index: {}]   ;;  %s1577_s2 = inlined_call_operand.vmem [shape: bf16[2,2,24,32], index: 2, kind: input, shape index: {}]   ;;  %s1578_s3 = inlined_call_operand.vmem [shape: f32[24,8], index: 3, kind: input, shape index: {}]   ;;  %s1579_s4 = inlined_call_operand.vmem [shape: f32[8,24], index: 4, kind: input, shape index: {}]   ;;  %s1580_s5 = inlined_call_operand.vmem [shape: bf16[2,2,24,32], index: 5, kind: output, shape index: {}]  }
   0x1   :  { %s1463_s20 = smov 0   ;;  %s1465_s21 = smov 0  }
   0x2   :  { %s1467_s22 = smov 0  }
   0x3 LB: > { %s37_s23 = sadd.s32 1, %s1415_s20  ;;  %s41_s24 = sadd.s32 1, %s1419_s21  ;;  %s1423_s22 = sphi %s1467_s22, %s15_s22   ;;  %s1419_s21 = sphi %s1465_s21, %s1584_s21   ;;  %s1415_s20 = sphi %s1463_s20, %s1583_s20   ;;  %s1411_s19 = sphi %s1461_s19, %s1582_s19   ;;  %s1407_s18 = sphi %s1459_s18, %s1581_s18  }
   0x4   : > { %p39_p0 = scmp.ge.s32.totalorder %s37_s23, 2  ;;  %p1241_p1 = scmp.ge.s32.totalorder %s1423_s22, 1 }
   0x5   : > { %p296_p2 = scmp.lt.s32.totalorder %s1423_s22, 5 }
   0x6   : > { %s1586_s23 = smov (%p39_p0, %s37_s23), 0  ;;  %s1588_s24 = smov (!%p39_p0, %s41_s24), %s1419_s21 }
   0x7   : > { %p297_p3 = pnand %p1241_p1, %p296_p2  ;;  %p43_p4 = scmp.ge.s32.totalorder %s1588_s24, 2 }
   0x8   : > { %p376_p5 = scmp.lt.s32.totalorder (!%p297_p3), %s1411_s19, 1  ;;  %p378_p6 = scmp.lt.s32.totalorder (!%p297_p3), %s1407_s18, 1  ;;  %vm453_vm0 = vcmask (!%p297_p3), 261120   ;;  %v552_v0 = vld [vmem:[%s1579_s4] sm:$0xff] (!%p297_p3)  ;;  %v1425_v1 = vmov (!%p297_p3), 0.0   ;;  %vm1426_vm1 = vmmov (!%p297_p3), 0  }
   0x9   : > { %s1590_s24 = smov (%p43_p4, %s1588_s24), 0  ;;  %300 = sbr.rel (%p297_p3) target bundleno = 848 (0x350), region = 40 }
   0xa   : > { %1291 = vmatprep.subr.mxu1 (!%p297_p3), %v1425_v1  ;;  %454 = vst.msk [vmem:[#allocation4] sm:$0xff] (!%p297_p3), %vm453_vm0, %v1425_v1  ;;  %455 = vst.msk [vmem:[#allocation4 + $0x8] sm:$0xff] (!%p297_p3), %vm453_vm0, %v1425_v1  ;;  %1293 = vmatprep.mubr.msk.f32.mxu1 (!%p297_p3), %vm1426_vm1, %v1425_v1  ;;  %v549_v2 = vld [vmem:[%s1578_s3] sm:$0xff] (!%p297_p3)  ;;  %vm553_vm2 = vcmask (!%p297_p3), 64512   ;;  %v550_v3 = vld [vmem:[%s1578_s3 + $0x8] sm:$0xff] (!%p297_p3)  ;;  %vm446_vm3 = vcmask (!%p297_p3), 7168  }
   0xb   : > { %456 = vst.msk [vmem:[#allocation4 + $0x10] sm:$0xff] (!%p297_p3), %vm453_vm0, %v1425_v1  ;;  %1292 = vmatpush3.msra.mxu1 (!%p297_p3), %v552_v0  ;;  %v551_v4 = vld [vmem:[%s1578_s3 + $0x10] sm:$0xff] (!%p297_p3)  ;;  %v1427_v11 = vmov (!%p297_p3), -1e+30   ;;  %vm652_vm6 = vcmask (!%p297_p3), 195584   ;;  %v1428_v28 = vmov (!%p297_p3), 0  }
   0xc   : > { %1294 = vmatmul.mubr.msk.f32.vlgmr.msra.gmra.mrb[0].mxu1 (!%p297_p3), %vm553_vm2, %v549_v2  ;;  %449 = vst.msk [vmem:[#allocation2 + $0x10] sm:$0xff] (!%p297_p3), %vm446_vm3, %v1427_v11  ;;  %447 = vst.msk [vmem:[#allocation2] sm:$0xff] (!%p297_p3), %vm446_vm3, %v1427_v11  ;;  %1359 = vset.pattern.permute.xlu1 (!%p297_p3), %v1428_v28  ;;  %vm758_vm8 = vcmask (!%p297_p3), 1043456   ;;  %vm1035_vm9 = vcmask (!%p297_p3), 257024  }
   0xd   : > { %1296 = vmatprep.mubr.msk.f32.mxu1 (!%p297_p3), %vm1426_vm1, %v1425_v1  ;;  %448 = vst.msk [vmem:[#allocation2 + $0x8] sm:$0xff] (!%p297_p3), %vm446_vm3, %v1427_v11  ;;  %450 = vst.msk [vmem:[#allocation3] sm:$0xff] (!%p297_p3), %vm446_vm3, %v1425_v1  ;;  %1360 = vset.pattern.permute.xlu0 (!%p297_p3), %v1428_v28 }
   0xe   : > { %451 = vst.msk [vmem:[#allocation3 + $0x8] sm:$0xff] (!%p297_p3), %vm446_vm3, %v1425_v1  ;;  %452 = vst.msk [vmem:[#allocation3 + $0x10] sm:$0xff] (!%p297_p3), %vm446_vm3, %v1425_v1 }
  0x10   : > { %s1592_s19 = smov (!%p376_p5, %s1411_s19), 1  ;;  %s1594_s18 = smov (!%p378_p6, %s1407_s18), 1  ;;  %1297 = vmatmul.mubr.msk.f32.gmra.mrb[2].mxu1 %vm553_vm2, %v550_v3 }
  0x11   : > { %s1314_s29 = smul.u32 6, %s1592_s19  ;;  %1299 = vmatprep.mubr.msk.f32.mxu1 %vm1426_vm1, %v1425_v1 }
  0x12   : > { %s1313_s7 = smul.u32 3, %s1594_s18 }
  0x13   : > { %v651_v29 = vld [vmem:[#allocation2 + $0x10] sm:$0xff]  ;;  %v649_v30 = vld [vmem:[#allocation2] sm:$0xff] }
  0x14   : > { %s385_s8 = sadd.s32 %s1314_s29, %s1313_s7  ;;  %1300 = vmatmul.mubr.msk.f32.gmra.mrb[4].mxu1 %vm553_vm2, %v551_v4  ;;  %v650_v36 = vld [vmem:[#allocation2 + $0x8] sm:$0xff]  ;;  %v698_v3 = vld [vmem:[#allocation3] sm:$0xff] }
  0x15   : > { %s1509_s9 = sshll.u32 %s385_s8, 2 }
  0x16   : > { %s401_s14 = scalar_lea.vmem %s1576_s1, %s1509_s9  ;;  %s387_s17 = scalar_lea.vmem %s1575_s0, %s1509_s9 }
  0x17   : > { %v1361_v5 = vld [vmem:[%s401_s14] sm:$0xff]   ;;  %v1362_v6 = vld [vmem:[%s401_s14 + $0x8] ss:$0 sps:$4 sm:$0xff]   ;;  %s415_s25 = scalar_lea.vmem %s1577_s2, %s1509_s9  ;;  %s439_s28 = scalar_lea.vmem %s1580_s5, %s1509_s9 }
  0x18   : > { %v1363_v7 = vld [vmem:[%s387_s17] sm:$0xff]   ;;  %1310 = vmatprep.subr.msk.bf16.mxu0 %vm453_vm0, %v1361_v5  ;;  %v490_v8 = vsel %vm453_vm0, %v1361_v5, 0  ;;  %v493_v9 = vsel %vm453_vm0, %v1362_v6, 0  ;;  %v1364_v10 = vld [vmem:[%s387_s17 + $0x8] ss:$0 sps:$4 sm:$0xff]  }
  0x19   : > { %1284 = vmatpush3.bf16.xpose.msra.mxu0 %v490_v8  ;;  %1287 = vmatprep.mubr.msk.bf16.mxu0 %vm453_vm0, %v1363_v7  ;;  %v1365_v41 = vld [vmem:[%s415_s25] sm:$0xff]   ;;  %v1366_v42 = vld [vmem:[%s415_s25 + $0x8] ss:$0 sps:$4 sm:$0xff]  }
  0x1a   : > { %1311 = vmatprep.subr.msk.bf16.mxu0 %vm453_vm0, %v1362_v6  ;;  %1302 = vmatprep.subr.bf16.mxu1 %v1365_v41  ;;  %v760_v43 = vsel %vm758_vm8, %v1366_v42, 0  ;;  %v700_v6 = vld [vmem:[#allocation3 + $0x10] sm:$0xff]  ;;  %v699_v8 = vld [vmem:[#allocation3 + $0x8] sm:$0xff] }
  0x1b   : > { %1303 = vmatpush3.bf16.msra.mxu1 %v1365_v41 }
  0x1c   : > { %1312 = vmatprep.subr.msk.bf16.mxu1 %vm758_vm8, %v1366_v42 }
  0x1f   : > { %1305 = vmatpush3.bf16.msra.mxu1 %v760_v43 }
  0x21   : > { %1286 = vmatpush3.bf16.xpose.msra.mxu0 %v493_v9 }
  0x28   : > { %1288 = vmatmul.mubr.msk.bf16.vlgmr.msra.gmra.mrb[0].mxu0 %vm453_vm0, %v1364_v10 }
  0xdf   : > { %v629_v12 = vpop.f32.mrb[0].mxu1 }
  0xe0   : > { %v1295_v13 = vpop.f32.mrb[1].mxu1  ;;  %vm643_vm5 = vcmp.gt.f32.partialorder %v629_v12, 0.0 }
  0xe3   : > { %v634_v14 = vpop.f32.mrb[2].mxu1 }
  0xe4   : > { %v1298_v15 = vpop.f32.mrb[3].mxu1  ;;  %vm644_vm7 = vcmp.gt.f32.partialorder %v634_v14, 0.0 }
  0xe7   : > { %v639_v16 = vpop.f32.mrb[4].mxu1 }
  0xe8   : > { %v1301_v17 = vpop.f32.mrb[5].mxu1  ;;  %vm645_vm4 = vcmp.gt.f32.partialorder %v639_v16, 0.0 }
  0xfb   : > { %v1289_v18 = vpop.f32.mrb[0].mxu0 }
  0xfc   : > { %v648_v19 = vsel %vm645_vm4, %v1289_v18, -1e+30  ;;  %v529_v20 = vpop.f32.mrb[1].mxu0 }
  0xfd   : > { %v646_v21 = vsel %vm643_vm5, %v529_v20, -1e+30  ;;  %v1290_v22 = vpop.f32.mrb[2].mxu0  ;;  %v659_v23 = vsel %vm652_vm6, %v648_v19, -inf }
  0xfe   : > { %660 = vmax.xlane.f32.xlu1 %v659_v23  ;;  %v532_v24 = vpop.f32.mrb[3].mxu0  ;;  %v653_v25 = vsel %vm652_vm6, %v646_v21, -inf  ;;  %v722_v22 = vld [vmem:[#allocation4 + $0x10] sm:$0xff] }
  0xff   : > { %v647_v26 = vsel %vm644_vm7, %v532_v24, -1e+30  ;;  %654 = vmax.xlane.f32.xlu0 %v653_v25  ;;  %v720_v24 = vld [vmem:[#allocation4] sm:$0xff] }
 0x100   : > { %v656_v27 = vsel %vm652_vm6, %v647_v26, -inf }
 0x103   : > { %657 = vmax.xlane.f32.xlu0 %v656_v27 }
 0x18b   : > { %v661_v31 = vpop.xlane.xlu1 %660 }
 0x18c   : > { %v664_v32 = vmax.f32 %v651_v29, %v661_v31  ;;  %v655_v33 = vpop.xlane.xlu0 %654 }
 0x18d   : > { %v662_v34 = vmax.f32 %v649_v30, %v655_v33 }
 0x18e   : > { %v667_v35 = vsub.f32 %v651_v29, %v664_v32  ;;  %818 = vst.msk [vmem:[#allocation2 + $0x10] sm:$0xff] %vm446_vm3, %v664_v32 }
 0x18f   : > { %v665_v37 = vsub.f32 %v649_v30, %v662_v34  ;;  %816 = vst.msk [vmem:[#allocation2] sm:$0xff] %vm446_vm3, %v662_v34  ;;  %676 = vperm.xlu1 %1359, %v662_v34  }
 0x190   : > { %v658_v38 = vpop.xlane.xlu0 %657  ;;  %v672_v63 = vmul.f32 1.442695, %v667_v35 }
 0x191   : > { %v663_v39 = vmax.f32 %v650_v36, %v658_v38  ;;  %v668_v61 = vmul.f32 1.442695, %v665_v37 }
 0x193   : > { %v666_v40 = vsub.f32 %v650_v36, %v663_v39  ;;  %817 = vst.msk [vmem:[#allocation2 + $0x8] sm:$0xff] %vm446_vm3, %v663_v39  ;;  %686 = vperm.xlu1 %1359, %v664_v32   ;;  %681 = vperm.xlu0 %1360, %v663_v39  }
 0x195   : > { %v670_v62 = vmul.f32 1.442695, %v666_v40 }
 0x20e   : > { %v677_v44 = vpop.permute.xlu1 %676 }
 0x20f   : > { %v689_v45 = vsub.f32 %v646_v21, %v677_v44 }
 0x211   : > { %v692_v46 = vmul.f32 1.442695, %v689_v45 }
 0x212   : > { %v687_v47 = vpop.permute.xlu1 %686  ;;  %v682_v48 = vpop.permute.xlu0 %681 }
 0x213   : > { %1367 = vpow2.f32 %v692_v46  ;;  %v691_v49 = vsub.f32 %v648_v19, %v687_v47  ;;  %v690_v50 = vsub.f32 %v647_v26, %v682_v48  ;;  %v721_v26 = vld [vmem:[#allocation4 + $0x8] sm:$0xff] }
 0x215   : > { %v696_v51 = vmul.f32 1.442695, %v691_v49  ;;  %v694_v52 = vmul.f32 1.442695, %v690_v50 }
 0x217   : > { %1369 = vpow2.f32 %v696_v51 }
 0x218   : > { %1371 = vpow2.f32 %v694_v52 }
 0x219   : > { %1373 = vpow2.f32 %v668_v61 }
 0x21a   : > { %1375 = vpow2.f32 %v670_v62 }
 0x21b   : > { %1377 = vpow2.f32 %v672_v63 }
 0x21d   : > { %v1368_v53 = vpop.eup %1367 }
 0x21e   : > { %v704_v54 = vsel %vm652_vm6, %v1368_v53, 0.0 }
 0x21f   : > { %705 = vadd.xlane.f32.xlu1 %v704_v54 }
 0x221   : > { %v1370_v55 = vpop.eup %1369 }
 0x222   : > { %v1372_v56 = vpop.eup %1371  ;;  %v742_v57 = vpack.c.bf16 %v1370_v55, %v1370_v55  ;;  %v710_v58 = vsel %vm652_vm6, %v1370_v55, 0.0 }
 0x223   : > { %711 = vadd.xlane.f32.xlu1 %v710_v58  ;;  %v707_v59 = vsel %vm652_vm6, %v1372_v56, 0.0  ;;  %v741_v60 = vpack.c.bf16 %v1372_v56, %v1368_v53  ;;  %v1374_v0 = vpop.eup %1373 }
 0x224   : > { %708 = vadd.xlane.f32.xlu0 %v707_v59  ;;  %v1376_v1 = vpop.eup %1375  ;;  %v701_v4 = vmul.f32 %v1374_v0, %v698_v3 }
 0x225   : > { %1306 = vmatprep.mubr.msk.bf16.mxu1 %vm652_vm6, %v741_v60  ;;  %v1378_v2 = vpop.eup %1377  ;;  %v702_v11 = vmul.f32 %v1376_v1, %v699_v8 }
 0x226   : > { %1307 = vmatmul.mubr.msk.bf16.vlgmr.msra.gmra.mrb[8].mxu1 %vm652_vm6, %v742_v57  ;;  %v703_v9 = vmul.f32 %v1378_v2, %v700_v6 }
 0x234   : > { %725 = vperm.xlu1 %1359, %v1374_v0  }
 0x238   : > { %730 = vperm.xlu1 %1359, %v1376_v1  }
 0x23a   : > { %735 = vperm.xlu0 %1360, %v1378_v2  }
 0x2ac   : > { %v706_v5 = vpop.xlane.xlu1 %705 }
 0x2ad   : > { %v713_v7 = vadd.f32 %v706_v5, %v701_v4 }
 0x2af   : > { %717 = vst.msk [vmem:[#allocation3] sm:$0xff] %vm446_vm3, %v713_v7 }
 0x2b0   : > { %v712_v10 = vpop.xlane.xlu1 %711 }
 0x2b1   : > { %v715_v12 = vadd.f32 %v712_v10, %v703_v9  ;;  %v709_v13 = vpop.xlane.xlu0 %708 }
 0x2b2   : > { %v714_v14 = vadd.f32 %v709_v13, %v702_v11 }
 0x2b3   : > { %719 = vst.msk [vmem:[#allocation3 + $0x10] sm:$0xff] %vm446_vm3, %v715_v12 }
 0x2b4   : > { %718 = vst.msk [vmem:[#allocation3 + $0x8] sm:$0xff] %vm446_vm3, %v714_v14  ;;  %v726_v21 = vpop.permute.xlu1 %725 }
 0x2b5   : > { %v738_v28 = vmul.f32 %v726_v21, %v720_v24 }
 0x2b6   : > { %v995_v15 = vld [vmem:[#allocation3] sm:$0xff] }
 0x2b7   : > { %1379 = vrcp.f32 %v995_v15 }
 0x2b8   : > { %v731_v27 = vpop.permute.xlu1 %730 }
 0x2b9   : > { %v736_v23 = vpop.permute.xlu0 %735  ;;  %v739_v32 = vmul.f32 %v731_v27, %v721_v26 }
 0x2ba   : > { %v997_v17 = vld [vmem:[#allocation3 + $0x10] sm:$0xff]  ;;  %v740_v25 = vmul.f32 %v736_v23, %v722_v22 }
 0x2bb   : > { %v996_v16 = vld [vmem:[#allocation3 + $0x8] sm:$0xff] }
 0x2bc   : > { %1381 = vrcp.f32 %v996_v16 }
 0x2bd   : > { %1383 = vrcp.f32 %v997_v17 }
 0x2c1   : > { %v1380_v18 = vpop.eup %1379 }
 0x2c2   : > { %1006 = vperm.xlu1 %1359, %v1380_v18  }
 0x2c6   : > { %v1382_v19 = vpop.eup %1381 }
 0x2c7   : > { %1011 = vperm.xlu1 %1359, %v1382_v19   ;;  %v1384_v20 = vpop.eup %1383 }
 0x2cb   : > { %1016 = vperm.xlu1 %1359, %v1384_v20  }
 0x2f9   : > { %v1308_v29 = vpop.f32.mrb[8].mxu1 }
 0x2fa   : > { %v812_v30 = vadd.f32 %v1308_v29, %v740_v25  ;;  %v796_v31 = vpop.f32.mrb[9].mxu1 }
 0x2fb   : > { %v810_v33 = vadd.f32 %v796_v31, %v738_v28  ;;  %v1309_v34 = vpop.f32.mrb[10].mxu1 }
 0x2fc   : > { %815 = vst.msk [vmem:[#allocation4 + $0x10] sm:$0xff] %vm453_vm0, %v812_v30  ;;  %v799_v35 = vpop.f32.mrb[11].mxu1 }
 0x2fd   : > { %813 = vst.msk [vmem:[#allocation4] sm:$0xff] %vm453_vm0, %v810_v33  ;;  %v811_v36 = vadd.f32 %v799_v35, %v739_v32 }
 0x2ff   : > { %814 = vst.msk [vmem:[#allocation4 + $0x8] sm:$0xff] %vm453_vm0, %v811_v36 }
 0x303   : > { %v1003_v45 = vld [vmem:[#allocation4 + $0x10] sm:$0xff] }
 0x304   : > { %v1001_v37 = vld [vmem:[#allocation4] sm:$0xff] }
 0x306   : > { %v1002_v41 = vld [vmem:[#allocation4 + $0x8] sm:$0xff] }
 0x341   : > { %v1007_v38 = vpop.permute.xlu1 %1006 }
 0x342   : > { %v1019_v39 = vmul.f32 %v1007_v38, %v1001_v37 }
 0x344   : > { %v1268_v40 = vpack.c.bf16 %v1019_v39, %v1019_v39 }
 0x346   : > { %1036 = vst.msk [vmem:[%s439_s28] sm:$0xf] %vm1035_vm9, %v1268_v40  ;;  %v1012_v42 = vpop.permute.xlu1 %1011 }
 0x347   : > { %v1020_v43 = vmul.f32 %v1012_v42, %v1002_v41 }
 0x349   : > { %v1269_v44 = vpack.c.bf16 %v1020_v43, %v1020_v43 }
 0x34a   : > { %v1017_v46 = vpop.permute.xlu1 %1016 }
 0x34b   : > { %1037 = vst.msk [vmem:[%s439_s28 + $0x4] sm:$0xf] %vm1035_vm9, %v1269_v44  ;;  %v1021_v47 = vmul.f32 %v1017_v46, %v1003_v45 }
 0x34d   : > { %v1270_v48 = vpack.c.bf16 %v1021_v47, %v1021_v47 }
 0x34f   : > { %1038 = vst.msk [vmem:[%s439_s28 + $0x8] sm:$0xf] %vm1035_vm9, %v1270_v48 }
 0x350 PF: > { %s15_s22 = sadd.s32 1, %s1423_s22   ;;  %s1581_s18 = smov %s1415_s20 }
 0x351   : > { %p12_p7 = scmp.ge.s32.totalorder %s15_s22, 6   ;;  %s1582_s19 = smov %s1419_s21 }
 0x352   : > { %s1583_s20 = smov %s1586_s23  ;;  %s1584_s21 = smov %s1590_s24 }
 0x353   :  { %14 = sbr.rel (!%p12_p7) target bundleno = 3 (0x3), region = 98 }

// kernel: _lambda_.34
= control target key start
LH: loop header
LB: loop body
LE: loop exit
PB: predicated region body
PF: predicated region fallthrough
CT: control target
= control target key end

     0   :  { %s781_s18 = smov 0   ;;  %s783_s19 = smov 0   ;;  %s844_s0 = inlined_call_operand.vmem [shape: bf16[2,8,64], index: 0, kind: input, shape index: {}]   ;;  %s845_s1 = inlined_call_operand.vmem [shape: bf16[64,64], index: 1, kind: input, shape index: {}]   ;;  %s846_s2 = inlined_call_operand.vmem [shape: f32[1,64], index: 2, kind: input, shape index: {}]   ;;  %s847_s3 = inlined_call_operand.vmem [shape: f32[2,8,64], index: 3, kind: input, shape index: {}]   ;;  %s848_s4 = inlined_call_operand.vmem [shape: f32[2,1,64], index: 4, kind: input, shape index: {}]   ;;  %s849_s5 = inlined_call_operand.vmem [shape: f32[2,8,64], index: 5, kind: output, shape index: {}]  }
   0x1   :  { %s785_s20 = smov 0  }
   0x2 LB: > { %s41_s21 = sadd.s32 1, %s743_s19  ;;  %p665_p0 = scmp.ge.s32.totalorder %s747_s20, 1  ;;  %s747_s20 = sphi %s785_s20, %s15_s20   ;;  %s743_s19 = sphi %s783_s19, %s851_s19   ;;  %s739_s18 = sphi %s781_s18, %s850_s18  }
   0x3   : > { %p43_p1 = scmp.ge.s32.totalorder %s41_s21, 2  ;;  %p282_p2 = scmp.lt.s32.totalorder %s747_s20, 3 }
   0x5   : > { %s853_s21 = smov (%p43_p1, %s41_s21), 0  ;;  %p283_p3 = pnand %p665_p0, %p282_p2 }
   0x6   : > { %v721_v0 = vld [vmem:[%s845_s1] sm:$0xff] (!%p283_p3)   ;;  %v749_v1 = vmov (!%p283_p3), 0.0   ;;  %v722_v2 = vld [vmem:[%s845_s1 + $0x8] sm:$0xff] (!%p283_p3)   ;;  %vm750_vm0 = vmmov (!%p283_p3), 0   ;;  %p347_p4 = scmp.lt.s32.totalorder (!%p283_p3), %s739_s18, 1  ;;  %vm400_vm1 = vcmask (!%p283_p3), 523264  }
   0x7   : > { %286 = sbr.rel (%p283_p3) target bundleno = 252 (0xfc), region = 40  ;;  %683 = vmatprep.subr.bf16.mxu0 (!%p283_p3), %v749_v1  ;;  %691 = vmatprep.mubr.msk.bf16.mxu0 (!%p283_p3), %vm750_vm0, %v749_v1  ;;  %401 = vst.msk [vmem:[#allocation2] sm:$0xff] (!%p283_p3), %vm400_vm1, %v749_v1  ;;  %v723_v3 = vld [vmem:[%s845_s1 + $0x10] sm:$0xff] (!%p283_p3)   ;;  %v724_v4 = vld [vmem:[%s845_s1 + $0x18] sm:$0xff] (!%p283_p3)   ;;  %v674_v12 = vld [vmem:[%s846_s2] ss:$0 sm:$0xff] (!%p283_p3) }
   0x8   : > { %684 = vmatpush3.bf16.msra.mxu0 (!%p283_p3), %v721_v0 }
   0x9   : > { %685 = vmatprep.subr.bf16.mxu0 (!%p283_p3), %v749_v1 }
   0xc   : > { %686 = vmatpush3.bf16.msra.mxu0 (!%p283_p3), %v722_v2 }
   0xd   : > { %687 = vmatprep.subr.bf16.mxu0 (!%p283_p3), %v749_v1 }
   0xe   : > { %s855_s18 = smov (!%p347_p4, %s739_s18), 1  ;;  %v402_v6 = vld [vmem:[#allocation2] sm:$0xff] }
   0xf   : > { %s666_s28 = sshll.u32 %s855_s18, 2  ;;  %s667_s9 = sshll.u32 %s855_s18, 3 }
  0x10   : > { %688 = vmatpush3.bf16.msra.mxu0 %v723_v3  ;;  %s356_s8 = scalar_lea.vmem %s844_s0, %s666_s28  ;;  %s384_s12 = scalar_lea.vmem %s848_s4, %s855_s18 }
  0x11   : > { %689 = vmatprep.subr.bf16.mxu0 %v749_v1  ;;  %v403_v5 = vld [vmem:[%s356_s8] sm:$0xf]  ;;  %s378_s17 = scalar_lea.vmem %s847_s3, %s667_s9  ;;  %s394_s24 = scalar_lea.vmem %s849_s5, %s667_s9 }
  0x12   : > { %v675_v13 = vld [vmem:[%s384_s12] ss:$0 sm:$0xff] }
  0x13   : > { %v494_v16 = vld [vmem:[%s378_s17] sm:$0xff] }
  0x14   : > { %690 = vmatpush3.bf16.msra.mxu0 %v724_v4 }
  0x17   : > { %692 = vmatmul.mubr.msk.bf16.vlgmr.msra.gmra.mrb[0].mxu0 %vm400_vm1, %v403_v5 }
  0xea   : > { %v474_v7 = vpop.f32.mrb[0].mxu0 }
  0xeb   : > { %v480_v8 = vadd.f32 %v474_v7, %v402_v6  ;;  %v693_v9 = vpop.f32.mrb[1].mxu0 }
  0xec   : > { %v477_v10 = vpop.f32.mrb[2].mxu0 }
  0xed   : > { %481 = vst.msk [vmem:[#allocation2] sm:$0xff] %vm400_vm1, %v480_v8  ;;  %v694_v11 = vpop.f32.mrb[3].mxu0 }
  0xf4   : > { %v485_v14 = vld [vmem:[#allocation2] sm:$0xff] }
  0xf5   : > { %v493_v15 = vadd.f32 %v674_v12, %v485_v14 }
  0xf7   : > { %v502_v17 = vmul.f32 %v675_v13, %v493_v15 }
  0xf9   : > { %v503_v18 = vadd.f32 %v502_v17, %v494_v16 }
  0xfb   : > { %504 = vst.msk [vmem:[%s394_s24] sm:$0xff] %vm400_vm1, %v503_v18 }
  0xfc PF: > { %s15_s20 = sadd.s32 1, %s747_s20   ;;  %s850_s18 = smov %s743_s19 }
  0xfd   : > { %p12_p5 = scmp.ge.s32.totalorder %s15_s20, 4   ;;  %s851_s19 = smov %s853_s21 }
  0xff   :  { %14 = sbr.rel (!%p12_p5) target bundleno = 2 (0x2), region = 90 }

// kernel: _lambda_.37
= control target key start
LH: loop header
LB: loop body
LE: loop exit
PB: predicated region body
PF: predicated region fallthrough
CT: control target
= control target key end

     0   :  { %s930_s18 = smov 0   ;;  %s932_s19 = smov 0   ;;  %s1032_s0 = inlined_call_operand.vmem [shape: bf16[2,8,256], index: 0, kind: input, shape index: {}]   ;;  %s1033_s1 = inlined_call_operand.vmem [shape: bf16[256,64], index: 1, kind: input, shape index: {}]   ;;  %s1034_s2 = inlined_call_operand.vmem [shape: f32[1,64], index: 2, kind: input, shape index: {}]   ;;  %s1035_s3 = inlined_call_operand.vmem [shape: f32[2,8,64], index: 3, kind: input, shape index: {}]   ;;  %s1036_s4 = inlined_call_operand.vmem [shape: f32[2,1,64], index: 4, kind: input, shape index: {}]   ;;  %s1037_s5 = inlined_call_operand.vmem [shape: f32[2,8,64], index: 5, kind: output, shape index: {}]  }
   0x1   :  { %s934_s20 = smov 0  }
   0x2 LB: > { %s41_s21 = sadd.s32 1, %s893_s19  ;;  %p782_p0 = scmp.ge.s32.totalorder %s897_s20, 1  ;;  %s897_s20 = sphi %s934_s20, %s15_s20   ;;  %s893_s19 = sphi %s932_s19, %s1039_s19   ;;  %s889_s18 = sphi %s930_s18, %s1038_s18  }
   0x3   : > { %p43_p1 = scmp.ge.s32.totalorder %s41_s21, 2  ;;  %p286_p2 = scmp.lt.s32.totalorder %s897_s20, 3 }
   0x5   : > { %s1041_s21 = smov (%p43_p1, %s41_s21), 0  ;;  %p287_p3 = pnand %p782_p0, %p286_p2 }
   0x6   : > { %v857_v0 = vld [vmem:[%s1033_s1 + $0x40] sm:$0xff] (!%p287_p3)   ;;  %v859_v2 = vld [vmem:[%s1033_s1 + $0x48] sm:$0xff] (!%p287_p3)   ;;  %p355_p4 = scmp.lt.s32.totalorder (!%p287_p3), %s889_s18, 1  ;;  %v861_v4 = vld [vmem:[%s1033_s1 + $0x50] sm:$0xff] (!%p287_p3)   ;;  %vm411_vm0 = vcmask (!%p287_p3), 523264   ;;  %v899_v19 = vmov (!%p287_p3), 0.0  }
   0x7   : > { %290 = sbr.rel (%p287_p3) target bundleno = 271 (0x10f), region = 40  ;;  %v858_v1 = vld [vmem:[%s1033_s1] sm:$0xff] (!%p287_p3)   ;;  %810 = vmatprep.subr.bf16.mxu0 (!%p287_p3), %v857_v0  ;;  %v860_v3 = vld [vmem:[%s1033_s1 + $0x8] sm:$0xff] (!%p287_p3)   ;;  %v862_v5 = vld [vmem:[%s1033_s1 + $0x10] sm:$0xff] (!%p287_p3)   ;;  %412 = vst.msk [vmem:[#allocation2] sm:$0xff] (!%p287_p3), %vm411_vm0, %v899_v19 }
   0x8   : > { %811 = vmatpush3.bf16.msra.mxu0 (!%p287_p3), %v858_v1  ;;  %v863_v6 = vld [vmem:[%s1033_s1 + $0x58] sm:$0xff] (!%p287_p3)   ;;  %v865_v8 = vld [vmem:[%s1033_s1 + $0x60] sm:$0xff] (!%p287_p3)   ;;  %v867_v10 = vld [vmem:[%s1033_s1 + $0x68] sm:$0xff] (!%p287_p3)  }
   0x9   : > { %812 = vmatprep.subr.bf16.mxu0 (!%p287_p3), %v859_v2  ;;  %v864_v7 = vld [vmem:[%s1033_s1 + $0x18] sm:$0xff] (!%p287_p3)   ;;  %v866_v9 = vld [vmem:[%s1033_s1 + $0x20] sm:$0xff] (!%p287_p3)   ;;  %v868_v13 = vld [vmem:[%s1033_s1 + $0x28] sm:$0xff] (!%p287_p3)  }
   0xa   : > { %v869_v14 = vld [vmem:[%s1033_s1 + $0x70] sm:$0xff] (!%p287_p3)   ;;  %v871_v16 = vld [vmem:[%s1033_s1 + $0x78] sm:$0xff] (!%p287_p3)   ;;  %v805_v27 = vld [vmem:[%s1034_s2] ss:$0 sm:$0xff] (!%p287_p3) }
   0xb   : > { %v870_v15 = vld [vmem:[%s1033_s1 + $0x30] sm:$0xff] (!%p287_p3)   ;;  %v872_v17 = vld [vmem:[%s1033_s1 + $0x38] sm:$0xff] (!%p287_p3)  }
   0xc   : > { %813 = vmatpush3.bf16.msra.mxu0 (!%p287_p3), %v860_v3 }
   0xd   : > { %814 = vmatprep.subr.bf16.mxu0 (!%p287_p3), %v861_v4 }
   0xe   : > { %s1043_s18 = smov (!%p355_p4, %s889_s18), 1  ;;  %v413_v21 = vld [vmem:[#allocation2] sm:$0xff] }
   0xf   : > { %s972_s11 = sshll.u32 %s1043_s18, 3  ;;  %s395_s15 = scalar_lea.vmem %s1036_s4, %s1043_s18 }
  0x10   : > { %815 = vmatpush3.bf16.msra.mxu0 %v862_v5  ;;  %s366_s22 = scalar_lea.vmem %s1032_s0, %s972_s11  ;;  %s389_s24 = scalar_lea.vmem %s1035_s3, %s972_s11  ;;  %v806_v28 = vld [vmem:[%s395_s15] ss:$0 sm:$0xff] }
  0x11   : > { %816 = vmatprep.subr.bf16.mxu0 %v863_v6  ;;  %v414_v11 = vld [vmem:[%s366_s22] sm:$0xff]  ;;  %s405_s27 = scalar_lea.vmem %s1037_s5, %s972_s11 }
  0x12   : > { %v788_v12 = vcombine.high %v414_v11, %v414_v11  ;;  %v787_v18 = vcombine.low %v414_v11, %v414_v11  ;;  %v605_v31 = vld [vmem:[%s389_s24] sm:$0xff] }
  0x14   : > { %817 = vmatpush3.bf16.msra.mxu0 %v864_v7  ;;  %582 = vmatprep.mubr.bf16.mxu0 %v788_v12 }
  0x15   : > { %818 = vmatprep.subr.bf16.mxu0 %v865_v8 }
  0x18   : > { %819 = vmatpush3.bf16.msra.mxu0 %v866_v9 }
  0x19   : > { %820 = vmatprep.subr.bf16.mxu0 %v867_v10 }
  0x1c   : > { %821 = vmatpush3.bf16.msra.mxu0 %v868_v13 }
  0x1d   : > { %822 = vmatprep.subr.bf16.mxu0 %v869_v14 }
  0x20   : > { %823 = vmatpush3.bf16.msra.mxu0 %v870_v15 }
  0x21   : > { %824 = vmatprep.subr.bf16.mxu0 %v871_v16 }
  0x24   : > { %825 = vmatpush3.bf16.msra.mxu0 %v872_v17 }
  0x27   : > { %583 = vmatmul.mubr.bf16.vlgmr.msra.gmra.mrb[0].mxu0 %v787_v18 }
  0xfa   : > { %v826_v20 = vpop.f32.mrb[0].mxu0 }
  0xfb   : > { %v827_v22 = vpop.f32.mrb[1].mxu0 }
  0xfc   : > { %v828_v23 = vadd.f32 %v827_v22, %v826_v20  ;;  %v829_v24 = vpop.f32.mrb[2].mxu0 }
  0xfd   : > { %v830_v25 = vpop.f32.mrb[3].mxu0 }
  0xfe   : > { %v590_v26 = vadd.f32 %v828_v23, %v413_v21 }
 0x100   : > { %592 = vst.msk [vmem:[#allocation2] sm:$0xff] %vm411_vm0, %v590_v26 }
 0x107   : > { %v596_v29 = vld [vmem:[#allocation2] sm:$0xff] }
 0x108   : > { %v604_v30 = vadd.f32 %v805_v27, %v596_v29 }
 0x10a   : > { %v613_v32 = vmul.f32 %v806_v28, %v604_v30 }
 0x10c   : > { %v614_v33 = vadd.f32 %v613_v32, %v605_v31 }
 0x10e   : > { %615 = vst.msk [vmem:[%s405_s27] sm:$0xff] %vm411_vm0, %v614_v33 }
 0x10f PF: > { %s15_s20 = sadd.s32 1, %s897_s20   ;;  %s1038_s18 = smov %s893_s19 }
 0x110   : > { %p12_p5 = scmp.ge.s32.totalorder %s15_s20, 4   ;;  %s1039_s19 = smov %s1041_s21 }
 0x112   :  { %14 = sbr.rel (!%p12_p5) target bundleno = 2 (0x2), region = 90 }

// kernel: _lambda_.36
= control target key start
LH: loop header
LB: loop body
LE: loop exit
PB: predicated region body
PF: predicated region fallthrough
CT: control target
= control target key end

     0   :  { %v250_v1 = vmov 0   ;;  %vm82_vm0 = vcmask 523264   ;;  %v146_v10 = vlaneseq  ;;  %s307_s1 = inlined_call_operand.vmem [shape: bf16[64,256], index: 1, kind: input, shape index: {}]   ;;  %s308_s0 = inlined_call_operand.vmem [shape: bf16[16,64], index: 0, kind: input, shape index: {}]   ;;  %s309_s2 = inlined_call_operand.vmem [shape: f32[1,256], index: 2, kind: input, shape index: {}]   ;;  %s310_s3 = inlined_call_operand.vmem [shape: bf16[16,256], index: 3, kind: output, shape index: {}]  }
   0x1   :  { %v229_v0 = vld [vmem:[%s307_s1 + $0x4] ss:$8 sps:$4 sm:$0xff]   ;;  %118 = vmatprep.mubr.bf16.mxu0 %v250_v1  ;;  %v231_v2 = vld [vmem:[%s307_s1] ss:$8 sps:$4 sm:$0xff]   ;;  %v232_v3 = vld [vmem:[%s307_s1 + $0x14] ss:$8 sps:$4 sm:$0xff]  }
   0x2   :  { %86 = vmatprep.subr.bf16.mxu0 %v229_v0  ;;  %v234_v4 = vld [vmem:[%s307_s1 + $0x10] ss:$8 sps:$4 sm:$0xff]   ;;  %v235_v5 = vld [vmem:[%s307_s1 + $0x24] ss:$8 sps:$4 sm:$0xff]   ;;  %v237_v6 = vld [vmem:[%s307_s1 + $0x20] ss:$8 sps:$4 sm:$0xff]  }
   0x3   :  { %87 = vmatpush1.bf16.msra.mxu0 %v231_v2  ;;  %v238_v7 = vld [vmem:[%s307_s1 + $0x34] ss:$8 sps:$4 sm:$0xff]   ;;  %v240_v8 = vld [vmem:[%s307_s1 + $0x30] ss:$8 sps:$4 sm:$0xff]   ;;  %v241_v9 = vld [vmem:[%s308_s0] sm:$0xff]   ;;  %v147_v11 = vshrl.u32 %v146_v10, 7 }
   0x4   :  { %88 = vmatprep.subr.bf16.mxu0 %v232_v3  ;;  %v144_v13 = vld [vmem:[%s309_s2] sm:$0x3] }
   0x5   :  { %v148_v12 = vsub.s32 0, %v147_v11  ;;  %v152_v14 = vsub.s32 1, %v147_v11 }
   0x7   :  { %89 = vmatpush1.bf16.msra.mxu0 %v234_v4  ;;  %v149_v15 = vrot.slane %v144_v13, %v148_v12  ;;  %v153_v16 = vrot.slane %v144_v13, %v152_v14 }
   0x8   :  { %90 = vmatprep.subr.bf16.mxu0 %v235_v5 }
   0xb   :  { %91 = vmatpush1.bf16.msra.mxu0 %v237_v6 }
   0xc   :  { %92 = vmatprep.subr.bf16.mxu0 %v238_v7 }
   0xf   :  { %93 = vmatpush1.bf16.msra.mxu0 %v240_v8 }
  0x12   :  { %223 = vmatmul.mubr.msk.bf16.vlgmr.msra.gmra.mrb[0].mxu0 %vm82_vm0, %v241_v9 }
  0xe5   :  { %v120_v17 = vpop.f32.mrb[0].mxu0 }
  0xe6   :  { %v156_v18 = vadd.f32 %v149_v15, %v120_v17  ;;  %v122_v19 = vpop.f32.mrb[1].mxu0 }
  0xe7   :  { %v157_v20 = vadd.f32 %v153_v16, %v122_v19  ;;  %v124_v21 = vpop.f32.mrb[2].mxu0 }
  0xe8   :  { %v160_v22 = vmul.f32 %v156_v18, %v156_v18  ;;  %v158_v23 = vadd.f32 %v149_v15, %v124_v21  ;;  %v126_v24 = vpop.f32.mrb[3].mxu0 }
  0xe9   :  { %v161_v25 = vmul.f32 %v157_v20, %v157_v20  ;;  %v159_v26 = vadd.f32 %v153_v16, %v126_v24 }
  0xea   :  { %v164_v27 = vmul.f32 %v160_v22, %v156_v18  ;;  %v162_v28 = vmul.f32 %v158_v23, %v158_v23 }
  0xeb   :  { %v165_v29 = vmul.f32 %v161_v25, %v157_v20  ;;  %v163_v30 = vmul.f32 %v159_v26, %v159_v26 }
  0xec   :  { %v168_v31 = vmul.f32 0.044715, %v164_v27  ;;  %v166_v32 = vmul.f32 %v162_v28, %v158_v23 }
  0xed   :  { %v169_v33 = vmul.f32 0.044715, %v165_v29  ;;  %v167_v34 = vmul.f32 %v163_v30, %v159_v26 }
  0xee   :  { %v172_v35 = vadd.f32 %v168_v31, %v156_v18  ;;  %v170_v36 = vmul.f32 0.044715, %v166_v32 }
  0xef   :  { %v173_v37 = vadd.f32 %v169_v33, %v157_v20  ;;  %v171_v38 = vmul.f32 0.044715, %v167_v34 }
  0xf0   :  { %v176_v39 = vmul.f32 0.7978846, %v172_v35  ;;  %v174_v40 = vadd.f32 %v170_v36, %v158_v23 }
  0xf1   :  { %v177_v41 = vmul.f32 0.7978846, %v173_v37  ;;  %v175_v42 = vadd.f32 %v171_v38, %v159_v26 }
  0xf2   :  { %242 = vtanh.f32 %v176_v39  ;;  %v178_v43 = vmul.f32 0.7978846, %v174_v40 }
  0xf3   :  { %244 = vtanh.f32 %v177_v41  ;;  %v179_v44 = vmul.f32 0.7978846, %v175_v42 }
  0xf4   :  { %246 = vtanh.f32 %v178_v43 }
  0xf5   :  { %248 = vtanh.f32 %v179_v44 }
  0xfc   :  { %v243_v45 = vpop.eup %242 }
  0xfd   :  { %v245_v46 = vpop.eup %244  ;;  %v184_v47 = vadd.f32 1.0, %v243_v45 }
  0xfe   :  { %v247_v48 = vpop.eup %246  ;;  %v185_v49 = vadd.f32 1.0, %v245_v46 }
  0xff   :  { %v249_v50 = vpop.eup %248  ;;  %v188_v51 = vmul.f32 0.5, %v184_v47  ;;  %v186_v52 = vadd.f32 1.0, %v247_v48 }
 0x100   :  { %v189_v53 = vmul.f32 0.5, %v185_v49  ;;  %v187_v54 = vadd.f32 1.0, %v249_v50 }
 0x101   :  { %v192_v55 = vmul.f32 %v188_v51, %v156_v18  ;;  %v190_v56 = vmul.f32 0.5, %v186_v52 }
 0x102   :  { %v193_v57 = vmul.f32 %v189_v53, %v157_v20  ;;  %v191_v58 = vmul.f32 0.5, %v187_v54 }
 0x103   :  { %v194_v59 = vmul.f32 %v190_v56, %v158_v23 }
 0x104   :  { %v226_v60 = vpack.c.bf16 %v193_v57, %v192_v55  ;;  %v195_v61 = vmul.f32 %v191_v58, %v159_v26 }
 0x106   :  { %208 = vst [vmem:[%s310_s3] sm:$0xff] %v226_v60  ;;  %v227_v62 = vpack.c.bf16 %v195_v61, %v194_v59 }
 0x108   :  { %209 = vst [vmem:[%s310_s3 + $0x8] sm:$0xff] %v227_v62 }

// kernel: _lambda_.33
= control target key start
LH: loop header
LB: loop body
LE: loop exit
PB: predicated region body
PF: predicated region fallthrough
CT: control target
= control target key end

     0   :  { %s980_s18 = smov 0   ;;  %s982_s19 = smov 0   ;;  %s1085_s0 = inlined_call_operand.vmem [shape: bf16[2,16,256], index: 0, kind: input, shape index: {}]   ;;  %s1086_s1 = inlined_call_operand.vmem [shape: bf16[256,64], index: 1, kind: input, shape index: {}]   ;;  %s1087_s2 = inlined_call_operand.vmem [shape: f32[1,64], index: 2, kind: input, shape index: {}]   ;;  %s1088_s3 = inlined_call_operand.vmem [shape: f32[2,16,64], index: 3, kind: input, shape index: {}]   ;;  %s1089_s4 = inlined_call_operand.vmem [shape: f32[2,1,64], index: 4, kind: input, shape index: {}]   ;;  %s1090_s5 = inlined_call_operand.vmem [shape: f32[2,16,64], index: 5, kind: output, shape index: {}]  }
   0x1   :  { %s984_s20 = smov 0  }
   0x2 LB: > { %s41_s21 = sadd.s32 1, %s943_s19  ;;  %p827_p0 = scmp.ge.s32.totalorder %s947_s20, 1  ;;  %s947_s20 = sphi %s984_s20, %s15_s20   ;;  %s943_s19 = sphi %s982_s19, %s1092_s19   ;;  %s939_s18 = sphi %s980_s18, %s1091_s18  }
   0x3   : > { %p43_p1 = scmp.ge.s32.totalorder %s41_s21, 2  ;;  %p291_p2 = scmp.lt.s32.totalorder %s947_s20, 3 }
   0x5   : > { %s1094_s21 = smov (%p43_p1, %s41_s21), 0  ;;  %p292_p3 = pnand %p827_p0, %p291_p2 }
   0x6   : > { %v906_v0 = vld [vmem:[%s1086_s1 + $0x40] sm:$0xff] (!%p292_p3)   ;;  %v908_v2 = vld [vmem:[%s1086_s1 + $0x48] sm:$0xff] (!%p292_p3)   ;;  %p366_p4 = scmp.lt.s32.totalorder (!%p292_p3), %s939_s18, 1  ;;  %v910_v4 = vld [vmem:[%s1086_s1 + $0x50] sm:$0xff] (!%p292_p3)   ;;  %vm429_vm0 = vcmask (!%p292_p3), 523264   ;;  %v949_v18 = vmov (!%p292_p3), 0.0  }
   0x7   : > { %295 = sbr.rel (%p292_p3) target bundleno = 273 (0x111), region = 40  ;;  %v907_v1 = vld [vmem:[%s1086_s1] sm:$0xff] (!%p292_p3)   ;;  %859 = vmatprep.subr.bf16.mxu0 (!%p292_p3), %v906_v0  ;;  %v909_v3 = vld [vmem:[%s1086_s1 + $0x8] sm:$0xff] (!%p292_p3)   ;;  %v911_v5 = vld [vmem:[%s1086_s1 + $0x10] sm:$0xff] (!%p292_p3)   ;;  %430 = vst.msk [vmem:[#allocation2] sm:$0xff] (!%p292_p3), %vm429_vm0, %v949_v18 }
   0x8   : > { %860 = vmatpush3.bf16.msra.mxu0 (!%p292_p3), %v907_v1  ;;  %v912_v6 = vld [vmem:[%s1086_s1 + $0x58] sm:$0xff] (!%p292_p3)   ;;  %v914_v8 = vld [vmem:[%s1086_s1 + $0x60] sm:$0xff] (!%p292_p3)   ;;  %v916_v10 = vld [vmem:[%s1086_s1 + $0x68] sm:$0xff] (!%p292_p3)   ;;  %431 = vst.msk [vmem:[#allocation2 + $0x8] sm:$0xff] (!%p292_p3), %vm429_vm0, %v949_v18 }
   0x9   : > { %861 = vmatprep.subr.bf16.mxu0 (!%p292_p3), %v908_v2  ;;  %v913_v7 = vld [vmem:[%s1086_s1 + $0x18] sm:$0xff] (!%p292_p3)   ;;  %v915_v9 = vld [vmem:[%s1086_s1 + $0x20] sm:$0xff] (!%p292_p3)   ;;  %v917_v12 = vld [vmem:[%s1086_s1 + $0x28] sm:$0xff] (!%p292_p3)  }
   0xa   : > { %v918_v13 = vld [vmem:[%s1086_s1 + $0x70] sm:$0xff] (!%p292_p3)   ;;  %v920_v15 = vld [vmem:[%s1086_s1 + $0x78] sm:$0xff] (!%p292_p3)   ;;  %v852_v29 = vld [vmem:[%s1087_s2] ss:$0 sm:$0xff] (!%p292_p3) }
   0xb   : > { %v919_v14 = vld [vmem:[%s1086_s1 + $0x30] sm:$0xff] (!%p292_p3)   ;;  %v921_v16 = vld [vmem:[%s1086_s1 + $0x38] sm:$0xff] (!%p292_p3)  }
   0xc   : > { %862 = vmatpush3.bf16.msra.mxu0 (!%p292_p3), %v909_v3 }
   0xd   : > { %863 = vmatprep.subr.bf16.mxu0 (!%p292_p3), %v910_v4 }
   0xe   : > { %s1096_s18 = smov (!%p366_p4, %s939_s18), 1  ;;  %v432_v20 = vld [vmem:[#allocation2] sm:$0xff] }
   0xf   : > { %s1025_s13 = sshll.u32 %s1096_s18, 4  ;;  %v433_v24 = vld [vmem:[#allocation2 + $0x8] sm:$0xff]  ;;  %s410_s15 = scalar_lea.vmem %s1089_s4, %s1096_s18 }
  0x10   : > { %864 = vmatpush3.bf16.msra.mxu0 %v911_v5  ;;  %s377_s22 = scalar_lea.vmem %s1085_s0, %s1025_s13  ;;  %s403_s24 = scalar_lea.vmem %s1088_s3, %s1025_s13  ;;  %v853_v30 = vld [vmem:[%s410_s15] ss:$0 sm:$0xff] }
  0x11   : > { %865 = vmatprep.subr.bf16.mxu0 %v912_v6  ;;  %v924_v11 = vld [vmem:[%s377_s22 + $0x4] ss:$8 sps:$4 sm:$0xff]   ;;  %v922_v17 = vld [vmem:[%s377_s22] ss:$8 sps:$4 sm:$0xff]   ;;  %s422_s27 = scalar_lea.vmem %s1090_s5, %s1025_s13 }
  0x12   : > { %606 = vmatprep.mubr.bf16.mxu0 %v924_v11  ;;  %v634_v33 = vld [vmem:[%s403_s24] sm:$0xff]  ;;  %v635_v37 = vld [vmem:[%s403_s24 + $0x8] sm:$0xff] }
  0x14   : > { %866 = vmatpush3.bf16.msra.mxu0 %v913_v7 }
  0x15   : > { %867 = vmatprep.subr.bf16.mxu0 %v914_v8 }
  0x18   : > { %868 = vmatpush3.bf16.msra.mxu0 %v915_v9 }
  0x19   : > { %869 = vmatprep.subr.bf16.mxu0 %v916_v10 }
  0x1c   : > { %870 = vmatpush3.bf16.msra.mxu0 %v917_v12 }
  0x1d   : > { %871 = vmatprep.subr.bf16.mxu0 %v918_v13 }
  0x20   : > { %872 = vmatpush3.bf16.msra.mxu0 %v919_v14 }
  0x21   : > { %873 = vmatprep.subr.bf16.mxu0 %v920_v15 }
  0x24   : > { %874 = vmatpush3.bf16.msra.mxu0 %v921_v16 }
  0x27   : > { %607 = vmatmul.mubr.bf16.vlgmr.msra.gmra.mrb[0].mxu0 %v922_v17 }
  0xfa   : > { %v875_v19 = vpop.f32.mrb[0].mxu0 }
  0xfb   : > { %v876_v21 = vpop.f32.mrb[1].mxu0 }
  0xfc   : > { %v877_v22 = vadd.f32 %v876_v21, %v875_v19  ;;  %v878_v23 = vpop.f32.mrb[2].mxu0 }
  0xfd   : > { %v879_v25 = vpop.f32.mrb[3].mxu0 }
  0xfe   : > { %v615_v26 = vadd.f32 %v877_v22, %v432_v20  ;;  %v880_v27 = vadd.f32 %v879_v25, %v878_v23 }
 0x100   : > { %618 = vst.msk [vmem:[#allocation2] sm:$0xff] %vm429_vm0, %v615_v26  ;;  %v616_v28 = vadd.f32 %v880_v27, %v433_v24 }
 0x102   : > { %619 = vst.msk [vmem:[#allocation2 + $0x8] sm:$0xff] %vm429_vm0, %v616_v28 }
 0x107   : > { %v623_v31 = vld [vmem:[#allocation2] sm:$0xff] }
 0x108   : > { %v632_v32 = vadd.f32 %v852_v29, %v623_v31 }
 0x109   : > { %v624_v34 = vld [vmem:[#allocation2 + $0x8] sm:$0xff] }
 0x10a   : > { %v643_v35 = vmul.f32 %v853_v30, %v632_v32  ;;  %v633_v36 = vadd.f32 %v852_v29, %v624_v34 }
 0x10c   : > { %v645_v38 = vadd.f32 %v643_v35, %v634_v33  ;;  %v644_v39 = vmul.f32 %v853_v30, %v633_v36 }
 0x10e   : > { %647 = vst.msk [vmem:[%s422_s27] sm:$0xff] %vm429_vm0, %v645_v38  ;;  %v646_v40 = vadd.f32 %v644_v39, %v635_v37 }
 0x110   : > { %648 = vst.msk [vmem:[%s422_s27 + $0x8] sm:$0xff] %vm429_vm0, %v646_v40 }
 0x111 PF: > { %s15_s20 = sadd.s32 1, %s947_s20   ;;  %s1091_s18 = smov %s943_s19 }
 0x112   : > { %p12_p5 = scmp.ge.s32.totalorder %s15_s20, 4   ;;  %s1092_s19 = smov %s1094_s21 }
 0x114   :  { %14 = sbr.rel (!%p12_p5) target bundleno = 2 (0x2), region = 90 }

// kernel: _lambda_.32
= control target key start
LH: loop header
LB: loop body
LE: loop exit
PB: predicated region body
PF: predicated region fallthrough
CT: control target
= control target key end

     0   :  { %v367_v1 = vmov 0   ;;  %vm97_vm0 = vcmask 523264   ;;  %v186_v11 = vlaneseq  ;;  %s489_s1 = inlined_call_operand.vmem [shape: bf16[64,256], index: 1, kind: input, shape index: {}]   ;;  %s490_s0 = inlined_call_operand.vmem [shape: bf16[32,64], index: 0, kind: input, shape index: {}]   ;;  %s491_s2 = inlined_call_operand.vmem [shape: f32[1,256], index: 2, kind: input, shape index: {}]   ;;  %s492_s3 = inlined_call_operand.vmem [shape: bf16[32,256], index: 3, kind: output, shape index: {}]  }
   0x1   :  { %v337_v0 = vld [vmem:[%s489_s1 + $0x4] ss:$8 sps:$4 sm:$0xff]   ;;  %136 = vmatprep.mubr.bf16.mxu0 %v367_v1  ;;  %146 = vmatprep.mubr.bf16.mxu1 %v367_v1  ;;  %v339_v2 = vld [vmem:[%s489_s1] ss:$8 sps:$4 sm:$0xff]   ;;  %v340_v3 = vld [vmem:[%s489_s1 + $0x14] ss:$8 sps:$4 sm:$0xff]  }
   0x2   :  { %104 = vmatprep.subr.bf16.mxu0 %v337_v0  ;;  %328 = vmatprep.subr.bf16.mxu1 %v337_v0  ;;  %v342_v4 = vld [vmem:[%s489_s1 + $0x10] ss:$8 sps:$4 sm:$0xff]   ;;  %v343_v5 = vld [vmem:[%s489_s1 + $0x24] ss:$8 sps:$4 sm:$0xff]   ;;  %v345_v6 = vld [vmem:[%s489_s1 + $0x20] ss:$8 sps:$4 sm:$0xff]  }
   0x3   :  { %105 = vmatpush1.bf16.msra.mxu0 %v339_v2  ;;  %332 = vmatpush1.bf16.msra.mxu1 %v339_v2  ;;  %v346_v7 = vld [vmem:[%s489_s1 + $0x34] ss:$8 sps:$4 sm:$0xff]   ;;  %v348_v8 = vld [vmem:[%s489_s1 + $0x30] ss:$8 sps:$4 sm:$0xff]   ;;  %v349_v9 = vld [vmem:[%s490_s0] sm:$0xff]   ;;  %v187_v12 = vshrl.u32 %v186_v11, 7 }
   0x4   :  { %106 = vmatprep.subr.bf16.mxu0 %v340_v3  ;;  %329 = vmatprep.subr.bf16.mxu1 %v340_v3  ;;  %v350_v10 = vld [vmem:[%s490_s0 + $0x8] sm:$0xff]   ;;  %v184_v14 = vld [vmem:[%s491_s2] sm:$0x3] }
   0x5   :  { %v188_v13 = vsub.s32 0, %v187_v12  ;;  %v192_v15 = vsub.s32 1, %v187_v12 }
   0x7   :  { %107 = vmatpush1.bf16.msra.mxu0 %v342_v4  ;;  %333 = vmatpush1.bf16.msra.mxu1 %v342_v4  ;;  %v189_v16 = vrot.slane %v184_v14, %v188_v13  ;;  %v193_v17 = vrot.slane %v184_v14, %v192_v15 }
   0x8   :  { %108 = vmatprep.subr.bf16.mxu0 %v343_v5  ;;  %330 = vmatprep.subr.bf16.mxu1 %v343_v5 }
   0xb   :  { %109 = vmatpush1.bf16.msra.mxu0 %v345_v6  ;;  %334 = vmatpush1.bf16.msra.mxu1 %v345_v6 }
   0xc   :  { %110 = vmatprep.subr.bf16.mxu0 %v346_v7  ;;  %331 = vmatprep.subr.bf16.mxu1 %v346_v7 }
   0xf   :  { %111 = vmatpush1.bf16.msra.mxu0 %v348_v8  ;;  %335 = vmatpush1.bf16.msra.mxu1 %v348_v8 }
  0x12   :  { %318 = vmatmul.mubr.msk.bf16.vlgmr.msra.gmra.mrb[0].mxu0 %vm97_vm0, %v349_v9  ;;  %319 = vmatmul.mubr.msk.bf16.vlgmr.msra.gmra.mrb[0].mxu1 %vm97_vm0, %v350_v10 }
  0xe5   :  { %v138_v18 = vpop.f32.mrb[0].mxu0  ;;  %v148_v19 = vpop.f32.mrb[0].mxu1 }
  0xe6   :  { %v421_v20 = vadd.f32 %v189_v16, %v138_v18  ;;  %v423_v21 = vadd.f32 %v189_v16, %v148_v19  ;;  %v140_v22 = vpop.f32.mrb[1].mxu0  ;;  %v150_v23 = vpop.f32.mrb[1].mxu1 }
  0xe7   :  { %v425_v24 = vadd.f32 %v193_v17, %v140_v22  ;;  %v427_v25 = vadd.f32 %v193_v17, %v150_v23  ;;  %v142_v26 = vpop.f32.mrb[2].mxu0  ;;  %v152_v27 = vpop.f32.mrb[2].mxu1 }
  0xe8   :  { %v204_v28 = vmul.f32 %v421_v20, %v421_v20  ;;  %v208_v29 = vmul.f32 %v423_v21, %v423_v21  ;;  %v433_v30 = vadd.f32 %v189_v16, %v142_v26  ;;  %v435_v31 = vadd.f32 %v189_v16, %v152_v27  ;;  %v144_v32 = vpop.f32.mrb[3].mxu0  ;;  %v154_v33 = vpop.f32.mrb[3].mxu1 }
  0xe9   :  { %v205_v34 = vmul.f32 %v425_v24, %v425_v24  ;;  %v209_v35 = vmul.f32 %v427_v25, %v427_v25  ;;  %v441_v36 = vadd.f32 %v193_v17, %v144_v32  ;;  %v443_v37 = vadd.f32 %v193_v17, %v154_v33 }
  0xea   :  { %v212_v38 = vmul.f32 %v204_v28, %v421_v20  ;;  %v216_v39 = vmul.f32 %v208_v29, %v423_v21  ;;  %v206_v40 = vmul.f32 %v433_v30, %v433_v30  ;;  %v210_v41 = vmul.f32 %v435_v31, %v435_v31 }
  0xeb   :  { %v213_v42 = vmul.f32 %v205_v34, %v425_v24  ;;  %v217_v43 = vmul.f32 %v209_v35, %v427_v25  ;;  %v207_v44 = vmul.f32 %v441_v36, %v441_v36  ;;  %v211_v45 = vmul.f32 %v443_v37, %v443_v37 }
  0xec   :  { %v220_v46 = vmul.f32 0.044715, %v212_v38  ;;  %v224_v47 = vmul.f32 0.044715, %v216_v39  ;;  %v214_v48 = vmul.f32 %v206_v40, %v433_v30  ;;  %v218_v49 = vmul.f32 %v210_v41, %v435_v31 }
  0xed   :  { %v221_v50 = vmul.f32 0.044715, %v213_v42  ;;  %v225_v51 = vmul.f32 0.044715, %v217_v43  ;;  %v215_v52 = vmul.f32 %v207_v44, %v441_v36  ;;  %v219_v53 = vmul.f32 %v211_v45, %v443_v37 }
  0xee   :  { %v228_v54 = vadd.f32 %v220_v46, %v421_v20  ;;  %v232_v55 = vadd.f32 %v224_v47, %v423_v21  ;;  %v222_v56 = vmul.f32 0.044715, %v214_v48  ;;  %v226_v57 = vmul.f32 0.044715, %v218_v49 }
  0xef   :  { %v229_v58 = vadd.f32 %v221_v50, %v425_v24  ;;  %v233_v59 = vadd.f32 %v225_v51, %v427_v25  ;;  %v223_v60 = vmul.f32 0.044715, %v215_v52  ;;  %v227_v61 = vmul.f32 0.044715, %v219_v53 }
  0xf0   :  { %v236_v62 = vmul.f32 0.7978846, %v228_v54  ;;  %v240_v63 = vmul.f32 0.7978846, %v232_v55  ;;  %v230_v0 = vadd.f32 %v222_v56, %v433_v30  ;;  %v234_v1 = vadd.f32 %v226_v57, %v435_v31 }
  0xf1   :  { %v237_v2 = vmul.f32 0.7978846, %v229_v58  ;;  %v241_v3 = vmul.f32 0.7978846, %v233_v59  ;;  %v231_v4 = vadd.f32 %v223_v60, %v441_v36  ;;  %v235_v5 = vadd.f32 %v227_v61, %v443_v37 }
  0xf2   :  { %351 = vtanh.f32 %v236_v62  ;;  %v238_v6 = vmul.f32 0.7978846, %v230_v0  ;;  %v242_v7 = vmul.f32 0.7978846, %v234_v1 }
  0xf3   :  { %353 = vtanh.f32 %v240_v63  ;;  %v239_v8 = vmul.f32 0.7978846, %v231_v4  ;;  %v243_v9 = vmul.f32 0.7978846, %v235_v5 }
  0xf4   :  { %355 = vtanh.f32 %v237_v2 }
  0xf5   :  { %357 = vtanh.f32 %v241_v3 }
  0xf6   :  { %359 = vtanh.f32 %v238_v6 }
  0xf7   :  { %361 = vtanh.f32 %v242_v7 }
  0xf8   :  { %363 = vtanh.f32 %v239_v8 }
  0xf9   :  { %365 = vtanh.f32 %v243_v9 }
  0xfc   :  { %v352_v10 = vpop.eup %351 }
  0xfd   :  { %v354_v11 = vpop.eup %353  ;;  %v252_v12 = vadd.f32 1.0, %v352_v10 }
  0xfe   :  { %v356_v13 = vpop.eup %355  ;;  %v256_v14 = vadd.f32 1.0, %v354_v11 }
  0xff   :  { %v358_v15 = vpop.eup %357  ;;  %v260_v16 = vmul.f32 0.5, %v252_v12  ;;  %v253_v17 = vadd.f32 1.0, %v356_v13 }
 0x100   :  { %v360_v18 = vpop.eup %359  ;;  %v264_v19 = vmul.f32 0.5, %v256_v14  ;;  %v257_v22 = vadd.f32 1.0, %v358_v15 }
 0x101   :  { %v362_v23 = vpop.eup %361  ;;  %v268_v26 = vmul.f32 %v260_v16, %v421_v20  ;;  %v261_v27 = vmul.f32 0.5, %v253_v17  ;;  %v254_v28 = vadd.f32 1.0, %v360_v18 }
 0x102   :  { %v364_v29 = vpop.eup %363  ;;  %v272_v32 = vmul.f32 %v264_v19, %v423_v21  ;;  %v265_v33 = vmul.f32 0.5, %v257_v22  ;;  %v258_v34 = vadd.f32 1.0, %v362_v23 }
 0x103   :  { %v366_v35 = vpop.eup %365  ;;  %v269_v38 = vmul.f32 %v261_v27, %v425_v24  ;;  %v262_v39 = vmul.f32 0.5, %v254_v28  ;;  %v255_v40 = vadd.f32 1.0, %v364_v29 }
 0x104   :  { %v273_v41 = vmul.f32 %v265_v33, %v427_v25  ;;  %v266_v42 = vmul.f32 0.5, %v258_v34  ;;  %v259_v43 = vadd.f32 1.0, %v366_v35 }
 0x105   :  { %v324_v44 = vpack.c.bf16 %v269_v38, %v268_v26  ;;  %v270_v45 = vmul.f32 %v262_v39, %v433_v30  ;;  %v263_v20 = vmul.f32 0.5, %v255_v40 }
 0x106   :  { %v326_v46 = vpack.c.bf16 %v273_v41, %v272_v32  ;;  %v274_v47 = vmul.f32 %v266_v42, %v435_v31  ;;  %v267_v48 = vmul.f32 0.5, %v259_v43 }
 0x107   :  { %300 = vst [vmem:[%s492_s3] sm:$0xff] %v324_v44  ;;  %v271_v21 = vmul.f32 %v263_v20, %v441_v36 }
 0x108   :  { %302 = vst [vmem:[%s492_s3 + $0x10] sm:$0xff] %v326_v46  ;;  %v275_v24 = vmul.f32 %v267_v48, %v443_v37 }
 0x109   :  { %v325_v25 = vpack.c.bf16 %v271_v21, %v270_v45 }
 0x10a   :  { %v327_v49 = vpack.c.bf16 %v275_v24, %v274_v47 }
 0x10b   :  { %301 = vst [vmem:[%s492_s3 + $0x8] sm:$0xff] %v325_v25 }
 0x10c   :  { %303 = vst [vmem:[%s492_s3 + $0x18] sm:$0xff] %v327_v49 }

// kernel: _lambda_.30
= control target key start
LH: loop header
LB: loop body
LE: loop exit
PB: predicated region body
PF: predicated region fallthrough
CT: control target
= control target key end

     0   :  { %s842_s18 = smov 0   ;;  %s844_s19 = smov 0   ;;  %s908_s0 = inlined_call_operand.vmem [shape: bf16[2,16,64], index: 0, kind: input, shape index: {}]   ;;  %s909_s1 = inlined_call_operand.vmem [shape: bf16[64,64], index: 1, kind: input, shape index: {}]   ;;  %s910_s2 = inlined_call_operand.vmem [shape: f32[1,64], index: 2, kind: input, shape index: {}]   ;;  %s911_s3 = inlined_call_operand.vmem [shape: f32[2,16,64], index: 3, kind: input, shape index: {}]   ;;  %s912_s4 = inlined_call_operand.vmem [shape: f32[2,1,64], index: 4, kind: input, shape index: {}]   ;;  %s913_s5 = inlined_call_operand.vmem [shape: f32[2,16,64], index: 5, kind: output, shape index: {}]  }
   0x1   :  { %s846_s20 = smov 0  }
   0x2 LB: > { %s41_s21 = sadd.s32 1, %s804_s19  ;;  %p718_p0 = scmp.ge.s32.totalorder %s808_s20, 1  ;;  %s808_s20 = sphi %s846_s20, %s15_s20   ;;  %s804_s19 = sphi %s844_s19, %s915_s19   ;;  %s800_s18 = sphi %s842_s18, %s914_s18  }
   0x3   : > { %p43_p1 = scmp.ge.s32.totalorder %s41_s21, 2  ;;  %p288_p2 = scmp.lt.s32.totalorder %s808_s20, 3 }
   0x5   : > { %s917_s21 = smov (%p43_p1, %s41_s21), 0  ;;  %p289_p3 = pnand %p718_p0, %p288_p2 }
   0x6   : > { %v781_v0 = vld [vmem:[%s909_s1] sm:$0xff] (!%p289_p3)   ;;  %v810_v1 = vmov (!%p289_p3), 0.0   ;;  %v782_v2 = vld [vmem:[%s909_s1 + $0x8] sm:$0xff] (!%p289_p3)   ;;  %vm811_vm0 = vmmov (!%p289_p3), 0   ;;  %p360_p4 = scmp.lt.s32.totalorder (!%p289_p3), %s800_s18, 1  ;;  %vm421_vm1 = vcmask (!%p289_p3), 523264  }
   0x7   : > { %292 = sbr.rel (%p289_p3) target bundleno = 254 (0xfe), region = 40  ;;  %743 = vmatprep.subr.bf16.mxu0 (!%p289_p3), %v810_v1  ;;  %751 = vmatprep.mubr.msk.bf16.mxu0 (!%p289_p3), %vm811_vm0, %v810_v1  ;;  %422 = vst.msk [vmem:[#allocation2] sm:$0xff] (!%p289_p3), %vm421_vm1, %v810_v1  ;;  %423 = vst.msk [vmem:[#allocation2 + $0x8] sm:$0xff] (!%p289_p3), %vm421_vm1, %v810_v1  ;;  %v783_v3 = vld [vmem:[%s909_s1 + $0x10] sm:$0xff] (!%p289_p3)   ;;  %v784_v4 = vld [vmem:[%s909_s1 + $0x18] sm:$0xff] (!%p289_p3)  }
   0x8   : > { %744 = vmatpush3.bf16.msra.mxu0 (!%p289_p3), %v781_v0  ;;  %v731_v14 = vld [vmem:[%s910_s2] ss:$0 sm:$0xff] (!%p289_p3) }
   0x9   : > { %745 = vmatprep.subr.bf16.mxu0 (!%p289_p3), %v810_v1 }
   0xc   : > { %746 = vmatpush3.bf16.msra.mxu0 (!%p289_p3), %v782_v2 }
   0xd   : > { %747 = vmatprep.subr.bf16.mxu0 (!%p289_p3), %v810_v1 }
   0xe   : > { %s919_s18 = smov (!%p360_p4, %s800_s18), 1  ;;  %v424_v6 = vld [vmem:[#allocation2] sm:$0xff]  ;;  %v425_v8 = vld [vmem:[#allocation2 + $0x8] sm:$0xff] }
   0xf   : > { %s735_s28 = sshll.u32 %s919_s18, 3  ;;  %s736_s9 = sshll.u32 %s919_s18, 4 }
  0x10   : > { %s370_s6 = scalar_lea.vmem %s908_s0, %s735_s28  ;;  %748 = vmatpush3.bf16.msra.mxu0 %v783_v3  ;;  %s402_s12 = scalar_lea.vmem %s912_s4, %s919_s18 }
  0x11   : > { %749 = vmatprep.subr.bf16.mxu0 %v810_v1  ;;  %v785_v5 = vld [vmem:[%s370_s6] sm:$0xff]   ;;  %s395_s17 = scalar_lea.vmem %s911_s3, %s736_s9  ;;  %s414_s24 = scalar_lea.vmem %s913_s5, %s736_s9 }
  0x12   : > { %v732_v15 = vld [vmem:[%s402_s12] ss:$0 sm:$0xff]  ;;  %v529_v22 = vld [vmem:[%s395_s17 + $0x8] sm:$0xff] }
  0x13   : > { %v528_v18 = vld [vmem:[%s395_s17] sm:$0xff] }
  0x14   : > { %750 = vmatpush3.bf16.msra.mxu0 %v784_v4 }
  0x17   : > { %752 = vmatmul.mubr.msk.bf16.vlgmr.msra.gmra.mrb[0].mxu0 %vm421_vm1, %v785_v5 }
  0xea   : > { %v503_v7 = vpop.f32.mrb[0].mxu0 }
  0xeb   : > { %v510_v9 = vadd.f32 %v503_v7, %v424_v6  ;;  %v753_v10 = vpop.f32.mrb[1].mxu0 }
  0xec   : > { %v506_v11 = vpop.f32.mrb[2].mxu0 }
  0xed   : > { %512 = vst.msk [vmem:[#allocation2] sm:$0xff] %vm421_vm1, %v510_v9  ;;  %v511_v12 = vadd.f32 %v506_v11, %v425_v8  ;;  %v754_v13 = vpop.f32.mrb[3].mxu0 }
  0xef   : > { %513 = vst.msk [vmem:[#allocation2 + $0x8] sm:$0xff] %vm421_vm1, %v511_v12 }
  0xf4   : > { %v517_v16 = vld [vmem:[#allocation2] sm:$0xff] }
  0xf5   : > { %v526_v17 = vadd.f32 %v731_v14, %v517_v16 }
  0xf6   : > { %v518_v19 = vld [vmem:[#allocation2 + $0x8] sm:$0xff] }
  0xf7   : > { %v537_v20 = vmul.f32 %v732_v15, %v526_v17  ;;  %v527_v21 = vadd.f32 %v731_v14, %v518_v19 }
  0xf9   : > { %v539_v23 = vadd.f32 %v537_v20, %v528_v18  ;;  %v538_v24 = vmul.f32 %v732_v15, %v527_v21 }
  0xfb   : > { %541 = vst.msk [vmem:[%s414_s24] sm:$0xff] %vm421_vm1, %v539_v23  ;;  %v540_v25 = vadd.f32 %v538_v24, %v529_v22 }
  0xfd   : > { %542 = vst.msk [vmem:[%s414_s24 + $0x8] sm:$0xff] %vm421_vm1, %v540_v25 }
  0xfe PF: > { %s15_s20 = sadd.s32 1, %s808_s20   ;;  %s914_s18 = smov %s804_s19 }
  0xff   : > { %p12_p5 = scmp.ge.s32.totalorder %s15_s20, 4   ;;  %s915_s19 = smov %s917_s21 }
 0x101   :  { %14 = sbr.rel (!%p12_p5) target bundleno = 2 (0x2), region = 90 }

// kernel: _lambda_.38
= control target key start
LH: loop header
LB: loop body
LE: loop exit
PB: predicated region body
PF: predicated region fallthrough
CT: control target
= control target key end

     0   :  { %s517_s12 = smov 0   ;;  %s519_s13 = smov 0   ;;  %s568_s0 = inlined_call_operand.vmem [shape: f32[2,24,64], index: 0, kind: input, shape index: {}]   ;;  %s569_s1 = inlined_call_operand.vmem [shape: f32[2,1,64], index: 1, kind: input, shape index: {}]   ;;  %s570_s2 = inlined_call_operand.vmem [shape: f32[2,1,64], index: 2, kind: input, shape index: {}]   ;;  %s571_s3 = inlined_call_operand.vmem [shape: bf16[2,24,64], index: 3, kind: output, shape index: {}]  }
   0x1   :  { %s521_s14 = smov 0  }
   0x2 LB: > { %s25_s15 = sadd.s32 1, %s491_s13  ;;  %p429_p0 = scmp.ge.s32.totalorder %s495_s14, 1  ;;  %s495_s14 = sphi %s521_s14, %s13_s14   ;;  %s491_s13 = sphi %s519_s13, %s573_s13   ;;  %s487_s12 = sphi %s517_s12, %s572_s12  }
   0x3   : > { %p27_p1 = scmp.ge.s32.totalorder %s25_s15, 2  ;;  %p174_p2 = scmp.lt.s32.totalorder %s495_s14, 3 }
   0x5   : > { %s575_s15 = smov (%p27_p1, %s25_s15), 0  ;;  %p175_p3 = pnand %p429_p0, %p174_p2 }
   0x6   : > { %p213_p4 = scmp.lt.s32.totalorder (!%p175_p3), %s487_s12, 1  ;;  %vm241_vm0 = vcmask (!%p175_p3), 523264   ;;  %v285_v23 = vlaneseq (!%p175_p3)  ;;  %vm316_vm1 = vcmask (!%p175_p3), 519168  }
   0x7   : > { %178 = sbr.rel (%p175_p3) target bundleno = 340 (0x154), region = 32 }
   0x8   : > { %v286_v29 = vshrl.u32 (!%p175_p3), %v285_v23, 7 }
   0xa   : > { %v287_v34 = vsub.s32 (!%p175_p3), 0, %v286_v29 }
   0xe   : > { %s577_s12 = smov (!%p213_p4, %s487_s12), 1 }
   0xf   : > { %s441_s16 = smul.u32 24, %s577_s12  ;;  %s224_s22 = scalar_lea.vmem %s569_s1, %s577_s12 }
  0x10   : > { %v282_v30 = vld [vmem:[%s224_s22] sm:$0x1]  ;;  %s227_s25 = scalar_lea.vmem %s570_s2, %s577_s12  ;;  %s442_s26 = smul.u32 12, %s577_s12 }
  0x11   : > { %s220_s19 = scalar_lea.vmem %s568_s0, %s441_s16  ;;  %v283_v33 = vadd.f32 1.0, %v282_v30  ;;  %v432_v38 = vld [vmem:[%s227_s25] ss:$0 sm:$0xff] }
  0x12   : > { %v238_v0 = vld [vmem:[%s220_s19] sm:$0xff]  ;;  %v240_v1 = vld [vmem:[%s220_s19 + $0x10] sm:$0xff]  ;;  %v239_v2 = vld [vmem:[%s220_s19 + $0x8] sm:$0xff]  ;;  %s236_s29 = scalar_lea.vmem %s571_s3, %s442_s26 }
  0x13   : > { %v242_v3 = vsel %vm241_vm0, %v238_v0, 0.0  ;;  %v248_v4 = vsel %vm241_vm0, %v240_v1, 0.0  ;;  %v245_v5 = vsel %vm241_vm0, %v239_v2, 0.0  ;;  %v288_v35 = vrot.slane %v283_v33, %v287_v34 }
  0x14   : > { %243 = vadd.xlane.f32.xlu0 %v242_v3  ;;  %249 = vadd.xlane.f32.xlu1 %v248_v4 }
  0x18   : > { %246 = vadd.xlane.f32.xlu0 %v245_v5 }
  0xa1   : > { %v244_v6 = vpop.xlane.xlu0 %243  ;;  %v250_v7 = vpop.xlane.xlu1 %249 }
  0xa2   : > { %v252_v8 = vmul.f32 0.015625, %v244_v6  ;;  %v254_v9 = vmul.f32 0.015625, %v250_v7 }
  0xa4   : > { %v255_v10 = vsub.f32 %v238_v0, %v252_v8  ;;  %v257_v11 = vsub.f32 %v240_v1, %v254_v9 }
  0xa5   : > { %v247_v12 = vpop.xlane.xlu0 %246 }
  0xa6   : > { %v253_v13 = vmul.f32 0.015625, %v247_v12  ;;  %v258_v14 = vmul.f32 %v255_v10, %v255_v10  ;;  %v260_v15 = vmul.f32 %v257_v11, %v257_v11 }
  0xa8   : > { %v256_v16 = vsub.f32 %v239_v2, %v253_v13  ;;  %v261_v17 = vsel %vm241_vm0, %v258_v14, 0.0  ;;  %v267_v18 = vsel %vm241_vm0, %v260_v15, 0.0 }
  0xa9   : > { %262 = vadd.xlane.f32.xlu1 %v261_v17 }
  0xaa   : > { %v259_v19 = vmul.f32 %v256_v16, %v256_v16 }
  0xac   : > { %v264_v20 = vsel %vm241_vm0, %v259_v19, 0.0 }
  0xad   : > { %268 = vadd.xlane.f32.xlu1 %v267_v18  ;;  %265 = vadd.xlane.f32.xlu0 %v264_v20 }
 0x136   : > { %v263_v21 = vpop.xlane.xlu1 %262 }
 0x137   : > { %v270_v22 = vmul.f32 0.015625, %v263_v21 }
 0x139   : > { %v273_v24 = vadd.f32 1e-06, %v270_v22 }
 0x13a   : > { %v269_v25 = vpop.xlane.xlu1 %268  ;;  %v266_v26 = vpop.xlane.xlu0 %265 }
 0x13b   : > { %467 = vrsqrt.f32 %v273_v24  ;;  %v272_v27 = vmul.f32 0.015625, %v269_v25  ;;  %v271_v28 = vmul.f32 0.015625, %v266_v26 }
 0x13d   : > { %v275_v31 = vadd.f32 1e-06, %v272_v27  ;;  %v274_v32 = vadd.f32 1e-06, %v271_v28 }
 0x13f   : > { %469 = vrsqrt.f32 %v275_v31 }
 0x140   : > { %471 = vrsqrt.f32 %v274_v32 }
 0x145   : > { %v468_v36 = vpop.eup %467 }
 0x146   : > { %v279_v37 = vmul.f32 %v468_v36, %v255_v10 }
 0x148   : > { %v290_v39 = vmul.f32 %v288_v35, %v279_v37 }
 0x149   : > { %v470_v40 = vpop.eup %469 }
 0x14a   : > { %v472_v41 = vpop.eup %471  ;;  %v300_v42 = vadd.f32 %v432_v38, %v290_v39  ;;  %v281_v43 = vmul.f32 %v470_v40, %v257_v11 }
 0x14b   : > { %v280_v44 = vmul.f32 %v472_v41, %v256_v16 }
 0x14c   : > { %v438_v45 = vpack.c.bf16 %v300_v42, %v300_v42  ;;  %v292_v46 = vmul.f32 %v288_v35, %v281_v43 }
 0x14d   : > { %v291_v47 = vmul.f32 %v288_v35, %v280_v44 }
 0x14e   : > { %317 = vst.msk [vmem:[%s236_s29] sm:$0xf] %vm316_vm1, %v438_v45  ;;  %v302_v48 = vadd.f32 %v432_v38, %v292_v46 }
 0x14f   : > { %v301_v49 = vadd.f32 %v432_v38, %v291_v47 }
 0x150   : > { %v440_v50 = vpack.c.bf16 %v302_v48, %v302_v48 }
 0x151   : > { %v439_v51 = vpack.c.bf16 %v301_v49, %v301_v49 }
 0x152   : > { %319 = vst.msk [vmem:[%s236_s29 + $0x8] sm:$0xf] %vm316_vm1, %v440_v50 }
 0x153   : > { %318 = vst.msk [vmem:[%s236_s29 + $0x4] sm:$0xf] %vm316_vm1, %v439_v51 }
 0x154 PF: > { %s13_s14 = sadd.s32 1, %s495_s14   ;;  %s572_s12 = smov %s491_s13 }
 0x155   : > { %p10_p5 = scmp.ge.s32.totalorder %s13_s14, 4   ;;  %s573_s13 = smov %s575_s15 }
 0x157   :  { %12 = sbr.rel (!%p10_p5) target bundleno = 2 (0x2), region = 68 }

// kernel: _lambda_.39
= control target key start
LH: loop header
LB: loop body
LE: loop exit
PB: predicated region body
PF: predicated region fallthrough
CT: control target
= control target key end

     0   :  { %vm20_vm0 = vcmask 523264   ;;  %v349_v1 = vmov 0   ;;  %v350_v2 = vmov 0.0   ;;  %v227_v13 = vlaneseq  ;;  %s456_s1 = inlined_call_operand.vmem [shape: bf16[64,192], index: 1, kind: input, shape index: {}]   ;;  %s457_s0 = inlined_call_operand.vmem [shape: bf16[48,64], index: 0, kind: input, shape index: {}]   ;;  %s458_s2 = inlined_call_operand.vmem [shape: f32[1,192], index: 2, kind: input, shape index: {}]   ;;  %s459_s3 = inlined_call_operand.vmem [shape: bf16[48,192], index: 3, kind: output, shape index: {}]  }
   0x1   :  { %v334_v0 = vld [vmem:[%s456_s1 + $0x4] ss:$8 sps:$4 sm:$0xff]   ;;  %165 = vmatprep.mubr.bf16.mxu1 %v349_v1  ;;  %155 = vmatprep.mubr.bf16.mxu0 %v349_v1  ;;  %21 = vst.msk [vmem:[#allocation2 + $0x8] sm:$0xff] %vm20_vm0, %v350_v2  ;;  %23 = vst.msk [vmem:[#allocation2 + $0x18] sm:$0xff] %vm20_vm0, %v350_v2  ;;  %v336_v3 = vld [vmem:[%s456_s1] ss:$8 sps:$4 sm:$0xff]  }
   0x2   :  { %25 = vst.msk [vmem:[#allocation2 + $0x28] sm:$0xff] %vm20_vm0, %v350_v2  ;;  %27 = vst.msk [vmem:[#allocation2 + $0x38] sm:$0xff] %vm20_vm0, %v350_v2  ;;  %324 = vmatprep.subr.bf16.mxu1 %v334_v0  ;;  %v337_v4 = vld [vmem:[%s456_s1 + $0x14] ss:$8 sps:$4 sm:$0xff]   ;;  %123 = vmatprep.subr.bf16.mxu0 %v334_v0  ;;  %v339_v5 = vld [vmem:[%s456_s1 + $0x10] ss:$8 sps:$4 sm:$0xff]  }
   0x3   :  { %29 = vst.msk [vmem:[#allocation2 + $0x48] sm:$0xff] %vm20_vm0, %v350_v2  ;;  %31 = vst.msk [vmem:[#allocation2 + $0x58] sm:$0xff] %vm20_vm0, %v350_v2  ;;  %328 = vmatpush1.bf16.msra.mxu1 %v336_v3  ;;  %124 = vmatpush1.bf16.msra.mxu0 %v336_v3  ;;  %v340_v6 = vld [vmem:[%s456_s1 + $0x24] ss:$8 sps:$4 sm:$0xff]   ;;  %v342_v7 = vld [vmem:[%s456_s1 + $0x20] ss:$8 sps:$4 sm:$0xff]  }
   0x4   :  { %325 = vmatprep.subr.bf16.mxu1 %v337_v4  ;;  %125 = vmatprep.subr.bf16.mxu0 %v337_v4  ;;  %v343_v8 = vld [vmem:[%s456_s1 + $0x34] ss:$8 sps:$4 sm:$0xff]   ;;  %v345_v9 = vld [vmem:[%s456_s1 + $0x30] ss:$8 sps:$4 sm:$0xff]   ;;  %v346_v10 = vld [vmem:[%s457_s0 + $0x8] sm:$0xff]   ;;  %v228_v17 = vshrl.u32 %v227_v13, 7 }
   0x5   :  { %v347_v11 = vld [vmem:[%s457_s0] sm:$0xff]   ;;  %v348_v12 = vld [vmem:[%s457_s0 + $0x10] sm:$0xff]   ;;  %vm285_vm1 = vcmask 1043456   ;;  %vm286_vm2 = vcmask 523268  }
   0x6   :  { %v229_v29 = vsub.s32 0, %v228_v17  ;;  %v233_v30 = vsub.s32 1, %v228_v17  ;;  %v225_v33 = vld [vmem:[%s458_s2] sm:$0x3]  ;;  %vm421_vm3 = vmor %vm286_vm2, %vm285_vm1 }
   0x7   :  { %329 = vmatpush1.bf16.msra.mxu1 %v339_v5  ;;  %126 = vmatpush1.bf16.msra.mxu0 %v339_v5 }
   0x8   :  { %326 = vmatprep.subr.bf16.mxu1 %v340_v6  ;;  %127 = vmatprep.subr.bf16.mxu0 %v340_v6  ;;  %v33_v15 = vld [vmem:[#allocation2 + $0x8] sm:$0xff]  ;;  %v35_v22 = vld [vmem:[#allocation2 + $0x18] sm:$0xff]  ;;  %v230_v35 = vrot.slane %v225_v33, %v229_v29  ;;  %v234_v36 = vrot.slane %v225_v33, %v233_v30 }
   0x9   :  { %v37_v14 = vld [vmem:[#allocation2 + $0x28] sm:$0xff]  ;;  %v39_v20 = vld [vmem:[#allocation2 + $0x38] sm:$0xff] }
   0xa   :  { %v41_v34 = vld [vmem:[#allocation2 + $0x48] sm:$0xff]  ;;  %v43_v39 = vld [vmem:[#allocation2 + $0x58] sm:$0xff] }
   0xb   :  { %330 = vmatpush1.bf16.msra.mxu1 %v342_v7  ;;  %128 = vmatpush1.bf16.msra.mxu0 %v342_v7 }
   0xc   :  { %327 = vmatprep.subr.bf16.mxu1 %v343_v8  ;;  %129 = vmatprep.subr.bf16.mxu0 %v343_v8 }
   0xf   :  { %331 = vmatpush1.bf16.msra.mxu1 %v345_v9  ;;  %130 = vmatpush1.bf16.msra.mxu0 %v345_v9 }
  0x12   :  { %310 = vmatmul.mubr.msk.bf16.vlgmr.msra.gmra.mrb[0].mxu1 %vm20_vm0, %v346_v10  ;;  %309 = vmatmul.mubr.msk.bf16.vlgmr.msra.gmra.mrb[0].mxu0 %vm20_vm0, %v347_v11 }
  0x13   :  { %175 = vmatprep.mubr.bf16.mxu1 %v349_v1 }
  0x1a   :  { %311 = vmatmul.mubr.msk.bf16.gmra.mrb[4].mxu1 %vm20_vm0, %v348_v12 }
  0xe5   :  { %v167_v16 = vpop.f32.mrb[0].mxu1  ;;  %v157_v18 = vpop.f32.mrb[0].mxu0 }
  0xe6   :  { %v169_v19 = vpop.f32.mrb[1].mxu1  ;;  %v159_v21 = vpop.f32.mrb[1].mxu0  ;;  %v237_v40 = vadd.f32 %v230_v35, %v157_v18  ;;  %v241_v46 = vadd.f32 %v230_v35, %v167_v16 }
  0xe7   :  { %v191_v23 = vadd.f32 %v169_v19, %v37_v14  ;;  %v171_v24 = vpop.f32.mrb[2].mxu1  ;;  %v187_v25 = vadd.f32 %v159_v21, %v33_v15  ;;  %v161_v26 = vpop.f32.mrb[2].mxu0 }
  0xe8   :  { %v173_v27 = vpop.f32.mrb[3].mxu1  ;;  %v163_v28 = vpop.f32.mrb[3].mxu0  ;;  %v243_v51 = vadd.f32 %v230_v35, %v171_v24  ;;  %v239_v53 = vadd.f32 %v230_v35, %v161_v26 }
  0xe9   :  { %203 = vst.msk [vmem:[#allocation2 + $0x28] sm:$0xff] %vm20_vm0, %v191_v23  ;;  %v193_v31 = vadd.f32 %v173_v27, %v39_v20  ;;  %199 = vst.msk [vmem:[#allocation2 + $0x8] sm:$0xff] %vm20_vm0, %v187_v25  ;;  %v189_v32 = vadd.f32 %v163_v28, %v35_v22 }
  0xeb   :  { %205 = vst.msk [vmem:[#allocation2 + $0x38] sm:$0xff] %vm20_vm0, %v193_v31  ;;  %201 = vst.msk [vmem:[#allocation2 + $0x18] sm:$0xff] %vm20_vm0, %v189_v32 }
  0xed   :  { %v177_v37 = vpop.f32.mrb[4].mxu1 }
  0xee   :  { %v179_v38 = vpop.f32.mrb[5].mxu1  ;;  %v245_v62 = vadd.f32 %v230_v35, %v177_v37 }
  0xef   :  { %v195_v41 = vadd.f32 %v179_v38, %v41_v34  ;;  %v181_v42 = vpop.f32.mrb[6].mxu1 }
  0xf0   :  { %v218_v43 = vld [vmem:[#allocation2 + $0x28] sm:$0xff]  ;;  %v183_v45 = vpop.f32.mrb[7].mxu1  ;;  %v247_v2 = vadd.f32 %v230_v35, %v181_v42 }
  0xf1   :  { %v214_v44 = vld [vmem:[#allocation2 + $0x8] sm:$0xff]  ;;  %v242_v47 = vadd.f32 %v234_v36, %v218_v43  ;;  %207 = vst.msk [vmem:[#allocation2 + $0x48] sm:$0xff] %vm20_vm0, %v195_v41  ;;  %v197_v49 = vadd.f32 %v183_v45, %v43_v39 }
  0xf2   :  { %v238_v48 = vadd.f32 %v234_v36, %v214_v44  ;;  %v220_v52 = vld [vmem:[#allocation2 + $0x38] sm:$0xff] }
  0xf3   :  { %v216_v54 = vld [vmem:[#allocation2 + $0x18] sm:$0xff]  ;;  %v320_v55 = vpack.c.bf16 %v242_v47, %v241_v46  ;;  %v244_v56 = vadd.f32 %v234_v36, %v220_v52  ;;  %209 = vst.msk [vmem:[#allocation2 + $0x58] sm:$0xff] %vm20_vm0, %v197_v49 }
  0xf4   :  { %v318_v57 = vpack.c.bf16 %v238_v48, %v237_v40  ;;  %v240_v58 = vadd.f32 %v234_v36, %v216_v54 }
  0xf5   :  { %290 = vst.msk [vmem:[%s459_s3 + $0x10] sm:$0xff] %vm421_vm3, %v320_v55  ;;  %v321_v59 = vpack.c.bf16 %v244_v56, %v243_v51 }
  0xf6   :  { %288 = vst.msk [vmem:[%s459_s3] sm:$0xff] %vm421_vm3, %v318_v57  ;;  %v319_v60 = vpack.c.bf16 %v240_v58, %v239_v53 }
  0xf7   :  { %291 = vst.msk [vmem:[%s459_s3 + $0x18] sm:$0xff] %vm421_vm3, %v321_v59 }
  0xf8   :  { %289 = vst.msk [vmem:[%s459_s3 + $0x8] sm:$0xff] %vm421_vm3, %v319_v60  ;;  %v222_v61 = vld [vmem:[#allocation2 + $0x48] sm:$0xff] }
  0xf9   :  { %v246_v63 = vadd.f32 %v234_v36, %v222_v61 }
  0xfa   :  { %v224_v0 = vld [vmem:[#allocation2 + $0x58] sm:$0xff] }
  0xfb   :  { %v322_v1 = vpack.c.bf16 %v246_v63, %v245_v62  ;;  %v248_v3 = vadd.f32 %v234_v36, %v224_v0 }
  0xfd   :  { %292 = vst.msk [vmem:[%s459_s3 + $0x20] sm:$0xff] %vm421_vm3, %v322_v1  ;;  %v323_v4 = vpack.c.bf16 %v248_v3, %v247_v2 }
  0xff   :  { %293 = vst.msk [vmem:[%s459_s3 + $0x28] sm:$0xff] %vm421_vm3, %v323_v4 }

// kernel: _lambda_.45
= control target key start
LH: loop header
LB: loop body
LE: loop exit
PB: predicated region body
PF: predicated region fallthrough
CT: control target
= control target key end

     0   :  { %vm20_vm0 = vcmask 130048   ;;  %vm75_vm1 = vcmask 523264   ;;  %v239_v3 = vmov 0.0   ;;  %s310_s0 = inlined_call_operand.vmem [shape: bf16[32,64], index: 0, kind: input, shape index: {}]   ;;  %s311_s1 = inlined_call_operand.vmem [shape: bf16[64,16], index: 1, kind: input, shape index: {}]   ;;  %s312_s2 = inlined_call_operand.vmem [shape: f32[1,16], index: 2, kind: input, shape index: {}]   ;;  %s313_s3 = inlined_call_operand.hbm [shape: f32[32,16], index: 3, kind: output, shape index: {}]  }
   0x1   :  { %v209_v0 = vld [vmem:[%s311_s1] sm:$0xff]   ;;  %v210_v1 = vld [vmem:[%s311_s1 + $0x8] sm:$0xff]   ;;  %v211_v2 = vld [vmem:[%s311_s1 + $0x10] sm:$0xff]   ;;  %23 = vst.msk [vmem:[#allocation2 + $0x10] sm:$0xff] %vm20_vm0, %v239_v3 }
   0x2   :  { %193 = vmatprep.subr.bf16.mxu0 %v209_v0  ;;  %21 = vst.msk [vmem:[#allocation2] sm:$0xff] %vm20_vm0, %v239_v3  ;;  %22 = vst.msk [vmem:[#allocation2 + $0x8] sm:$0xff] %vm20_vm0, %v239_v3  ;;  %v213_v4 = vld [vmem:[%s310_s0] sm:$0xff]  }
   0x3   :  { %194 = vmatpush3.bf16.msra.mxu0 %v209_v0  ;;  %24 = vst.msk [vmem:[#allocation2 + $0x18] sm:$0xff] %vm20_vm0, %v239_v3  ;;  %201 = vmatprep.mubr.msk.bf16.mxu0 %vm75_vm1, %v213_v4 }
   0x4   :  { %195 = vmatprep.subr.bf16.mxu0 %v210_v1 }
   0x5   :  { %8 = vsyncpa [#allocation4], 0  ;;  %v212_v5 = vld [vmem:[%s311_s1 + $0x18] sm:$0xff]   ;;  %v214_v6 = vld [vmem:[%s310_s0 + $0x8] sm:$0xff]   ;;  %s240_s24 = smov [#allocation3]  }
   0x6   :  { %v186_v19 = vld [vmem:[%s312_s2] ss:$0 sm:$0xff]  ;;  %s167_s25 = sshll.u32 %s240_s24, 4  ;;  %s168_s25 = int_to_ptr.vmem [resolvable:$true] %s167_s25 }
   0x7   :  { %196 = vmatpush3.bf16.msra.mxu0 %v210_v1  ;;  %s215_s2 = scalar_lea.vmem %s168_s25, 512  ;;  %p220_p1 = scmp.lt.s32.totalorder %s168_s25, %s168_s25 }
   0x8   :  { %197 = vmatprep.subr.bf16.mxu0 %v211_v2  ;;  %v27_v7 = vld [vmem:[#allocation2 + $0x10] sm:$0xff]  ;;  %p216_p0 = scmp.ne.s32.totalorder %s168_s25, %s215_s2  ;;  %p221_p2 = scmp.lt.s32.totalorder %s215_s2, %s215_s2 }
   0x9   :  { %v25_v8 = vld [vmem:[#allocation2] sm:$0xff]  ;;  %v26_v13 = vld [vmem:[#allocation2 + $0x8] sm:$0xff] }
   0xa   :  { %v28_v10 = vld [vmem:[#allocation2 + $0x18] sm:$0xff]  ;;  %p222_p3 = por %p221_p2, %p220_p1 }
   0xb   :  { %198 = vmatpush3.bf16.msra.mxu0 %v211_v2 }
   0xc   :  { %199 = vmatprep.subr.bf16.mxu0 %v212_v5  ;;  %p223_p4 = pnand %p222_p3, %p216_p0 }
   0xf   :  { %200 = vmatpush3.bf16.msra.mxu0 %v212_v5 }
  0x12   :  { %202 = vmatmul.mubr.msk.bf16.vlgmr.msra.gmra.mrb[0].mxu0 %vm75_vm1, %v214_v6 }
  0xe5   :  { %v203_v9 = vpop.f32.mrb[0].mxu0 }
  0xe6   :  { %v133_v11 = vadd.f32 %v203_v9, %v27_v7  ;;  %v116_v12 = vpop.f32.mrb[1].mxu0 }
  0xe7   :  { %v131_v14 = vadd.f32 %v116_v12, %v25_v8  ;;  %v204_v15 = vpop.f32.mrb[2].mxu0 }
  0xe8   :  { %138 = vst.msk [vmem:[#allocation2 + $0x10] sm:$0xff] %vm20_vm0, %v133_v11  ;;  %v134_v16 = vadd.f32 %v204_v15, %v28_v10  ;;  %v119_v17 = vpop.f32.mrb[3].mxu0 }
  0xe9   :  { %136 = vst.msk [vmem:[#allocation2] sm:$0xff] %vm20_vm0, %v131_v14  ;;  %v132_v18 = vadd.f32 %v119_v17, %v26_v13 }
  0xea   :  { %139 = vst.msk [vmem:[#allocation2 + $0x18] sm:$0xff] %vm20_vm0, %v134_v16 }
  0xeb   :  { %137 = vst.msk [vmem:[#allocation2 + $0x8] sm:$0xff] %vm20_vm0, %v132_v18 }
  0xef   :  { %v145_v20 = vld [vmem:[#allocation2 + $0x10] sm:$0xff] }
  0xf0   :  { %v143_v21 = vld [vmem:[#allocation2] sm:$0xff]  ;;  %v156_v22 = vadd.f32 %v186_v19, %v145_v20 }
  0xf1   :  { %v146_v23 = vld [vmem:[#allocation2 + $0x18] sm:$0xff]  ;;  %v154_v24 = vadd.f32 %v186_v19, %v143_v21 }
  0xf2   :  { %v144_v25 = vld [vmem:[#allocation2 + $0x8] sm:$0xff]  ;;  %v157_v26 = vadd.f32 %v186_v19, %v146_v23  ;;  %160 = vst.msk [vmem:[#allocation3 + $0x10] sm:$0xff] %vm20_vm0, %v156_v22 }
  0xf3   :  { %v155_v27 = vadd.f32 %v186_v19, %v144_v25  ;;  %158 = vst.msk [vmem:[#allocation3] sm:$0xff] %vm20_vm0, %v154_v24 }
  0xf4   :  { %161 = vst.msk [vmem:[#allocation3 + $0x18] sm:$0xff] %vm20_vm0, %v157_v26 }
  0xf5   :  { %159 = vst.msk [vmem:[#allocation3 + $0x8] sm:$0xff] %vm20_vm0, %v155_v27 }
  0xf6   :  { %226 = shalt.err (!%p223_p4)
}
  0xf7   :  { %s227_s28 = scalar_lea.hbm %s313_s3, 512 }
  0xf8   :  { %p228_p5 = scmp.ne.s32.totalorder %s313_s3, %s227_s28  ;;  %p231_p6 = scmp.lt.u32.totalorder %s227_s28, %s313_s3 }
  0xfa   :  { %p233_p7 = pnand %p231_p6, %p228_p5 }
  0xfc   :  { %236 = shalt.err (!%p233_p7)
}
  0xfd   :  { %s241_s6 = smov 128   ;;  %s242_s7 = smov 8  }
  0xfe   :  { %173 = dma.vmem_to_hbm [thread:$0]  %s168_s25, 512, %s313_s3, [#allocation4], %s241_s6, %s241_s6, %s242_s7  }
  0xff   :  { %237 = dma.done.wait [#allocation4], 512  }
 0x100   :  { %238 = vsyncadd [#allocation4], 4294966784 }
 0x101   :  { %177 = vsyncpa [#allocation4], 1 }

// kernel: _lambda_.42
= control target key start
LH: loop header
LB: loop body
LE: loop exit
PB: predicated region body
PF: predicated region fallthrough
CT: control target
= control target key end

     0   :  { %vm19_vm0 = vcmask 523264   ;;  %v251_v0 = vmov 0.0   ;;  %vm252_vm1 = vmmov 0   ;;  %s339_s1 = inlined_call_operand.vmem [shape: bf16[64,64], index: 1, kind: input, shape index: {}]   ;;  %s340_s0 = inlined_call_operand.vmem [shape: bf16[48,64], index: 0, kind: input, shape index: {}]   ;;  %s341_s2 = inlined_call_operand.vmem [shape: f32[1,64], index: 2, kind: input, shape index: {}]   ;;  %s342_s3 = inlined_call_operand.vmem [shape: f32[48,64], index: 3, kind: output, shape index: {}]  }
   0x1   :  { %234 = vmatprep.subr.bf16.mxu1 %v251_v0  ;;  %v244_v1 = vld [vmem:[%s339_s1] sm:$0xff]   ;;  %214 = vmatprep.subr.bf16.mxu0 %v251_v0  ;;  %20 = vst.msk [vmem:[#allocation2] sm:$0xff] %vm19_vm0, %v251_v0  ;;  %21 = vst.msk [vmem:[#allocation2 + $0x8] sm:$0xff] %vm19_vm0, %v251_v0  ;;  %v245_v2 = vld [vmem:[%s339_s1 + $0x8] sm:$0xff]  }
   0x2   :  { %22 = vst.msk [vmem:[#allocation2 + $0x10] sm:$0xff] %vm19_vm0, %v251_v0  ;;  %23 = vst.msk [vmem:[#allocation2 + $0x18] sm:$0xff] %vm19_vm0, %v251_v0  ;;  %226 = vmatprep.mubr.msk.bf16.mxu1 %vm252_vm1, %v251_v0  ;;  %222 = vmatprep.mubr.msk.bf16.mxu0 %vm252_vm1, %v251_v0  ;;  %v246_v3 = vld [vmem:[%s339_s1 + $0x10] sm:$0xff]   ;;  %v247_v4 = vld [vmem:[%s339_s1 + $0x18] sm:$0xff]  }
   0x3   :  { %24 = vst.msk [vmem:[#allocation2 + $0x20] sm:$0xff] %vm19_vm0, %v251_v0  ;;  %25 = vst.msk [vmem:[#allocation2 + $0x28] sm:$0xff] %vm19_vm0, %v251_v0  ;;  %238 = vmatpush3.bf16.msra.mxu1 %v244_v1  ;;  %215 = vmatpush3.bf16.msra.mxu0 %v244_v1  ;;  %v248_v5 = vld [vmem:[%s340_s0 + $0x8] sm:$0xff]   ;;  %v249_v6 = vld [vmem:[%s340_s0] sm:$0xff]  }
   0x4   :  { %235 = vmatprep.subr.bf16.mxu1 %v251_v0  ;;  %216 = vmatprep.subr.bf16.mxu0 %v251_v0  ;;  %v250_v7 = vld [vmem:[%s340_s0 + $0x10] sm:$0xff]   ;;  %v206_v25 = vld [vmem:[%s341_s2] ss:$0 sm:$0xff] }
   0x7   :  { %239 = vmatpush3.bf16.msra.mxu1 %v245_v2  ;;  %217 = vmatpush3.bf16.msra.mxu0 %v245_v2 }
   0x8   :  { %236 = vmatprep.subr.bf16.mxu1 %v251_v0  ;;  %218 = vmatprep.subr.bf16.mxu0 %v251_v0  ;;  %v26_v9 = vld [vmem:[#allocation2] sm:$0xff]  ;;  %v27_v13 = vld [vmem:[#allocation2 + $0x8] sm:$0xff] }
   0x9   :  { %v28_v8 = vld [vmem:[#allocation2 + $0x10] sm:$0xff]  ;;  %v29_v11 = vld [vmem:[#allocation2 + $0x18] sm:$0xff] }
   0xa   :  { %v30_v24 = vld [vmem:[#allocation2 + $0x20] sm:$0xff]  ;;  %v31_v27 = vld [vmem:[#allocation2 + $0x28] sm:$0xff] }
   0xb   :  { %240 = vmatpush3.bf16.msra.mxu1 %v246_v3  ;;  %219 = vmatpush3.bf16.msra.mxu0 %v246_v3 }
   0xc   :  { %237 = vmatprep.subr.bf16.mxu1 %v251_v0  ;;  %220 = vmatprep.subr.bf16.mxu0 %v251_v0 }
   0xf   :  { %241 = vmatpush3.bf16.msra.mxu1 %v247_v4  ;;  %221 = vmatpush3.bf16.msra.mxu0 %v247_v4 }
  0x12   :  { %227 = vmatmul.mubr.msk.bf16.vlgmr.msra.gmra.mrb[0].mxu1 %vm19_vm0, %v248_v5  ;;  %223 = vmatmul.mubr.msk.bf16.vlgmr.msra.gmra.mrb[0].mxu0 %vm19_vm0, %v249_v6 }
  0x13   :  { %230 = vmatprep.mubr.msk.bf16.mxu1 %vm252_vm1, %v251_v0 }
  0x1a   :  { %231 = vmatmul.mubr.msk.bf16.gmra.mrb[4].mxu1 %vm19_vm0, %v250_v7 }
  0xe5   :  { %v137_v10 = vpop.f32.mrb[0].mxu1  ;;  %v129_v12 = vpop.f32.mrb[0].mxu0 }
  0xe6   :  { %v154_v14 = vadd.f32 %v137_v10, %v28_v8  ;;  %v228_v15 = vpop.f32.mrb[1].mxu1  ;;  %v152_v16 = vadd.f32 %v129_v12, %v26_v9  ;;  %v224_v17 = vpop.f32.mrb[1].mxu0 }
  0xe7   :  { %v140_v18 = vpop.f32.mrb[2].mxu1  ;;  %v132_v19 = vpop.f32.mrb[2].mxu0 }
  0xe8   :  { %160 = vst.msk [vmem:[#allocation2 + $0x10] sm:$0xff] %vm19_vm0, %v154_v14  ;;  %v155_v20 = vadd.f32 %v140_v18, %v29_v11  ;;  %v229_v21 = vpop.f32.mrb[3].mxu1  ;;  %158 = vst.msk [vmem:[#allocation2] sm:$0xff] %vm19_vm0, %v152_v16  ;;  %v153_v22 = vadd.f32 %v132_v19, %v27_v13  ;;  %v225_v23 = vpop.f32.mrb[3].mxu0 }
  0xea   :  { %161 = vst.msk [vmem:[#allocation2 + $0x18] sm:$0xff] %vm19_vm0, %v155_v20  ;;  %159 = vst.msk [vmem:[#allocation2 + $0x8] sm:$0xff] %vm19_vm0, %v153_v22 }
  0xed   :  { %v145_v26 = vpop.f32.mrb[4].mxu1 }
  0xee   :  { %v156_v28 = vadd.f32 %v145_v26, %v30_v24  ;;  %v232_v29 = vpop.f32.mrb[5].mxu1 }
  0xef   :  { %v169_v30 = vld [vmem:[#allocation2 + $0x10] sm:$0xff]  ;;  %v167_v31 = vld [vmem:[#allocation2] sm:$0xff]  ;;  %v148_v32 = vpop.f32.mrb[6].mxu1 }
  0xf0   :  { %v182_v33 = vadd.f32 %v206_v25, %v169_v30  ;;  %v180_v34 = vadd.f32 %v206_v25, %v167_v31  ;;  %162 = vst.msk [vmem:[#allocation2 + $0x20] sm:$0xff] %vm19_vm0, %v156_v28  ;;  %v157_v35 = vadd.f32 %v148_v32, %v31_v27  ;;  %v233_v36 = vpop.f32.mrb[7].mxu1 }
  0xf1   :  { %v170_v37 = vld [vmem:[#allocation2 + $0x18] sm:$0xff]  ;;  %v168_v38 = vld [vmem:[#allocation2 + $0x8] sm:$0xff] }
  0xf2   :  { %188 = vst.msk [vmem:[%s342_s3 + $0x10] sm:$0xff] %vm19_vm0, %v182_v33  ;;  %v183_v39 = vadd.f32 %v206_v25, %v170_v37  ;;  %186 = vst.msk [vmem:[%s342_s3] sm:$0xff] %vm19_vm0, %v180_v34  ;;  %v181_v40 = vadd.f32 %v206_v25, %v168_v38 }
  0xf3   :  { %163 = vst.msk [vmem:[#allocation2 + $0x28] sm:$0xff] %vm19_vm0, %v157_v35 }
  0xf4   :  { %189 = vst.msk [vmem:[%s342_s3 + $0x18] sm:$0xff] %vm19_vm0, %v183_v39  ;;  %187 = vst.msk [vmem:[%s342_s3 + $0x8] sm:$0xff] %vm19_vm0, %v181_v40 }
  0xf7   :  { %v171_v41 = vld [vmem:[#allocation2 + $0x20] sm:$0xff] }
  0xf8   :  { %v184_v42 = vadd.f32 %v206_v25, %v171_v41 }
  0xfa   :  { %v172_v43 = vld [vmem:[#allocation2 + $0x28] sm:$0xff]  ;;  %190 = vst.msk [vmem:[%s342_s3 + $0x20] sm:$0xff] %vm19_vm0, %v184_v42 }
  0xfb   :  { %v185_v44 = vadd.f32 %v206_v25, %v172_v43 }
  0xfd   :  { %191 = vst.msk [vmem:[%s342_s3 + $0x28] sm:$0xff] %vm19_vm0, %v185_v44 }

// kernel: _lambda_.40
= control target key start
LH: loop header
LB: loop body
LE: loop exit
PB: predicated region body
PF: predicated region fallthrough
CT: control target
= control target key end

     0   :  { %v476_v1 = vmov 0   ;;  %vm112_vm0 = vcmask 523264   ;;  %v226_v12 = vlaneseq  ;;  %s651_s1 = inlined_call_operand.vmem [shape: bf16[64,256], index: 1, kind: input, shape index: {}]   ;;  %s652_s0 = inlined_call_operand.vmem [shape: bf16[48,64], index: 0, kind: input, shape index: {}]   ;;  %s653_s2 = inlined_call_operand.vmem [shape: f32[1,256], index: 2, kind: input, shape index: {}]   ;;  %s654_s3 = inlined_call_operand.vmem [shape: bf16[48,256], index: 3, kind: output, shape index: {}]  }
   0x1   :  { %v437_v0 = vld [vmem:[%s651_s1 + $0x4] ss:$8 sps:$4 sm:$0xff]   ;;  %154 = vmatprep.mubr.bf16.mxu0 %v476_v1  ;;  %164 = vmatprep.mubr.bf16.mxu1 %v476_v1  ;;  %v439_v2 = vld [vmem:[%s651_s1] ss:$8 sps:$4 sm:$0xff]   ;;  %v440_v3 = vld [vmem:[%s651_s1 + $0x14] ss:$8 sps:$4 sm:$0xff]  }
   0x2   :  { %122 = vmatprep.subr.bf16.mxu0 %v437_v0  ;;  %428 = vmatprep.subr.bf16.mxu1 %v437_v0  ;;  %v442_v4 = vld [vmem:[%s651_s1 + $0x10] ss:$8 sps:$4 sm:$0xff]   ;;  %v443_v5 = vld [vmem:[%s651_s1 + $0x24] ss:$8 sps:$4 sm:$0xff]   ;;  %v445_v6 = vld [vmem:[%s651_s1 + $0x20] ss:$8 sps:$4 sm:$0xff]  }
   0x3   :  { %123 = vmatpush1.bf16.msra.mxu0 %v439_v2  ;;  %432 = vmatpush1.bf16.msra.mxu1 %v439_v2  ;;  %v446_v7 = vld [vmem:[%s651_s1 + $0x34] ss:$8 sps:$4 sm:$0xff]   ;;  %v448_v8 = vld [vmem:[%s651_s1 + $0x30] ss:$8 sps:$4 sm:$0xff]   ;;  %v449_v9 = vld [vmem:[%s652_s0] sm:$0xff]   ;;  %v227_v13 = vshrl.u32 %v226_v12, 7 }
   0x4   :  { %124 = vmatprep.subr.bf16.mxu0 %v440_v3  ;;  %429 = vmatprep.subr.bf16.mxu1 %v440_v3  ;;  %v450_v10 = vld [vmem:[%s652_s0 + $0x8] sm:$0xff]   ;;  %v451_v11 = vld [vmem:[%s652_s0 + $0x10] sm:$0xff]   ;;  %v224_v15 = vld [vmem:[%s653_s2] sm:$0x3] }
   0x5   :  { %v228_v14 = vsub.s32 0, %v227_v13  ;;  %v232_v16 = vsub.s32 1, %v227_v13 }
   0x7   :  { %125 = vmatpush1.bf16.msra.mxu0 %v442_v4  ;;  %433 = vmatpush1.bf16.msra.mxu1 %v442_v4  ;;  %v533_v17 = vrot.slane %v224_v15, %v228_v14  ;;  %v535_v18 = vrot.slane %v224_v15, %v232_v16 }
   0x8   :  { %126 = vmatprep.subr.bf16.mxu0 %v443_v5  ;;  %430 = vmatprep.subr.bf16.mxu1 %v443_v5 }
   0xb   :  { %127 = vmatpush1.bf16.msra.mxu0 %v445_v6  ;;  %434 = vmatpush1.bf16.msra.mxu1 %v445_v6 }
   0xc   :  { %128 = vmatprep.subr.bf16.mxu0 %v446_v7  ;;  %431 = vmatprep.subr.bf16.mxu1 %v446_v7 }
   0xf   :  { %129 = vmatpush1.bf16.msra.mxu0 %v448_v8  ;;  %435 = vmatpush1.bf16.msra.mxu1 %v448_v8 }
  0x12   :  { %413 = vmatmul.mubr.msk.bf16.vlgmr.msra.gmra.mrb[0].mxu0 %vm112_vm0, %v449_v9  ;;  %414 = vmatmul.mubr.msk.bf16.vlgmr.msra.gmra.mrb[0].mxu1 %vm112_vm0, %v450_v10 }
  0x13   :  { %174 = vmatprep.mubr.bf16.mxu1 %v476_v1 }
  0x1a   :  { %415 = vmatmul.mubr.msk.bf16.gmra.mrb[4].mxu1 %vm112_vm0, %v451_v11 }
  0xe5   :  { %v156_v19 = vpop.f32.mrb[0].mxu0  ;;  %v166_v20 = vpop.f32.mrb[0].mxu1 }
  0xe6   :  { %v538_v21 = vadd.f32 %v533_v17, %v156_v19  ;;  %v541_v22 = vadd.f32 %v533_v17, %v166_v20  ;;  %v158_v23 = vpop.f32.mrb[1].mxu0  ;;  %v168_v24 = vpop.f32.mrb[1].mxu1 }
  0xe7   :  { %v544_v25 = vadd.f32 %v535_v18, %v158_v23  ;;  %v547_v26 = vadd.f32 %v535_v18, %v168_v24  ;;  %v160_v27 = vpop.f32.mrb[2].mxu0  ;;  %v170_v28 = vpop.f32.mrb[2].mxu1 }
  0xe8   :  { %v248_v29 = vmul.f32 %v538_v21, %v538_v21  ;;  %v252_v30 = vmul.f32 %v541_v22, %v541_v22  ;;  %v554_v31 = vadd.f32 %v533_v17, %v160_v27  ;;  %v557_v32 = vadd.f32 %v533_v17, %v170_v28  ;;  %v162_v33 = vpop.f32.mrb[3].mxu0  ;;  %v172_v34 = vpop.f32.mrb[3].mxu1 }
  0xe9   :  { %v249_v35 = vmul.f32 %v544_v25, %v544_v25  ;;  %v253_v36 = vmul.f32 %v547_v26, %v547_v26  ;;  %v564_v37 = vadd.f32 %v535_v18, %v162_v33  ;;  %v567_v38 = vadd.f32 %v535_v18, %v172_v34 }
  0xea   :  { %v260_v39 = vmul.f32 %v248_v29, %v538_v21  ;;  %v264_v40 = vmul.f32 %v252_v30, %v541_v22  ;;  %v250_v41 = vmul.f32 %v554_v31, %v554_v31  ;;  %v254_v42 = vmul.f32 %v557_v32, %v557_v32 }
  0xeb   :  { %v261_v43 = vmul.f32 %v249_v35, %v544_v25  ;;  %v265_v44 = vmul.f32 %v253_v36, %v547_v26  ;;  %v251_v45 = vmul.f32 %v564_v37, %v564_v37  ;;  %v255_v46 = vmul.f32 %v567_v38, %v567_v38 }
  0xec   :  { %v272_v47 = vmul.f32 0.044715, %v260_v39  ;;  %v276_v48 = vmul.f32 0.044715, %v264_v40  ;;  %v262_v49 = vmul.f32 %v250_v41, %v554_v31  ;;  %v266_v50 = vmul.f32 %v254_v42, %v557_v32 }
  0xed   :  { %v273_v51 = vmul.f32 0.044715, %v261_v43  ;;  %v277_v52 = vmul.f32 0.044715, %v265_v44  ;;  %v263_v53 = vmul.f32 %v251_v45, %v564_v37  ;;  %v267_v54 = vmul.f32 %v255_v46, %v567_v38  ;;  %v176_v55 = vpop.f32.mrb[4].mxu1 }
  0xee   :  { %v284_v56 = vadd.f32 %v272_v47, %v538_v21  ;;  %v288_v57 = vadd.f32 %v276_v48, %v541_v22  ;;  %v274_v58 = vmul.f32 0.044715, %v262_v49  ;;  %v278_v59 = vmul.f32 0.044715, %v266_v50  ;;  %v178_v60 = vpop.f32.mrb[5].mxu1 }
  0xef   :  { %v285_v61 = vadd.f32 %v273_v51, %v544_v25  ;;  %v289_v62 = vadd.f32 %v277_v52, %v547_v26  ;;  %v275_v63 = vmul.f32 0.044715, %v263_v53  ;;  %v279_v0 = vmul.f32 0.044715, %v267_v54  ;;  %v180_v1 = vpop.f32.mrb[6].mxu1 }
  0xf0   :  { %v296_v2 = vmul.f32 0.7978846, %v284_v56  ;;  %v300_v3 = vmul.f32 0.7978846, %v288_v57  ;;  %v286_v4 = vadd.f32 %v274_v58, %v554_v31  ;;  %v290_v5 = vadd.f32 %v278_v59, %v557_v32  ;;  %v182_v6 = vpop.f32.mrb[7].mxu1 }
  0xf1   :  { %v297_v7 = vmul.f32 0.7978846, %v285_v61  ;;  %v301_v8 = vmul.f32 0.7978846, %v289_v62  ;;  %v287_v9 = vadd.f32 %v275_v63, %v564_v37  ;;  %v291_v10 = vadd.f32 %v279_v0, %v567_v38 }
  0xf2   :  { %452 = vtanh.f32 %v296_v2  ;;  %v298_v11 = vmul.f32 0.7978846, %v286_v4  ;;  %v594_v12 = vadd.f32 %v533_v17, %v176_v55  ;;  %v302_v13 = vmul.f32 0.7978846, %v290_v5 }
  0xf3   :  { %454 = vtanh.f32 %v300_v3  ;;  %v299_v14 = vmul.f32 0.7978846, %v287_v9  ;;  %v597_v15 = vadd.f32 %v535_v18, %v178_v60  ;;  %v602_v19 = vadd.f32 %v533_v17, %v180_v1 }
  0xf4   :  { %456 = vtanh.f32 %v297_v7  ;;  %v256_v16 = vmul.f32 %v594_v12, %v594_v12  ;;  %v605_v20 = vadd.f32 %v535_v18, %v182_v6  ;;  %v303_v23 = vmul.f32 0.7978846, %v291_v10 }
  0xf5   :  { %458 = vtanh.f32 %v301_v8  ;;  %v257_v24 = vmul.f32 %v597_v15, %v597_v15  ;;  %v258_v28 = vmul.f32 %v602_v19, %v602_v19 }
  0xf6   :  { %460 = vtanh.f32 %v298_v11  ;;  %v268_v27 = vmul.f32 %v256_v16, %v594_v12  ;;  %v259_v29 = vmul.f32 %v605_v20, %v605_v20 }
  0xf7   :  { %462 = vtanh.f32 %v302_v13  ;;  %v269_v17 = vmul.f32 %v257_v24, %v597_v15  ;;  %v270_v30 = vmul.f32 %v258_v28, %v602_v19 }
  0xf8   :  { %464 = vtanh.f32 %v299_v14  ;;  %v280_v18 = vmul.f32 0.044715, %v268_v27  ;;  %v271_v33 = vmul.f32 %v259_v29, %v605_v20 }
  0xf9   :  { %466 = vtanh.f32 %v303_v23  ;;  %v281_v34 = vmul.f32 0.044715, %v269_v17  ;;  %v282_v36 = vmul.f32 0.044715, %v270_v30 }
  0xfa   :  { %v292_v35 = vadd.f32 %v280_v18, %v594_v12  ;;  %v283_v39 = vmul.f32 0.044715, %v271_v33 }
  0xfb   :  { %v293_v40 = vadd.f32 %v281_v34, %v597_v15  ;;  %v294_v43 = vadd.f32 %v282_v36, %v602_v19 }
  0xfc   :  { %v453_v41 = vpop.eup %452  ;;  %v304_v42 = vmul.f32 0.7978846, %v292_v35  ;;  %v295_v44 = vadd.f32 %v283_v39, %v605_v20 }
  0xfd   :  { %v455_v45 = vpop.eup %454  ;;  %v320_v46 = vadd.f32 1.0, %v453_v41  ;;  %v305_v47 = vmul.f32 0.7978846, %v293_v40  ;;  %v306_v50 = vmul.f32 0.7978846, %v294_v43 }
  0xfe   :  { %v457_v48 = vpop.eup %456  ;;  %v324_v49 = vadd.f32 1.0, %v455_v45  ;;  %468 = vtanh.f32 %v304_v42  ;;  %v307_v51 = vmul.f32 0.7978846, %v295_v44 }
  0xff   :  { %v459_v52 = vpop.eup %458  ;;  %v332_v53 = vmul.f32 0.5, %v320_v46  ;;  %v321_v54 = vadd.f32 1.0, %v457_v48  ;;  %470 = vtanh.f32 %v305_v47 }
 0x100   :  { %v461_v55 = vpop.eup %460  ;;  %v336_v56 = vmul.f32 0.5, %v324_v49  ;;  %v325_v57 = vadd.f32 1.0, %v459_v52  ;;  %472 = vtanh.f32 %v306_v50 }
 0x101   :  { %v463_v58 = vpop.eup %462  ;;  %v344_v59 = vmul.f32 %v332_v53, %v538_v21  ;;  %v333_v60 = vmul.f32 0.5, %v321_v54  ;;  %v322_v61 = vadd.f32 1.0, %v461_v55  ;;  %474 = vtanh.f32 %v307_v51 }
 0x102   :  { %v465_v62 = vpop.eup %464  ;;  %v348_v63 = vmul.f32 %v336_v56, %v541_v22  ;;  %v337_v0 = vmul.f32 0.5, %v325_v57  ;;  %v326_v1 = vadd.f32 1.0, %v463_v58 }
 0x103   :  { %v467_v2 = vpop.eup %466  ;;  %v345_v3 = vmul.f32 %v333_v60, %v544_v25  ;;  %v334_v4 = vmul.f32 0.5, %v322_v61  ;;  %v323_v5 = vadd.f32 1.0, %v465_v62 }
 0x104   :  { %v349_v6 = vmul.f32 %v337_v0, %v547_v26  ;;  %v338_v7 = vmul.f32 0.5, %v326_v1  ;;  %v327_v8 = vadd.f32 1.0, %v467_v2 }
 0x105   :  { %v422_v9 = vpack.c.bf16 %v345_v3, %v344_v59  ;;  %v346_v21 = vmul.f32 %v334_v4, %v554_v31  ;;  %v335_v10 = vmul.f32 0.5, %v323_v5 }
 0x106   :  { %v424_v11 = vpack.c.bf16 %v349_v6, %v348_v63  ;;  %v350_v13 = vmul.f32 %v338_v7, %v557_v32  ;;  %v339_v14 = vmul.f32 0.5, %v327_v8 }
 0x107   :  { %392 = vst [vmem:[%s654_s3] sm:$0xff] %v422_v9  ;;  %v347_v22 = vmul.f32 %v335_v10, %v564_v37 }
 0x108   :  { %v469_v25 = vpop.eup %468  ;;  %394 = vst [vmem:[%s654_s3 + $0x10] sm:$0xff] %v424_v11  ;;  %v351_v26 = vmul.f32 %v339_v14, %v567_v38 }
 0x109   :  { %v471_v16 = vpop.eup %470  ;;  %v423_v31 = vpack.c.bf16 %v347_v22, %v346_v21  ;;  %v328_v23 = vadd.f32 1.0, %v469_v25 }
 0x10a   :  { %v473_v24 = vpop.eup %472  ;;  %v425_v27 = vpack.c.bf16 %v351_v26, %v350_v13  ;;  %v329_v32 = vadd.f32 1.0, %v471_v16 }
 0x10b   :  { %v475_v28 = vpop.eup %474  ;;  %393 = vst [vmem:[%s654_s3 + $0x8] sm:$0xff] %v423_v31  ;;  %v340_v29 = vmul.f32 0.5, %v328_v23  ;;  %v330_v37 = vadd.f32 1.0, %v473_v24 }
 0x10c   :  { %395 = vst [vmem:[%s654_s3 + $0x18] sm:$0xff] %v425_v27  ;;  %v341_v17 = vmul.f32 0.5, %v329_v32  ;;  %v331_v18 = vadd.f32 1.0, %v475_v28 }
 0x10d   :  { %v352_v38 = vmul.f32 %v340_v29, %v594_v12  ;;  %v342_v30 = vmul.f32 0.5, %v330_v37 }
 0x10e   :  { %v353_v33 = vmul.f32 %v341_v17, %v597_v15  ;;  %v343_v34 = vmul.f32 0.5, %v331_v18 }
 0x10f   :  { %v354_v35 = vmul.f32 %v342_v30, %v602_v19 }
 0x110   :  { %v426_v36 = vpack.c.bf16 %v353_v33, %v352_v38  ;;  %v355_v39 = vmul.f32 %v343_v34, %v605_v20 }
 0x112   :  { %396 = vst [vmem:[%s654_s3 + $0x20] sm:$0xff] %v426_v36  ;;  %v427_v40 = vpack.c.bf16 %v355_v39, %v354_v35 }
 0x114   :  { %397 = vst [vmem:[%s654_s3 + $0x28] sm:$0xff] %v427_v40 }

// kernel: _lambda_.43
= control target key start
LH: loop header
LB: loop body
LE: loop exit
PB: predicated region body
PF: predicated region fallthrough
CT: control target
= control target key end

     0   :  { %s1133_s21 = smov 0   ;;  %s1135_s22 = smov 0   ;;  %s1245_s0 = inlined_call_operand.vmem [shape: bf16[2,24,256], index: 0, kind: input, shape index: {}]   ;;  %s1246_s1 = inlined_call_operand.vmem [shape: bf16[256,64], index: 1, kind: input, shape index: {}]   ;;  %s1247_s2 = inlined_call_operand.vmem [shape: f32[1,64], index: 2, kind: input, shape index: {}]   ;;  %s1248_s3 = inlined_call_operand.vmem [shape: f32[2,24,64], index: 3, kind: input, shape index: {}]   ;;  %s1249_s4 = inlined_call_operand.vmem [shape: f32[2,1,64], index: 4, kind: input, shape index: {}]   ;;  %s1250_s5 = inlined_call_operand.vmem [shape: f32[2,24,64], index: 5, kind: input, shape index: {}]   ;;  %s1251_s6 = inlined_call_operand.vmem [shape: f32[2,24,64], index: 6, kind: output, shape index: {}]  }
   0x1   :  { %s1137_s23 = smov 0  }
   0x2 LB: > { %s42_s24 = sadd.s32 1, %s1091_s22  ;;  %p953_p0 = scmp.ge.s32.totalorder %s1095_s23, 1  ;;  %s1095_s23 = sphi %s1137_s23, %s16_s23   ;;  %s1091_s22 = sphi %s1135_s22, %s1253_s22   ;;  %s1087_s21 = sphi %s1133_s21, %s1252_s21  }
   0x3   : > { %p44_p1 = scmp.ge.s32.totalorder %s42_s24, 2  ;;  %p338_p2 = scmp.lt.s32.totalorder %s1095_s23, 3 }
   0x5   : > { %s1255_s24 = smov (%p44_p1, %s42_s24), 0  ;;  %p339_p3 = pnand %p953_p0, %p338_p2 }
   0x6   : > { %v1052_v0 = vld [vmem:[%s1246_s1 + $0x40] sm:$0xff] (!%p339_p3)   ;;  %v1054_v2 = vld [vmem:[%s1246_s1 + $0x48] sm:$0xff] (!%p339_p3)   ;;  %p427_p4 = scmp.lt.s32.totalorder (!%p339_p3), %s1087_s21, 1  ;;  %v1056_v4 = vld [vmem:[%s1246_s1 + $0x50] sm:$0xff] (!%p339_p3)   ;;  %vm503_vm0 = vcmask (!%p339_p3), 523264   ;;  %v1097_v21 = vmov (!%p339_p3), 0.0  }
   0x7   : > { %342 = sbr.rel (%p339_p3) target bundleno = 275 (0x113), region = 44  ;;  %v1053_v1 = vld [vmem:[%s1246_s1] sm:$0xff] (!%p339_p3)   ;;  %982 = vmatprep.subr.bf16.mxu0 (!%p339_p3), %v1052_v0  ;;  %1010 = vmatprep.subr.bf16.mxu1 (!%p339_p3), %v1052_v0  ;;  %v1055_v3 = vld [vmem:[%s1246_s1 + $0x8] sm:$0xff] (!%p339_p3)   ;;  %v1057_v5 = vld [vmem:[%s1246_s1 + $0x10] sm:$0xff] (!%p339_p3)   ;;  %504 = vst.msk [vmem:[#allocation2] sm:$0xff] (!%p339_p3), %vm503_vm0, %v1097_v21 }
   0x8   : > { %983 = vmatpush3.bf16.msra.mxu0 (!%p339_p3), %v1053_v1  ;;  %1018 = vmatpush3.bf16.msra.mxu1 (!%p339_p3), %v1053_v1  ;;  %v1058_v6 = vld [vmem:[%s1246_s1 + $0x58] sm:$0xff] (!%p339_p3)   ;;  %v1060_v8 = vld [vmem:[%s1246_s1 + $0x60] sm:$0xff] (!%p339_p3)   ;;  %v1062_v10 = vld [vmem:[%s1246_s1 + $0x68] sm:$0xff] (!%p339_p3)   ;;  %505 = vst.msk [vmem:[#allocation2 + $0x8] sm:$0xff] (!%p339_p3), %vm503_vm0, %v1097_v21 }
   0x9   : > { %984 = vmatprep.subr.bf16.mxu0 (!%p339_p3), %v1054_v2  ;;  %1011 = vmatprep.subr.bf16.mxu1 (!%p339_p3), %v1054_v2  ;;  %v1059_v7 = vld [vmem:[%s1246_s1 + $0x18] sm:$0xff] (!%p339_p3)   ;;  %v1061_v9 = vld [vmem:[%s1246_s1 + $0x20] sm:$0xff] (!%p339_p3)   ;;  %v1063_v12 = vld [vmem:[%s1246_s1 + $0x28] sm:$0xff] (!%p339_p3)   ;;  %506 = vst.msk [vmem:[#allocation2 + $0x10] sm:$0xff] (!%p339_p3), %vm503_vm0, %v1097_v21 }
   0xa   : > { %v1064_v14 = vld [vmem:[%s1246_s1 + $0x70] sm:$0xff] (!%p339_p3)   ;;  %v1066_v17 = vld [vmem:[%s1246_s1 + $0x78] sm:$0xff] (!%p339_p3)   ;;  %v978_v39 = vld [vmem:[%s1247_s2] ss:$0 sm:$0xff] (!%p339_p3) }
   0xb   : > { %v1065_v16 = vld [vmem:[%s1246_s1 + $0x30] sm:$0xff] (!%p339_p3)   ;;  %v1067_v18 = vld [vmem:[%s1246_s1 + $0x38] sm:$0xff] (!%p339_p3)  }
   0xc   : > { %985 = vmatpush3.bf16.msra.mxu0 (!%p339_p3), %v1055_v3  ;;  %1019 = vmatpush3.bf16.msra.mxu1 (!%p339_p3), %v1055_v3 }
   0xd   : > { %986 = vmatprep.subr.bf16.mxu0 (!%p339_p3), %v1056_v4  ;;  %1012 = vmatprep.subr.bf16.mxu1 (!%p339_p3), %v1056_v4 }
   0xe   : > { %s1257_s21 = smov (!%p427_p4, %s1087_s21), 1  ;;  %v507_v24 = vld [vmem:[#allocation2] sm:$0xff] }
   0xf   : > { %s1175_s15 = smul.u32 24, %s1257_s21  ;;  %v508_v32 = vld [vmem:[#allocation2 + $0x8] sm:$0xff]  ;;  %s471_s29 = scalar_lea.vmem %s1249_s4, %s1257_s21 }
  0x10   : > { %987 = vmatpush3.bf16.msra.mxu0 %v1057_v5  ;;  %1020 = vmatpush3.bf16.msra.mxu1 %v1057_v5  ;;  %v509_v26 = vld [vmem:[#allocation2 + $0x10] sm:$0xff]  ;;  %v979_v47 = vld [vmem:[%s471_s29] ss:$0 sm:$0xff] }
  0x11   : > { %988 = vmatprep.subr.bf16.mxu0 %v1058_v6  ;;  %1013 = vmatprep.subr.bf16.mxu1 %v1058_v6  ;;  %s438_s26 = scalar_lea.vmem %s1245_s0, %s1175_s15  ;;  %s483_s20 = scalar_lea.vmem %s1250_s5, %s1175_s15 }
  0x12   : > { %v1070_v11 = vld [vmem:[%s438_s26 + $0x4] ss:$8 sps:$4 sm:$0xff]   ;;  %v512_v13 = vld [vmem:[%s438_s26 + $0x10] sm:$0xff]  ;;  %v1068_v19 = vld [vmem:[%s438_s26] ss:$8 sps:$4 sm:$0xff]   ;;  %s464_s8 = scalar_lea.vmem %s1248_s3, %s1175_s15  ;;  %s496_s10 = scalar_lea.vmem %s1251_s6, %s1175_s15 }
  0x13   : > { %v961_v15 = vcombine.high %v512_v13, %v512_v13  ;;  %690 = vmatprep.mubr.bf16.mxu0 %v1070_v11  ;;  %v960_v20 = vcombine.low %v512_v13, %v512_v13  ;;  %v729_v40 = vld [vmem:[%s483_s20] sm:$0xff]  ;;  %v731_v41 = vld [vmem:[%s483_s20 + $0x10] sm:$0xff]  ;;  %v730_v46 = vld [vmem:[%s483_s20 + $0x8] sm:$0xff] }
  0x14   : > { %989 = vmatpush3.bf16.msra.mxu0 %v1059_v7  ;;  %1021 = vmatpush3.bf16.msra.mxu1 %v1059_v7  ;;  %v735_v52 = vld [vmem:[%s464_s8] sm:$0xff]  ;;  %v737_v53 = vld [vmem:[%s464_s8 + $0x10] sm:$0xff]  ;;  %v736_v57 = vld [vmem:[%s464_s8 + $0x8] sm:$0xff] }
  0x15   : > { %990 = vmatprep.subr.bf16.mxu0 %v1060_v8  ;;  %1014 = vmatprep.subr.bf16.mxu1 %v1060_v8 }
  0x16   : > { %698 = vmatprep.mubr.bf16.mxu1 %v961_v15 }
  0x18   : > { %991 = vmatpush3.bf16.msra.mxu0 %v1061_v9  ;;  %1022 = vmatpush3.bf16.msra.mxu1 %v1061_v9 }
  0x19   : > { %992 = vmatprep.subr.bf16.mxu0 %v1062_v10  ;;  %1015 = vmatprep.subr.bf16.mxu1 %v1062_v10 }
  0x1c   : > { %993 = vmatpush3.bf16.msra.mxu0 %v1063_v12  ;;  %1023 = vmatpush3.bf16.msra.mxu1 %v1063_v12 }
  0x1d   : > { %994 = vmatprep.subr.bf16.mxu0 %v1064_v14  ;;  %1016 = vmatprep.subr.bf16.mxu1 %v1064_v14 }
  0x20   : > { %995 = vmatpush3.bf16.msra.mxu0 %v1065_v16  ;;  %1024 = vmatpush3.bf16.msra.mxu1 %v1065_v16 }
  0x21   : > { %996 = vmatprep.subr.bf16.mxu0 %v1066_v17  ;;  %1017 = vmatprep.subr.bf16.mxu1 %v1066_v17 }
  0x24   : > { %997 = vmatpush3.bf16.msra.mxu0 %v1067_v18  ;;  %1025 = vmatpush3.bf16.msra.mxu1 %v1067_v18 }
  0x27   : > { %691 = vmatmul.mubr.bf16.vlgmr.msra.gmra.mrb[0].mxu0 %v1068_v19  ;;  %699 = vmatmul.mubr.bf16.vlgmr.msra.gmra.mrb[0].mxu1 %v960_v20 }
  0xfa   : > { %v998_v22 = vpop.f32.mrb[0].mxu0  ;;  %v1004_v23 = vpop.f32.mrb[0].mxu1 }
  0xfb   : > { %v999_v25 = vpop.f32.mrb[1].mxu0  ;;  %v1005_v27 = vpop.f32.mrb[1].mxu1 }
  0xfc   : > { %v1000_v28 = vadd.f32 %v999_v25, %v998_v22  ;;  %v1006_v29 = vadd.f32 %v1005_v27, %v1004_v23  ;;  %v1001_v30 = vpop.f32.mrb[2].mxu0  ;;  %v1007_v31 = vpop.f32.mrb[2].mxu1 }
  0xfd   : > { %v1002_v33 = vpop.f32.mrb[3].mxu0  ;;  %v1008_v34 = vpop.f32.mrb[3].mxu1 }
  0xfe   : > { %v706_v35 = vadd.f32 %v1000_v28, %v507_v24  ;;  %v708_v36 = vadd.f32 %v1006_v29, %v509_v26  ;;  %v1003_v37 = vadd.f32 %v1002_v33, %v1001_v30 }
 0x100   : > { %710 = vst.msk [vmem:[#allocation2] sm:$0xff] %vm503_vm0, %v706_v35  ;;  %712 = vst.msk [vmem:[#allocation2 + $0x10] sm:$0xff] %vm503_vm0, %v708_v36  ;;  %v707_v38 = vadd.f32 %v1003_v37, %v508_v32 }
 0x102   : > { %711 = vst.msk [vmem:[#allocation2 + $0x8] sm:$0xff] %vm503_vm0, %v707_v38 }
 0x107   : > { %v716_v42 = vld [vmem:[#allocation2] sm:$0xff]  ;;  %v718_v43 = vld [vmem:[#allocation2 + $0x10] sm:$0xff] }
 0x108   : > { %v726_v44 = vadd.f32 %v978_v39, %v716_v42  ;;  %v728_v45 = vadd.f32 %v978_v39, %v718_v43 }
 0x109   : > { %v717_v48 = vld [vmem:[#allocation2 + $0x8] sm:$0xff] }
 0x10a   : > { %v732_v49 = vadd.f32 %v729_v40, %v726_v44  ;;  %v734_v50 = vadd.f32 %v731_v41, %v728_v45  ;;  %v727_v51 = vadd.f32 %v978_v39, %v717_v48 }
 0x10c   : > { %v745_v54 = vmul.f32 %v979_v47, %v732_v49  ;;  %v747_v55 = vmul.f32 %v979_v47, %v734_v50  ;;  %v733_v56 = vadd.f32 %v730_v46, %v727_v51 }
 0x10e   : > { %v748_v58 = vadd.f32 %v745_v54, %v735_v52  ;;  %v750_v59 = vadd.f32 %v747_v55, %v737_v53  ;;  %v746_v60 = vmul.f32 %v979_v47, %v733_v56 }
 0x110   : > { %751 = vst.msk [vmem:[%s496_s10] sm:$0xff] %vm503_vm0, %v748_v58  ;;  %753 = vst.msk [vmem:[%s496_s10 + $0x10] sm:$0xff] %vm503_vm0, %v750_v59  ;;  %v749_v61 = vadd.f32 %v746_v60, %v736_v57 }
 0x112   : > { %752 = vst.msk [vmem:[%s496_s10 + $0x8] sm:$0xff] %vm503_vm0, %v749_v61 }
 0x113 PF: > { %s16_s23 = sadd.s32 1, %s1095_s23   ;;  %s1252_s21 = smov %s1091_s22 }
 0x114   : > { %p13_p5 = scmp.ge.s32.totalorder %s16_s23, 4   ;;  %s1253_s22 = smov %s1255_s24 }
 0x116   :  { %15 = sbr.rel (!%p13_p5) target bundleno = 2 (0x2), region = 97 }

</bundles_post_ra>
